<compile_context>
chip_gen: v5e
topology: v5e:2x2
jax: 0.10.0
libtpu: 0.0.40
codegen_flags: <defaults>
</compile_context>

<pallas_src>
import jax
import jax.numpy as jnp
from jax.experimental import pallas as pl
from jax.experimental.pallas import tpu as pltpu


# ----------------------------------------------------------------------------
# Pallas kernel: one bidirectional LSTM layer (both directions, full sequence)
# ----------------------------------------------------------------------------
def _bidir_lstm_layer_kernel(x_ref, mask_ref, wih_ref, whh_ref, b_ref,
                             y_ref, hfin_ref):
    """Single invocation = one full bidirectional LSTM layer.

    x_ref    : (T*B, Din)   time-major flattened layer input
    mask_ref : (T*B, H)     lane-dense validity mask (1.0 where t < length)
    wih_ref  : (Din, 8H)    input weights, columns [fwd(i,f,o,g) | bwd(i,f,o,g)]
    whh_ref  : (2, H, 4H)   recurrent weights, [fwd, bwd]
    b_ref    : (1, 8H)      b_ih + b_hh for both directions
    y_ref    : (T*B, 2H)    padded outputs, columns [fwd | bwd]  (next layer's x)
    hfin_ref : (B, 2H)      final hidden states, [fwd | bwd]

    NOTE on gate layout: columns within a direction are (i, f, o, g) so one
    contiguous sigmoid covers 3H columns and one tanh covers the last H.
    PyTorch nn.LSTM uses (i, f, g, o); this reparameterization is only valid
    for randomly-initialized weights — permute columns if importing real
    checkpoints.
    """
    TB, H2 = y_ref.shape
    H = H2 // 2
    B = hfin_ref.shape[0]
    T = TB // B

    # ---- Hoisted input projection for BOTH directions: one MXU matmul ----
    gx = jnp.dot(x_ref[...], wih_ref[...],
                 preferred_element_type=jnp.float32) + b_ref[...]   # (T*B, 8H)
    valid = mask_ref[...] > 0.0                                     # (T*B, H)

    whh_f = whh_ref[0]                                              # (H, 4H)
    whh_b = whh_ref[1]

    def cell(gates, c):
        ifo = jax.nn.sigmoid(gates[:, :3 * H])        # i | f | o  (one EUP pass)
        g_g = jnp.tanh(gates[:, 3 * H:])              # g
        i_g = ifo[:, :H]
        f_g = ifo[:, H:2 * H]
        o_g = ifo[:, 2 * H:]
        c_new = f_g * c + i_g * g_g
        h_new = o_g * jnp.tanh(c_new)
        return h_new, c_new

    h_f = jnp.zeros((B, H), jnp.float32)
    c_f = jnp.zeros((B, H), jnp.float32)
    h_b = jnp.zeros((B, H), jnp.float32)
    c_b = jnp.zeros((B, H), jnp.float32)
    y_f = [None] * T
    y_b = [None] * T

    # ---- Serial recurrence: fully unrolled, fwd/bwd interleaved, all time
    # indices are Python constants (static slices of values, no VMEM traffic
    # inside the loop except the two tiny recurrent matmuls).
    for t in range(T):
        tf = t                    # forward time
        tb = T - 1 - t            # backward time
        rf = slice(tf * B, (tf + 1) * B)
        rb = slice(tb * B, (tb + 1) * B)

        gates_f = gx[rf, :4 * H] + jnp.dot(h_f, whh_f,
                                           preferred_element_type=jnp.float32)
        gates_b = gx[rb, 4 * H:] + jnp.dot(h_b, whh_b,
                                           preferred_element_type=jnp.float32)
        hf_new, cf_new = cell(gates_f, c_f)
        hb_new, cb_new = cell(gates_b, c_b)

        vf = valid[rf]            # (B, H) — plain VPU selects below
        vb = valid[rb]
        h_f = jnp.where(vf, hf_new, h_f)
        c_f = jnp.where(vf, cf_new, c_f)
        h_b = jnp.where(vb, hb_new, h_b)
        c_b = jnp.where(vb, cb_new, c_b)
        y_f[tf] = jnp.where(vf, hf_new, 0.0)          # zero at padded slots
        y_b[tb] = jnp.where(vb, hb_new, 0.0)

    # ---- One contiguous, lane-dense store of the whole layer output ----
    y_ref[...] = jnp.concatenate(
        [jnp.concatenate([y_f[t], y_b[t]], axis=-1) for t in range(T)], axis=0)
    hfin_ref[...] = jnp.concatenate([h_f, h_b], axis=-1)


# ----------------------------------------------------------------------------
# Wrapper for one bidirectional LSTM layer
# ----------------------------------------------------------------------------
def bidir_lstm_layer(x, mask, wih, whh, b, *, batch):
    """x: (T*B, Din); mask: (T*B, H); wih: (Din, 8H); whh: (2, H, 4H);
    b: (1, 8H).  Returns y: (T*B, 2H) and h_fin: (B, 2H), both [fwd | bwd]."""
    TB, _ = x.shape
    H = whh.shape[1]
    B = batch
    vmem = pl.BlockSpec(memory_space=pltpu.MemorySpace.VMEM)
    y, h_fin = pl.pallas_call(
        _bidir_lstm_layer_kernel,
        out_shape=(jax.ShapeDtypeStruct((TB, 2 * H), jnp.float32),
                   jax.ShapeDtypeStruct((B, 2 * H), jnp.float32)),
        in_specs=[vmem, vmem, vmem, vmem, vmem],
        out_specs=(vmem, vmem),
    )(x, mask, wih, whh, b)
    return y, h_fin


def rnn_forward(params, text, text_lengths):
    """Equivalent of RNN.forward in eval mode.

    text: (T, B) int32 token ids; text_lengths: (B,) int32.
    Returns logits of shape (B, output_dim).
    """
    T, B = text.shape
    H = params["lstm"][0][1].shape[-1] // 4          # whh is (2, H, 4H)

    # Embedding gather + eval-mode dropout (identity): plain-JAX glue.
    embedded = params["embedding"][text]             # (T, B, E)

    # Packed-sequence validity mask, pre-broadcast to lane-dense (T*B, H)
    # so every in-kernel select is a plain VPU op.
    valid = (jnp.arange(T, dtype=jnp.int32)[:, None]
             < text_lengths.astype(jnp.int32)[None, :]).astype(jnp.float32)
    mask = jnp.broadcast_to(valid[:, :, None], (T, B, H)).reshape(T * B, H)

    x = embedded.reshape(T * B, -1)                  # time-major flattened
    h_fin = None
    for (wih, whh, b) in params["lstm"]:
        # Layer output y is (T*B, 2H) [fwd | bwd] and is consumed directly as
        # the next layer's input (inter-layer dropout is identity in eval).
        x, h_fin = bidir_lstm_layer(x, mask, wih, whh, b, batch=B)

    # hidden = dropout(cat(h_fwd, h_bwd)) -> fc.  h_fin is already (B, 2H)
    # [fwd | bwd]; the lane-sparse (B, 2H) @ (2H, 4) matmul stays in XLA.
    return h_fin @ params["fc_w_t"] + params["fc_b"]


# ----------------------------------------------------------------------------
# Deterministic parameter initialization
# ----------------------------------------------------------------------------
def init_params(key, input_dim, embedding_dim, hidden_dim, output_dim,
                n_layers, bidirectional=True):
    assert bidirectional, "this script mirrors the bidirectional=True config"
    H = hidden_dim
    keys = iter(jax.random.split(key, 1 + n_layers * 2 * 4 + 2))
    params = {"embedding": jax.random.normal(
        next(keys), (input_dim, embedding_dim), jnp.float32)}

    k = 1.0 / (hidden_dim ** 0.5)
    layers = []
    for layer in range(n_layers):
        din = embedding_dim if layer == 0 else 2 * H
        wih_dirs, whh_dirs, b_dirs = [], [], []
        for _ in range(2):                          # forward, backward
            # Gate columns are laid out (i, f, o, g) — an equivalent
            # reparameterization of PyTorch's (i, f, g, o) for randomly-
            # initialized weights; permute if importing real checkpoints.
            w_ih = jax.random.uniform(next(keys), (4 * H, din), jnp.float32, -k, k)
            w_hh = jax.random.uniform(next(keys), (4 * H, H), jnp.float32, -k, k)
            b_ih = jax.random.uniform(next(keys), (4 * H,), jnp.float32, -k, k)
            b_hh = jax.random.uniform(next(keys), (4 * H,), jnp.float32, -k, k)
            wih_dirs.append(w_ih.T)                 # (din, 4H)
            whh_dirs.append(w_hh.T)                 # (H, 4H)
            b_dirs.append(b_ih + b_hh)              # (4H,)
        layers.append((
            jnp.concatenate(wih_dirs, axis=-1),        # (din, 8H)  [fwd | bwd]
            jnp.stack(whh_dirs),                       # (2, H, 4H)
            jnp.concatenate(b_dirs).reshape(1, 8 * H),  # (1, 8H)
        ))
    params["lstm"] = layers

    fc_in = 2 * H
    kf = 1.0 / (fc_in ** 0.5)
    fc_w = jax.random.uniform(next(keys), (output_dim, fc_in), jnp.float32, -kf, kf)
    fc_b = jax.random.uniform(next(keys), (output_dim,), jnp.float32, -kf, kf)
    params["fc_w_t"] = fc_w.T
    params["fc_b"] = fc_b.reshape(1, -1)
    return params


# ----------------------------------------------------------------------------
if __name__ == "__main__":
    INPUT_DIM = 50        # vocab size
    EMBEDDING_DIM = 32
    HIDDEN_DIM = 32
    OUTPUT_DIM = 4
    N_LAYERS = 2
    BIDIRECTIONAL = True
    # DROPOUT = 0.5  -> identity in eval-mode forward

    T, B = 8, 2           # (seq_len, batch), seq-first like PyTorch LSTM

    key = jax.random.PRNGKey(0)
    k_params, k_text = jax.random.split(key)

    params = init_params(k_params, INPUT_DIM, EMBEDDING_DIM, HIDDEN_DIM,
                         OUTPUT_DIM, N_LAYERS, BIDIRECTIONAL)

    text = jax.random.randint(k_text, (T, B), 0, INPUT_DIM, dtype=jnp.int32)
    text_lengths = jnp.array([8, 5], dtype=jnp.int32)   # variable lengths

    logits = jax.jit(rnn_forward)(params, text, text_lengths)
    jax.block_until_ready(logits)
    assert logits.shape == (B, OUTPUT_DIM)
    print("KERNEL_OK")
</pallas_src>

<mosaic_0001>
module attributes {stable_mosaic.version = 11 : i64} {
  func.func @_bidir_lstm_layer_kernel(%arg0: memref<16x32xf32, #tpu.memory_space<vmem>>, %arg1: memref<16x32xf32, #tpu.memory_space<vmem>>, %arg2: memref<32x256xf32, #tpu.memory_space<vmem>>, %arg3: memref<2x32x128xf32, #tpu.memory_space<vmem>>, %arg4: memref<1x256xf32, #tpu.memory_space<vmem>>, %arg5: memref<16x64xf32, #tpu.memory_space<vmem>>, %arg6: memref<2x64xf32, #tpu.memory_space<vmem>>) attributes {dimension_semantics = [], scalar_prefetch = 0 : i64, scratch_operands = 0 : i64, tpu.core_type = #tpu.core_type<tc>} {
    %c0 = arith.constant 0 : index
    %c0_0 = arith.constant 0 : index
    %0 = vector.load %arg0[%c0, %c0_0] : memref<16x32xf32, #tpu.memory_space<vmem>>, vector<16x32xf32>
    %c0_1 = arith.constant 0 : index
    %c0_2 = arith.constant 0 : index
    %1 = vector.load %arg2[%c0_1, %c0_2] : memref<32x256xf32, #tpu.memory_space<vmem>>, vector<32x256xf32>
    %cst = arith.constant dense<0.000000e+00> : vector<16x256xf32>
    %2 = tpu.matmul %0, %1, %cst {dimension_numbers = #tpu.dot_dimension_numbers<[1], [0], [0], [1], [0, 0, 1, 1], [], []>} : vector<16x32xf32>, vector<32x256xf32>, vector<16x256xf32> -> vector<16x256xf32>
    %c0_3 = arith.constant 0 : index
    %c0_4 = arith.constant 0 : index
    %3 = vector.load %arg4[%c0_3, %c0_4] : memref<1x256xf32, #tpu.memory_space<vmem>>, vector<1x256xf32>
    %4 = vector.broadcast %3 : vector<1x256xf32> to vector<16x256xf32>
    %5 = arith.addf %2, %4 : vector<16x256xf32>
    %c0_5 = arith.constant 0 : index
    %c0_6 = arith.constant 0 : index
    %6 = vector.load %arg1[%c0_5, %c0_6] : memref<16x32xf32, #tpu.memory_space<vmem>>, vector<16x32xf32>
    %cst_7 = arith.constant 0.000000e+00 : f32
    %7 = vector.broadcast %cst_7 : f32 to vector<16x32xf32>
    %8 = arith.cmpf ogt, %6, %7 : vector<16x32xf32>
    %c0_8 = arith.constant 0 : index
    %c0_9 = arith.constant 0 : index
    %c0_10 = arith.constant 0 : index
    %9 = vector.load %arg3[%c0_8, %c0_9, %c0_10] : memref<2x32x128xf32, #tpu.memory_space<vmem>>, vector<1x32x128xf32>
    %10 = vector.shape_cast %9 : vector<1x32x128xf32> to vector<32x128xf32>
    %c1 = arith.constant 1 : index
    %c0_11 = arith.constant 0 : index
    %c0_12 = arith.constant 0 : index
    %11 = vector.load %arg3[%c1, %c0_11, %c0_12] : memref<2x32x128xf32, #tpu.memory_space<vmem>>, vector<1x32x128xf32>
    %12 = vector.shape_cast %11 : vector<1x32x128xf32> to vector<32x128xf32>
    %cst_13 = arith.constant 0.000000e+00 : f32
    %13 = vector.broadcast %cst_13 : f32 to vector<2x32xf32>
    %cst_14 = arith.constant 0.000000e+00 : f32
    %14 = vector.broadcast %cst_14 : f32 to vector<2x32xf32>
    %cst_15 = arith.constant 0.000000e+00 : f32
    %15 = vector.broadcast %cst_15 : f32 to vector<2x32xf32>
    %cst_16 = arith.constant 0.000000e+00 : f32
    %16 = vector.broadcast %cst_16 : f32 to vector<2x32xf32>
    %17 = vector.extract_strided_slice %5 {offsets = [0, 0], sizes = [2, 128], strides = [1, 1]} : vector<16x256xf32> to vector<2x128xf32>
    %cst_17 = arith.constant dense<0.000000e+00> : vector<2x128xf32>
    %18 = tpu.matmul %13, %10, %cst_17 {dimension_numbers = #tpu.dot_dimension_numbers<[1], [0], [0], [1], [0, 0, 1, 1], [], []>} : vector<2x32xf32>, vector<32x128xf32>, vector<2x128xf32> -> vector<2x128xf32>
    %19 = arith.addf %17, %18 : vector<2x128xf32>
    %20 = vector.extract_strided_slice %5 {offsets = [14, 128], sizes = [2, 128], strides = [1, 1]} : vector<16x256xf32> to vector<2x128xf32>
    %cst_18 = arith.constant dense<0.000000e+00> : vector<2x128xf32>
    %21 = tpu.matmul %15, %12, %cst_18 {dimension_numbers = #tpu.dot_dimension_numbers<[1], [0], [0], [1], [0, 0, 1, 1], [], []>} : vector<2x32xf32>, vector<32x128xf32>, vector<2x128xf32> -> vector<2x128xf32>
    %22 = arith.addf %20, %21 : vector<2x128xf32>
    %23 = vector.extract_strided_slice %19 {offsets = [0, 0], sizes = [2, 96], strides = [1, 1]} : vector<2x128xf32> to vector<2x96xf32>
    %24 = arith.negf %23 : vector<2x96xf32>
    %25 = math.exp %24 : vector<2x96xf32>
    %cst_19 = arith.constant 1.000000e+00 : f32
    %26 = vector.broadcast %cst_19 : f32 to vector<2x96xf32>
    %27 = arith.addf %26, %25 : vector<2x96xf32>
    %28 = arith.divf %26, %27 : vector<2x96xf32>
    %29 = vector.extract_strided_slice %19 {offsets = [0, 96], sizes = [2, 32], strides = [1, 1]} : vector<2x128xf32> to vector<2x32xf32>
    %30 = math.tanh %29 : vector<2x32xf32>
    %31 = vector.extract_strided_slice %28 {offsets = [0, 0], sizes = [2, 32], strides = [1, 1]} : vector<2x96xf32> to vector<2x32xf32>
    %32 = vector.extract_strided_slice %28 {offsets = [0, 32], sizes = [2, 32], strides = [1, 1]} : vector<2x96xf32> to vector<2x32xf32>
    %33 = vector.extract_strided_slice %28 {offsets = [0, 64], sizes = [2, 32], strides = [1, 1]} : vector<2x96xf32> to vector<2x32xf32>
    %34 = arith.mulf %32, %14 : vector<2x32xf32>
    %35 = arith.mulf %31, %30 : vector<2x32xf32>
    %36 = arith.addf %34, %35 : vector<2x32xf32>
    %37 = math.tanh %36 : vector<2x32xf32>
    %38 = arith.mulf %33, %37 : vector<2x32xf32>
    %39 = vector.extract_strided_slice %22 {offsets = [0, 0], sizes = [2, 96], strides = [1, 1]} : vector<2x128xf32> to vector<2x96xf32>
    %40 = arith.negf %39 : vector<2x96xf32>
    %41 = math.exp %40 : vector<2x96xf32>
    %cst_20 = arith.constant 1.000000e+00 : f32
    %42 = vector.broadcast %cst_20 : f32 to vector<2x96xf32>
    %43 = arith.addf %42, %41 : vector<2x96xf32>
    %44 = arith.divf %42, %43 : vector<2x96xf32>
    %45 = vector.extract_strided_slice %22 {offsets = [0, 96], sizes = [2, 32], strides = [1, 1]} : vector<2x128xf32> to vector<2x32xf32>
    %46 = math.tanh %45 : vector<2x32xf32>
    %47 = vector.extract_strided_slice %44 {offsets = [0, 0], sizes = [2, 32], strides = [1, 1]} : vector<2x96xf32> to vector<2x32xf32>
    %48 = vector.extract_strided_slice %44 {offsets = [0, 32], sizes = [2, 32], strides = [1, 1]} : vector<2x96xf32> to vector<2x32xf32>
    %49 = vector.extract_strided_slice %44 {offsets = [0, 64], sizes = [2, 32], strides = [1, 1]} : vector<2x96xf32> to vector<2x32xf32>
    %50 = arith.mulf %48, %16 : vector<2x32xf32>
    %51 = arith.mulf %47, %46 : vector<2x32xf32>
    %52 = arith.addf %50, %51 : vector<2x32xf32>
    %53 = math.tanh %52 : vector<2x32xf32>
    %54 = arith.mulf %49, %53 : vector<2x32xf32>
    %55 = vector.extract_strided_slice %8 {offsets = [0, 0], sizes = [2, 32], strides = [1, 1]} : vector<16x32xi1> to vector<2x32xi1>
    %56 = vector.extract_strided_slice %8 {offsets = [14, 0], sizes = [2, 32], strides = [1, 1]} : vector<16x32xi1> to vector<2x32xi1>
    %57 = arith.select %55, %38, %13 : vector<2x32xi1>, vector<2x32xf32>
    %58 = arith.select %55, %36, %14 : vector<2x32xi1>, vector<2x32xf32>
    %59 = arith.select %56, %54, %15 : vector<2x32xi1>, vector<2x32xf32>
    %60 = arith.select %56, %52, %16 : vector<2x32xi1>, vector<2x32xf32>
    %cst_21 = arith.constant 0.000000e+00 : f32
    %61 = vector.broadcast %cst_21 : f32 to vector<2x32xf32>
    %62 = arith.select %55, %38, %61 : vector<2x32xi1>, vector<2x32xf32>
    %cst_22 = arith.constant 0.000000e+00 : f32
    %63 = vector.broadcast %cst_22 : f32 to vector<2x32xf32>
    %64 = arith.select %56, %54, %63 : vector<2x32xi1>, vector<2x32xf32>
    %65 = vector.extract_strided_slice %5 {offsets = [2, 0], sizes = [2, 128], strides = [1, 1]} : vector<16x256xf32> to vector<2x128xf32>
    %cst_23 = arith.constant dense<0.000000e+00> : vector<2x128xf32>
    %66 = tpu.matmul %57, %10, %cst_23 {dimension_numbers = #tpu.dot_dimension_numbers<[1], [0], [0], [1], [0, 0, 1, 1], [], []>} : vector<2x32xf32>, vector<32x128xf32>, vector<2x128xf32> -> vector<2x128xf32>
    %67 = arith.addf %65, %66 : vector<2x128xf32>
    %68 = vector.extract_strided_slice %5 {offsets = [12, 128], sizes = [2, 128], strides = [1, 1]} : vector<16x256xf32> to vector<2x128xf32>
    %cst_24 = arith.constant dense<0.000000e+00> : vector<2x128xf32>
    %69 = tpu.matmul %59, %12, %cst_24 {dimension_numbers = #tpu.dot_dimension_numbers<[1], [0], [0], [1], [0, 0, 1, 1], [], []>} : vector<2x32xf32>, vector<32x128xf32>, vector<2x128xf32> -> vector<2x128xf32>
    %70 = arith.addf %68, %69 : vector<2x128xf32>
    %71 = vector.extract_strided_slice %67 {offsets = [0, 0], sizes = [2, 96], strides = [1, 1]} : vector<2x128xf32> to vector<2x96xf32>
    %72 = arith.negf %71 : vector<2x96xf32>
    %73 = math.exp %72 : vector<2x96xf32>
    %cst_25 = arith.constant 1.000000e+00 : f32
    %74 = vector.broadcast %cst_25 : f32 to vector<2x96xf32>
    %75 = arith.addf %74, %73 : vector<2x96xf32>
    %76 = arith.divf %74, %75 : vector<2x96xf32>
    %77 = vector.extract_strided_slice %67 {offsets = [0, 96], sizes = [2, 32], strides = [1, 1]} : vector<2x128xf32> to vector<2x32xf32>
    %78 = math.tanh %77 : vector<2x32xf32>
    %79 = vector.extract_strided_slice %76 {offsets = [0, 0], sizes = [2, 32], strides = [1, 1]} : vector<2x96xf32> to vector<2x32xf32>
    %80 = vector.extract_strided_slice %76 {offsets = [0, 32], sizes = [2, 32], strides = [1, 1]} : vector<2x96xf32> to vector<2x32xf32>
    %81 = vector.extract_strided_slice %76 {offsets = [0, 64], sizes = [2, 32], strides = [1, 1]} : vector<2x96xf32> to vector<2x32xf32>
    %82 = arith.mulf %80, %58 : vector<2x32xf32>
    %83 = arith.mulf %79, %78 : vector<2x32xf32>
    %84 = arith.addf %82, %83 : vector<2x32xf32>
    %85 = math.tanh %84 : vector<2x32xf32>
    %86 = arith.mulf %81, %85 : vector<2x32xf32>
    %87 = vector.extract_strided_slice %70 {offsets = [0, 0], sizes = [2, 96], strides = [1, 1]} : vector<2x128xf32> to vector<2x96xf32>
    %88 = arith.negf %87 : vector<2x96xf32>
    %89 = math.exp %88 : vector<2x96xf32>
    %cst_26 = arith.constant 1.000000e+00 : f32
    %90 = vector.broadcast %cst_26 : f32 to vector<2x96xf32>
    %91 = arith.addf %90, %89 : vector<2x96xf32>
    %92 = arith.divf %90, %91 : vector<2x96xf32>
    %93 = vector.extract_strided_slice %70 {offsets = [0, 96], sizes = [2, 32], strides = [1, 1]} : vector<2x128xf32> to vector<2x32xf32>
    %94 = math.tanh %93 : vector<2x32xf32>
    %95 = vector.extract_strided_slice %92 {offsets = [0, 0], sizes = [2, 32], strides = [1, 1]} : vector<2x96xf32> to vector<2x32xf32>
    %96 = vector.extract_strided_slice %92 {offsets = [0, 32], sizes = [2, 32], strides = [1, 1]} : vector<2x96xf32> to vector<2x32xf32>
    %97 = vector.extract_strided_slice %92 {offsets = [0, 64], sizes = [2, 32], strides = [1, 1]} : vector<2x96xf32> to vector<2x32xf32>
    %98 = arith.mulf %96, %60 : vector<2x32xf32>
    %99 = arith.mulf %95, %94 : vector<2x32xf32>
    %100 = arith.addf %98, %99 : vector<2x32xf32>
    %101 = math.tanh %100 : vector<2x32xf32>
    %102 = arith.mulf %97, %101 : vector<2x32xf32>
    %103 = vector.extract_strided_slice %8 {offsets = [2, 0], sizes = [2, 32], strides = [1, 1]} : vector<16x32xi1> to vector<2x32xi1>
    %104 = vector.extract_strided_slice %8 {offsets = [12, 0], sizes = [2, 32], strides = [1, 1]} : vector<16x32xi1> to vector<2x32xi1>
    %105 = arith.select %103, %86, %57 : vector<2x32xi1>, vector<2x32xf32>
    %106 = arith.select %103, %84, %58 : vector<2x32xi1>, vector<2x32xf32>
    %107 = arith.select %104, %102, %59 : vector<2x32xi1>, vector<2x32xf32>
    %108 = arith.select %104, %100, %60 : vector<2x32xi1>, vector<2x32xf32>
    %cst_27 = arith.constant 0.000000e+00 : f32
    %109 = vector.broadcast %cst_27 : f32 to vector<2x32xf32>
    %110 = arith.select %103, %86, %109 : vector<2x32xi1>, vector<2x32xf32>
    %cst_28 = arith.constant 0.000000e+00 : f32
    %111 = vector.broadcast %cst_28 : f32 to vector<2x32xf32>
    %112 = arith.select %104, %102, %111 : vector<2x32xi1>, vector<2x32xf32>
    %113 = vector.extract_strided_slice %5 {offsets = [4, 0], sizes = [2, 128], strides = [1, 1]} : vector<16x256xf32> to vector<2x128xf32>
    %cst_29 = arith.constant dense<0.000000e+00> : vector<2x128xf32>
    %114 = tpu.matmul %105, %10, %cst_29 {dimension_numbers = #tpu.dot_dimension_numbers<[1], [0], [0], [1], [0, 0, 1, 1], [], []>} : vector<2x32xf32>, vector<32x128xf32>, vector<2x128xf32> -> vector<2x128xf32>
    %115 = arith.addf %113, %114 : vector<2x128xf32>
    %116 = vector.extract_strided_slice %5 {offsets = [10, 128], sizes = [2, 128], strides = [1, 1]} : vector<16x256xf32> to vector<2x128xf32>
    %cst_30 = arith.constant dense<0.000000e+00> : vector<2x128xf32>
    %117 = tpu.matmul %107, %12, %cst_30 {dimension_numbers = #tpu.dot_dimension_numbers<[1], [0], [0], [1], [0, 0, 1, 1], [], []>} : vector<2x32xf32>, vector<32x128xf32>, vector<2x128xf32> -> vector<2x128xf32>
    %118 = arith.addf %116, %117 : vector<2x128xf32>
    %119 = vector.extract_strided_slice %115 {offsets = [0, 0], sizes = [2, 96], strides = [1, 1]} : vector<2x128xf32> to vector<2x96xf32>
    %120 = arith.negf %119 : vector<2x96xf32>
    %121 = math.exp %120 : vector<2x96xf32>
    %cst_31 = arith.constant 1.000000e+00 : f32
    %122 = vector.broadcast %cst_31 : f32 to vector<2x96xf32>
    %123 = arith.addf %122, %121 : vector<2x96xf32>
    %124 = arith.divf %122, %123 : vector<2x96xf32>
    %125 = vector.extract_strided_slice %115 {offsets = [0, 96], sizes = [2, 32], strides = [1, 1]} : vector<2x128xf32> to vector<2x32xf32>
    %126 = math.tanh %125 : vector<2x32xf32>
    %127 = vector.extract_strided_slice %124 {offsets = [0, 0], sizes = [2, 32], strides = [1, 1]} : vector<2x96xf32> to vector<2x32xf32>
    %128 = vector.extract_strided_slice %124 {offsets = [0, 32], sizes = [2, 32], strides = [1, 1]} : vector<2x96xf32> to vector<2x32xf32>
    %129 = vector.extract_strided_slice %124 {offsets = [0, 64], sizes = [2, 32], strides = [1, 1]} : vector<2x96xf32> to vector<2x32xf32>
    %130 = arith.mulf %128, %106 : vector<2x32xf32>
    %131 = arith.mulf %127, %126 : vector<2x32xf32>
    %132 = arith.addf %130, %131 : vector<2x32xf32>
    %133 = math.tanh %132 : vector<2x32xf32>
    %134 = arith.mulf %129, %133 : vector<2x32xf32>
    %135 = vector.extract_strided_slice %118 {offsets = [0, 0], sizes = [2, 96], strides = [1, 1]} : vector<2x128xf32> to vector<2x96xf32>
    %136 = arith.negf %135 : vector<2x96xf32>
    %137 = math.exp %136 : vector<2x96xf32>
    %cst_32 = arith.constant 1.000000e+00 : f32
    %138 = vector.broadcast %cst_32 : f32 to vector<2x96xf32>
    %139 = arith.addf %138, %137 : vector<2x96xf32>
    %140 = arith.divf %138, %139 : vector<2x96xf32>
    %141 = vector.extract_strided_slice %118 {offsets = [0, 96], sizes = [2, 32], strides = [1, 1]} : vector<2x128xf32> to vector<2x32xf32>
    %142 = math.tanh %141 : vector<2x32xf32>
    %143 = vector.extract_strided_slice %140 {offsets = [0, 0], sizes = [2, 32], strides = [1, 1]} : vector<2x96xf32> to vector<2x32xf32>
    %144 = vector.extract_strided_slice %140 {offsets = [0, 32], sizes = [2, 32], strides = [1, 1]} : vector<2x96xf32> to vector<2x32xf32>
    %145 = vector.extract_strided_slice %140 {offsets = [0, 64], sizes = [2, 32], strides = [1, 1]} : vector<2x96xf32> to vector<2x32xf32>
    %146 = arith.mulf %144, %108 : vector<2x32xf32>
    %147 = arith.mulf %143, %142 : vector<2x32xf32>
    %148 = arith.addf %146, %147 : vector<2x32xf32>
    %149 = math.tanh %148 : vector<2x32xf32>
    %150 = arith.mulf %145, %149 : vector<2x32xf32>
    %151 = vector.extract_strided_slice %8 {offsets = [4, 0], sizes = [2, 32], strides = [1, 1]} : vector<16x32xi1> to vector<2x32xi1>
    %152 = vector.extract_strided_slice %8 {offsets = [10, 0], sizes = [2, 32], strides = [1, 1]} : vector<16x32xi1> to vector<2x32xi1>
    %153 = arith.select %151, %134, %105 : vector<2x32xi1>, vector<2x32xf32>
    %154 = arith.select %151, %132, %106 : vector<2x32xi1>, vector<2x32xf32>
    %155 = arith.select %152, %150, %107 : vector<2x32xi1>, vector<2x32xf32>
    %156 = arith.select %152, %148, %108 : vector<2x32xi1>, vector<2x32xf32>
    %cst_33 = arith.constant 0.000000e+00 : f32
    %157 = vector.broadcast %cst_33 : f32 to vector<2x32xf32>
    %158 = arith.select %151, %134, %157 : vector<2x32xi1>, vector<2x32xf32>
    %cst_34 = arith.constant 0.000000e+00 : f32
    %159 = vector.broadcast %cst_34 : f32 to vector<2x32xf32>
    %160 = arith.select %152, %150, %159 : vector<2x32xi1>, vector<2x32xf32>
    %161 = vector.extract_strided_slice %5 {offsets = [6, 0], sizes = [2, 128], strides = [1, 1]} : vector<16x256xf32> to vector<2x128xf32>
    %cst_35 = arith.constant dense<0.000000e+00> : vector<2x128xf32>
    %162 = tpu.matmul %153, %10, %cst_35 {dimension_numbers = #tpu.dot_dimension_numbers<[1], [0], [0], [1], [0, 0, 1, 1], [], []>} : vector<2x32xf32>, vector<32x128xf32>, vector<2x128xf32> -> vector<2x128xf32>
    %163 = arith.addf %161, %162 : vector<2x128xf32>
    %164 = vector.extract_strided_slice %5 {offsets = [8, 128], sizes = [2, 128], strides = [1, 1]} : vector<16x256xf32> to vector<2x128xf32>
    %cst_36 = arith.constant dense<0.000000e+00> : vector<2x128xf32>
    %165 = tpu.matmul %155, %12, %cst_36 {dimension_numbers = #tpu.dot_dimension_numbers<[1], [0], [0], [1], [0, 0, 1, 1], [], []>} : vector<2x32xf32>, vector<32x128xf32>, vector<2x128xf32> -> vector<2x128xf32>
    %166 = arith.addf %164, %165 : vector<2x128xf32>
    %167 = vector.extract_strided_slice %163 {offsets = [0, 0], sizes = [2, 96], strides = [1, 1]} : vector<2x128xf32> to vector<2x96xf32>
    %168 = arith.negf %167 : vector<2x96xf32>
    %169 = math.exp %168 : vector<2x96xf32>
    %cst_37 = arith.constant 1.000000e+00 : f32
    %170 = vector.broadcast %cst_37 : f32 to vector<2x96xf32>
    %171 = arith.addf %170, %169 : vector<2x96xf32>
    %172 = arith.divf %170, %171 : vector<2x96xf32>
    %173 = vector.extract_strided_slice %163 {offsets = [0, 96], sizes = [2, 32], strides = [1, 1]} : vector<2x128xf32> to vector<2x32xf32>
    %174 = math.tanh %173 : vector<2x32xf32>
    %175 = vector.extract_strided_slice %172 {offsets = [0, 0], sizes = [2, 32], strides = [1, 1]} : vector<2x96xf32> to vector<2x32xf32>
    %176 = vector.extract_strided_slice %172 {offsets = [0, 32], sizes = [2, 32], strides = [1, 1]} : vector<2x96xf32> to vector<2x32xf32>
    %177 = vector.extract_strided_slice %172 {offsets = [0, 64], sizes = [2, 32], strides = [1, 1]} : vector<2x96xf32> to vector<2x32xf32>
    %178 = arith.mulf %176, %154 : vector<2x32xf32>
    %179 = arith.mulf %175, %174 : vector<2x32xf32>
    %180 = arith.addf %178, %179 : vector<2x32xf32>
    %181 = math.tanh %180 : vector<2x32xf32>
    %182 = arith.mulf %177, %181 : vector<2x32xf32>
    %183 = vector.extract_strided_slice %166 {offsets = [0, 0], sizes = [2, 96], strides = [1, 1]} : vector<2x128xf32> to vector<2x96xf32>
    %184 = arith.negf %183 : vector<2x96xf32>
    %185 = math.exp %184 : vector<2x96xf32>
    %cst_38 = arith.constant 1.000000e+00 : f32
    %186 = vector.broadcast %cst_38 : f32 to vector<2x96xf32>
    %187 = arith.addf %186, %185 : vector<2x96xf32>
    %188 = arith.divf %186, %187 : vector<2x96xf32>
    %189 = vector.extract_strided_slice %166 {offsets = [0, 96], sizes = [2, 32], strides = [1, 1]} : vector<2x128xf32> to vector<2x32xf32>
    %190 = math.tanh %189 : vector<2x32xf32>
    %191 = vector.extract_strided_slice %188 {offsets = [0, 0], sizes = [2, 32], strides = [1, 1]} : vector<2x96xf32> to vector<2x32xf32>
    %192 = vector.extract_strided_slice %188 {offsets = [0, 32], sizes = [2, 32], strides = [1, 1]} : vector<2x96xf32> to vector<2x32xf32>
    %193 = vector.extract_strided_slice %188 {offsets = [0, 64], sizes = [2, 32], strides = [1, 1]} : vector<2x96xf32> to vector<2x32xf32>
    %194 = arith.mulf %192, %156 : vector<2x32xf32>
    %195 = arith.mulf %191, %190 : vector<2x32xf32>
    %196 = arith.addf %194, %195 : vector<2x32xf32>
    %197 = math.tanh %196 : vector<2x32xf32>
    %198 = arith.mulf %193, %197 : vector<2x32xf32>
    %199 = vector.extract_strided_slice %8 {offsets = [6, 0], sizes = [2, 32], strides = [1, 1]} : vector<16x32xi1> to vector<2x32xi1>
    %200 = vector.extract_strided_slice %8 {offsets = [8, 0], sizes = [2, 32], strides = [1, 1]} : vector<16x32xi1> to vector<2x32xi1>
    %201 = arith.select %199, %182, %153 : vector<2x32xi1>, vector<2x32xf32>
    %202 = arith.select %199, %180, %154 : vector<2x32xi1>, vector<2x32xf32>
    %203 = arith.select %200, %198, %155 : vector<2x32xi1>, vector<2x32xf32>
    %204 = arith.select %200, %196, %156 : vector<2x32xi1>, vector<2x32xf32>
    %cst_39 = arith.constant 0.000000e+00 : f32
    %205 = vector.broadcast %cst_39 : f32 to vector<2x32xf32>
    %206 = arith.select %199, %182, %205 : vector<2x32xi1>, vector<2x32xf32>
    %cst_40 = arith.constant 0.000000e+00 : f32
    %207 = vector.broadcast %cst_40 : f32 to vector<2x32xf32>
    %208 = arith.select %200, %198, %207 : vector<2x32xi1>, vector<2x32xf32>
    %209 = vector.extract_strided_slice %5 {offsets = [8, 0], sizes = [2, 128], strides = [1, 1]} : vector<16x256xf32> to vector<2x128xf32>
    %cst_41 = arith.constant dense<0.000000e+00> : vector<2x128xf32>
    %210 = tpu.matmul %201, %10, %cst_41 {dimension_numbers = #tpu.dot_dimension_numbers<[1], [0], [0], [1], [0, 0, 1, 1], [], []>} : vector<2x32xf32>, vector<32x128xf32>, vector<2x128xf32> -> vector<2x128xf32>
    %211 = arith.addf %209, %210 : vector<2x128xf32>
    %212 = vector.extract_strided_slice %5 {offsets = [6, 128], sizes = [2, 128], strides = [1, 1]} : vector<16x256xf32> to vector<2x128xf32>
    %cst_42 = arith.constant dense<0.000000e+00> : vector<2x128xf32>
    %213 = tpu.matmul %203, %12, %cst_42 {dimension_numbers = #tpu.dot_dimension_numbers<[1], [0], [0], [1], [0, 0, 1, 1], [], []>} : vector<2x32xf32>, vector<32x128xf32>, vector<2x128xf32> -> vector<2x128xf32>
    %214 = arith.addf %212, %213 : vector<2x128xf32>
    %215 = vector.extract_strided_slice %211 {offsets = [0, 0], sizes = [2, 96], strides = [1, 1]} : vector<2x128xf32> to vector<2x96xf32>
    %216 = arith.negf %215 : vector<2x96xf32>
    %217 = math.exp %216 : vector<2x96xf32>
    %cst_43 = arith.constant 1.000000e+00 : f32
    %218 = vector.broadcast %cst_43 : f32 to vector<2x96xf32>
    %219 = arith.addf %218, %217 : vector<2x96xf32>
    %220 = arith.divf %218, %219 : vector<2x96xf32>
    %221 = vector.extract_strided_slice %211 {offsets = [0, 96], sizes = [2, 32], strides = [1, 1]} : vector<2x128xf32> to vector<2x32xf32>
    %222 = math.tanh %221 : vector<2x32xf32>
    %223 = vector.extract_strided_slice %220 {offsets = [0, 0], sizes = [2, 32], strides = [1, 1]} : vector<2x96xf32> to vector<2x32xf32>
    %224 = vector.extract_strided_slice %220 {offsets = [0, 32], sizes = [2, 32], strides = [1, 1]} : vector<2x96xf32> to vector<2x32xf32>
    %225 = vector.extract_strided_slice %220 {offsets = [0, 64], sizes = [2, 32], strides = [1, 1]} : vector<2x96xf32> to vector<2x32xf32>
    %226 = arith.mulf %224, %202 : vector<2x32xf32>
    %227 = arith.mulf %223, %222 : vector<2x32xf32>
    %228 = arith.addf %226, %227 : vector<2x32xf32>
    %229 = math.tanh %228 : vector<2x32xf32>
    %230 = arith.mulf %225, %229 : vector<2x32xf32>
    %231 = vector.extract_strided_slice %214 {offsets = [0, 0], sizes = [2, 96], strides = [1, 1]} : vector<2x128xf32> to vector<2x96xf32>
    %232 = arith.negf %231 : vector<2x96xf32>
    %233 = math.exp %232 : vector<2x96xf32>
    %cst_44 = arith.constant 1.000000e+00 : f32
    %234 = vector.broadcast %cst_44 : f32 to vector<2x96xf32>
    %235 = arith.addf %234, %233 : vector<2x96xf32>
    %236 = arith.divf %234, %235 : vector<2x96xf32>
    %237 = vector.extract_strided_slice %214 {offsets = [0, 96], sizes = [2, 32], strides = [1, 1]} : vector<2x128xf32> to vector<2x32xf32>
    %238 = math.tanh %237 : vector<2x32xf32>
    %239 = vector.extract_strided_slice %236 {offsets = [0, 0], sizes = [2, 32], strides = [1, 1]} : vector<2x96xf32> to vector<2x32xf32>
    %240 = vector.extract_strided_slice %236 {offsets = [0, 32], sizes = [2, 32], strides = [1, 1]} : vector<2x96xf32> to vector<2x32xf32>
    %241 = vector.extract_strided_slice %236 {offsets = [0, 64], sizes = [2, 32], strides = [1, 1]} : vector<2x96xf32> to vector<2x32xf32>
    %242 = arith.mulf %240, %204 : vector<2x32xf32>
    %243 = arith.mulf %239, %238 : vector<2x32xf32>
    %244 = arith.addf %242, %243 : vector<2x32xf32>
    %245 = math.tanh %244 : vector<2x32xf32>
    %246 = arith.mulf %241, %245 : vector<2x32xf32>
    %247 = vector.extract_strided_slice %8 {offsets = [8, 0], sizes = [2, 32], strides = [1, 1]} : vector<16x32xi1> to vector<2x32xi1>
    %248 = vector.extract_strided_slice %8 {offsets = [6, 0], sizes = [2, 32], strides = [1, 1]} : vector<16x32xi1> to vector<2x32xi1>
    %249 = arith.select %247, %230, %201 : vector<2x32xi1>, vector<2x32xf32>
    %250 = arith.select %247, %228, %202 : vector<2x32xi1>, vector<2x32xf32>
    %251 = arith.select %248, %246, %203 : vector<2x32xi1>, vector<2x32xf32>
    %252 = arith.select %248, %244, %204 : vector<2x32xi1>, vector<2x32xf32>
    %cst_45 = arith.constant 0.000000e+00 : f32
    %253 = vector.broadcast %cst_45 : f32 to vector<2x32xf32>
    %254 = arith.select %247, %230, %253 : vector<2x32xi1>, vector<2x32xf32>
    %cst_46 = arith.constant 0.000000e+00 : f32
    %255 = vector.broadcast %cst_46 : f32 to vector<2x32xf32>
    %256 = arith.select %248, %246, %255 : vector<2x32xi1>, vector<2x32xf32>
    %257 = vector.extract_strided_slice %5 {offsets = [10, 0], sizes = [2, 128], strides = [1, 1]} : vector<16x256xf32> to vector<2x128xf32>
    %cst_47 = arith.constant dense<0.000000e+00> : vector<2x128xf32>
    %258 = tpu.matmul %249, %10, %cst_47 {dimension_numbers = #tpu.dot_dimension_numbers<[1], [0], [0], [1], [0, 0, 1, 1], [], []>} : vector<2x32xf32>, vector<32x128xf32>, vector<2x128xf32> -> vector<2x128xf32>
    %259 = arith.addf %257, %258 : vector<2x128xf32>
    %260 = vector.extract_strided_slice %5 {offsets = [4, 128], sizes = [2, 128], strides = [1, 1]} : vector<16x256xf32> to vector<2x128xf32>
    %cst_48 = arith.constant dense<0.000000e+00> : vector<2x128xf32>
    %261 = tpu.matmul %251, %12, %cst_48 {dimension_numbers = #tpu.dot_dimension_numbers<[1], [0], [0], [1], [0, 0, 1, 1], [], []>} : vector<2x32xf32>, vector<32x128xf32>, vector<2x128xf32> -> vector<2x128xf32>
    %262 = arith.addf %260, %261 : vector<2x128xf32>
    %263 = vector.extract_strided_slice %259 {offsets = [0, 0], sizes = [2, 96], strides = [1, 1]} : vector<2x128xf32> to vector<2x96xf32>
    %264 = arith.negf %263 : vector<2x96xf32>
    %265 = math.exp %264 : vector<2x96xf32>
    %cst_49 = arith.constant 1.000000e+00 : f32
    %266 = vector.broadcast %cst_49 : f32 to vector<2x96xf32>
    %267 = arith.addf %266, %265 : vector<2x96xf32>
    %268 = arith.divf %266, %267 : vector<2x96xf32>
    %269 = vector.extract_strided_slice %259 {offsets = [0, 96], sizes = [2, 32], strides = [1, 1]} : vector<2x128xf32> to vector<2x32xf32>
    %270 = math.tanh %269 : vector<2x32xf32>
    %271 = vector.extract_strided_slice %268 {offsets = [0, 0], sizes = [2, 32], strides = [1, 1]} : vector<2x96xf32> to vector<2x32xf32>
    %272 = vector.extract_strided_slice %268 {offsets = [0, 32], sizes = [2, 32], strides = [1, 1]} : vector<2x96xf32> to vector<2x32xf32>
    %273 = vector.extract_strided_slice %268 {offsets = [0, 64], sizes = [2, 32], strides = [1, 1]} : vector<2x96xf32> to vector<2x32xf32>
    %274 = arith.mulf %272, %250 : vector<2x32xf32>
    %275 = arith.mulf %271, %270 : vector<2x32xf32>
    %276 = arith.addf %274, %275 : vector<2x32xf32>
    %277 = math.tanh %276 : vector<2x32xf32>
    %278 = arith.mulf %273, %277 : vector<2x32xf32>
    %279 = vector.extract_strided_slice %262 {offsets = [0, 0], sizes = [2, 96], strides = [1, 1]} : vector<2x128xf32> to vector<2x96xf32>
    %280 = arith.negf %279 : vector<2x96xf32>
    %281 = math.exp %280 : vector<2x96xf32>
    %cst_50 = arith.constant 1.000000e+00 : f32
    %282 = vector.broadcast %cst_50 : f32 to vector<2x96xf32>
    %283 = arith.addf %282, %281 : vector<2x96xf32>
    %284 = arith.divf %282, %283 : vector<2x96xf32>
    %285 = vector.extract_strided_slice %262 {offsets = [0, 96], sizes = [2, 32], strides = [1, 1]} : vector<2x128xf32> to vector<2x32xf32>
    %286 = math.tanh %285 : vector<2x32xf32>
    %287 = vector.extract_strided_slice %284 {offsets = [0, 0], sizes = [2, 32], strides = [1, 1]} : vector<2x96xf32> to vector<2x32xf32>
    %288 = vector.extract_strided_slice %284 {offsets = [0, 32], sizes = [2, 32], strides = [1, 1]} : vector<2x96xf32> to vector<2x32xf32>
    %289 = vector.extract_strided_slice %284 {offsets = [0, 64], sizes = [2, 32], strides = [1, 1]} : vector<2x96xf32> to vector<2x32xf32>
    %290 = arith.mulf %288, %252 : vector<2x32xf32>
    %291 = arith.mulf %287, %286 : vector<2x32xf32>
    %292 = arith.addf %290, %291 : vector<2x32xf32>
    %293 = math.tanh %292 : vector<2x32xf32>
    %294 = arith.mulf %289, %293 : vector<2x32xf32>
    %295 = vector.extract_strided_slice %8 {offsets = [10, 0], sizes = [2, 32], strides = [1, 1]} : vector<16x32xi1> to vector<2x32xi1>
    %296 = vector.extract_strided_slice %8 {offsets = [4, 0], sizes = [2, 32], strides = [1, 1]} : vector<16x32xi1> to vector<2x32xi1>
    %297 = arith.select %295, %278, %249 : vector<2x32xi1>, vector<2x32xf32>
    %298 = arith.select %295, %276, %250 : vector<2x32xi1>, vector<2x32xf32>
    %299 = arith.select %296, %294, %251 : vector<2x32xi1>, vector<2x32xf32>
    %300 = arith.select %296, %292, %252 : vector<2x32xi1>, vector<2x32xf32>
    %cst_51 = arith.constant 0.000000e+00 : f32
    %301 = vector.broadcast %cst_51 : f32 to vector<2x32xf32>
    %302 = arith.select %295, %278, %301 : vector<2x32xi1>, vector<2x32xf32>
    %cst_52 = arith.constant 0.000000e+00 : f32
    %303 = vector.broadcast %cst_52 : f32 to vector<2x32xf32>
    %304 = arith.select %296, %294, %303 : vector<2x32xi1>, vector<2x32xf32>
    %305 = vector.extract_strided_slice %5 {offsets = [12, 0], sizes = [2, 128], strides = [1, 1]} : vector<16x256xf32> to vector<2x128xf32>
    %cst_53 = arith.constant dense<0.000000e+00> : vector<2x128xf32>
    %306 = tpu.matmul %297, %10, %cst_53 {dimension_numbers = #tpu.dot_dimension_numbers<[1], [0], [0], [1], [0, 0, 1, 1], [], []>} : vector<2x32xf32>, vector<32x128xf32>, vector<2x128xf32> -> vector<2x128xf32>
    %307 = arith.addf %305, %306 : vector<2x128xf32>
    %308 = vector.extract_strided_slice %5 {offsets = [2, 128], sizes = [2, 128], strides = [1, 1]} : vector<16x256xf32> to vector<2x128xf32>
    %cst_54 = arith.constant dense<0.000000e+00> : vector<2x128xf32>
    %309 = tpu.matmul %299, %12, %cst_54 {dimension_numbers = #tpu.dot_dimension_numbers<[1], [0], [0], [1], [0, 0, 1, 1], [], []>} : vector<2x32xf32>, vector<32x128xf32>, vector<2x128xf32> -> vector<2x128xf32>
    %310 = arith.addf %308, %309 : vector<2x128xf32>
    %311 = vector.extract_strided_slice %307 {offsets = [0, 0], sizes = [2, 96], strides = [1, 1]} : vector<2x128xf32> to vector<2x96xf32>
    %312 = arith.negf %311 : vector<2x96xf32>
    %313 = math.exp %312 : vector<2x96xf32>
    %cst_55 = arith.constant 1.000000e+00 : f32
    %314 = vector.broadcast %cst_55 : f32 to vector<2x96xf32>
    %315 = arith.addf %314, %313 : vector<2x96xf32>
    %316 = arith.divf %314, %315 : vector<2x96xf32>
    %317 = vector.extract_strided_slice %307 {offsets = [0, 96], sizes = [2, 32], strides = [1, 1]} : vector<2x128xf32> to vector<2x32xf32>
    %318 = math.tanh %317 : vector<2x32xf32>
    %319 = vector.extract_strided_slice %316 {offsets = [0, 0], sizes = [2, 32], strides = [1, 1]} : vector<2x96xf32> to vector<2x32xf32>
    %320 = vector.extract_strided_slice %316 {offsets = [0, 32], sizes = [2, 32], strides = [1, 1]} : vector<2x96xf32> to vector<2x32xf32>
    %321 = vector.extract_strided_slice %316 {offsets = [0, 64], sizes = [2, 32], strides = [1, 1]} : vector<2x96xf32> to vector<2x32xf32>
    %322 = arith.mulf %320, %298 : vector<2x32xf32>
    %323 = arith.mulf %319, %318 : vector<2x32xf32>
    %324 = arith.addf %322, %323 : vector<2x32xf32>
    %325 = math.tanh %324 : vector<2x32xf32>
    %326 = arith.mulf %321, %325 : vector<2x32xf32>
    %327 = vector.extract_strided_slice %310 {offsets = [0, 0], sizes = [2, 96], strides = [1, 1]} : vector<2x128xf32> to vector<2x96xf32>
    %328 = arith.negf %327 : vector<2x96xf32>
    %329 = math.exp %328 : vector<2x96xf32>
    %cst_56 = arith.constant 1.000000e+00 : f32
    %330 = vector.broadcast %cst_56 : f32 to vector<2x96xf32>
    %331 = arith.addf %330, %329 : vector<2x96xf32>
    %332 = arith.divf %330, %331 : vector<2x96xf32>
    %333 = vector.extract_strided_slice %310 {offsets = [0, 96], sizes = [2, 32], strides = [1, 1]} : vector<2x128xf32> to vector<2x32xf32>
    %334 = math.tanh %333 : vector<2x32xf32>
    %335 = vector.extract_strided_slice %332 {offsets = [0, 0], sizes = [2, 32], strides = [1, 1]} : vector<2x96xf32> to vector<2x32xf32>
    %336 = vector.extract_strided_slice %332 {offsets = [0, 32], sizes = [2, 32], strides = [1, 1]} : vector<2x96xf32> to vector<2x32xf32>
    %337 = vector.extract_strided_slice %332 {offsets = [0, 64], sizes = [2, 32], strides = [1, 1]} : vector<2x96xf32> to vector<2x32xf32>
    %338 = arith.mulf %336, %300 : vector<2x32xf32>
    %339 = arith.mulf %335, %334 : vector<2x32xf32>
    %340 = arith.addf %338, %339 : vector<2x32xf32>
    %341 = math.tanh %340 : vector<2x32xf32>
    %342 = arith.mulf %337, %341 : vector<2x32xf32>
    %343 = vector.extract_strided_slice %8 {offsets = [12, 0], sizes = [2, 32], strides = [1, 1]} : vector<16x32xi1> to vector<2x32xi1>
    %344 = vector.extract_strided_slice %8 {offsets = [2, 0], sizes = [2, 32], strides = [1, 1]} : vector<16x32xi1> to vector<2x32xi1>
    %345 = arith.select %343, %326, %297 : vector<2x32xi1>, vector<2x32xf32>
    %346 = arith.select %343, %324, %298 : vector<2x32xi1>, vector<2x32xf32>
    %347 = arith.select %344, %342, %299 : vector<2x32xi1>, vector<2x32xf32>
    %348 = arith.select %344, %340, %300 : vector<2x32xi1>, vector<2x32xf32>
    %cst_57 = arith.constant 0.000000e+00 : f32
    %349 = vector.broadcast %cst_57 : f32 to vector<2x32xf32>
    %350 = arith.select %343, %326, %349 : vector<2x32xi1>, vector<2x32xf32>
    %cst_58 = arith.constant 0.000000e+00 : f32
    %351 = vector.broadcast %cst_58 : f32 to vector<2x32xf32>
    %352 = arith.select %344, %342, %351 : vector<2x32xi1>, vector<2x32xf32>
    %353 = vector.extract_strided_slice %5 {offsets = [14, 0], sizes = [2, 128], strides = [1, 1]} : vector<16x256xf32> to vector<2x128xf32>
    %cst_59 = arith.constant dense<0.000000e+00> : vector<2x128xf32>
    %354 = tpu.matmul %345, %10, %cst_59 {dimension_numbers = #tpu.dot_dimension_numbers<[1], [0], [0], [1], [0, 0, 1, 1], [], []>} : vector<2x32xf32>, vector<32x128xf32>, vector<2x128xf32> -> vector<2x128xf32>
    %355 = arith.addf %353, %354 : vector<2x128xf32>
    %356 = vector.extract_strided_slice %5 {offsets = [0, 128], sizes = [2, 128], strides = [1, 1]} : vector<16x256xf32> to vector<2x128xf32>
    %cst_60 = arith.constant dense<0.000000e+00> : vector<2x128xf32>
    %357 = tpu.matmul %347, %12, %cst_60 {dimension_numbers = #tpu.dot_dimension_numbers<[1], [0], [0], [1], [0, 0, 1, 1], [], []>} : vector<2x32xf32>, vector<32x128xf32>, vector<2x128xf32> -> vector<2x128xf32>
    %358 = arith.addf %356, %357 : vector<2x128xf32>
    %359 = vector.extract_strided_slice %355 {offsets = [0, 0], sizes = [2, 96], strides = [1, 1]} : vector<2x128xf32> to vector<2x96xf32>
    %360 = arith.negf %359 : vector<2x96xf32>
    %361 = math.exp %360 : vector<2x96xf32>
    %cst_61 = arith.constant 1.000000e+00 : f32
    %362 = vector.broadcast %cst_61 : f32 to vector<2x96xf32>
    %363 = arith.addf %362, %361 : vector<2x96xf32>
    %364 = arith.divf %362, %363 : vector<2x96xf32>
    %365 = vector.extract_strided_slice %355 {offsets = [0, 96], sizes = [2, 32], strides = [1, 1]} : vector<2x128xf32> to vector<2x32xf32>
    %366 = math.tanh %365 : vector<2x32xf32>
    %367 = vector.extract_strided_slice %364 {offsets = [0, 0], sizes = [2, 32], strides = [1, 1]} : vector<2x96xf32> to vector<2x32xf32>
    %368 = vector.extract_strided_slice %364 {offsets = [0, 32], sizes = [2, 32], strides = [1, 1]} : vector<2x96xf32> to vector<2x32xf32>
    %369 = vector.extract_strided_slice %364 {offsets = [0, 64], sizes = [2, 32], strides = [1, 1]} : vector<2x96xf32> to vector<2x32xf32>
    %370 = arith.mulf %368, %346 : vector<2x32xf32>
    %371 = arith.mulf %367, %366 : vector<2x32xf32>
    %372 = arith.addf %370, %371 : vector<2x32xf32>
    %373 = math.tanh %372 : vector<2x32xf32>
    %374 = arith.mulf %369, %373 : vector<2x32xf32>
    %375 = vector.extract_strided_slice %358 {offsets = [0, 0], sizes = [2, 96], strides = [1, 1]} : vector<2x128xf32> to vector<2x96xf32>
    %376 = arith.negf %375 : vector<2x96xf32>
    %377 = math.exp %376 : vector<2x96xf32>
    %cst_62 = arith.constant 1.000000e+00 : f32
    %378 = vector.broadcast %cst_62 : f32 to vector<2x96xf32>
    %379 = arith.addf %378, %377 : vector<2x96xf32>
    %380 = arith.divf %378, %379 : vector<2x96xf32>
    %381 = vector.extract_strided_slice %358 {offsets = [0, 96], sizes = [2, 32], strides = [1, 1]} : vector<2x128xf32> to vector<2x32xf32>
    %382 = math.tanh %381 : vector<2x32xf32>
    %383 = vector.extract_strided_slice %380 {offsets = [0, 0], sizes = [2, 32], strides = [1, 1]} : vector<2x96xf32> to vector<2x32xf32>
    %384 = vector.extract_strided_slice %380 {offsets = [0, 32], sizes = [2, 32], strides = [1, 1]} : vector<2x96xf32> to vector<2x32xf32>
    %385 = vector.extract_strided_slice %380 {offsets = [0, 64], sizes = [2, 32], strides = [1, 1]} : vector<2x96xf32> to vector<2x32xf32>
    %386 = arith.mulf %384, %348 : vector<2x32xf32>
    %387 = arith.mulf %383, %382 : vector<2x32xf32>
    %388 = arith.addf %386, %387 : vector<2x32xf32>
    %389 = math.tanh %388 : vector<2x32xf32>
    %390 = arith.mulf %385, %389 : vector<2x32xf32>
    %391 = vector.extract_strided_slice %8 {offsets = [14, 0], sizes = [2, 32], strides = [1, 1]} : vector<16x32xi1> to vector<2x32xi1>
    %392 = vector.extract_strided_slice %8 {offsets = [0, 0], sizes = [2, 32], strides = [1, 1]} : vector<16x32xi1> to vector<2x32xi1>
    %393 = arith.select %391, %374, %345 : vector<2x32xi1>, vector<2x32xf32>
    %394 = arith.select %392, %390, %347 : vector<2x32xi1>, vector<2x32xf32>
    %cst_63 = arith.constant 0.000000e+00 : f32
    %395 = vector.broadcast %cst_63 : f32 to vector<2x32xf32>
    %396 = arith.select %391, %374, %395 : vector<2x32xi1>, vector<2x32xf32>
    %cst_64 = arith.constant 0.000000e+00 : f32
    %397 = vector.broadcast %cst_64 : f32 to vector<2x32xf32>
    %398 = arith.select %392, %390, %397 : vector<2x32xi1>, vector<2x32xf32>
    %399 = tpu.concatenate %62, %398 in 1 : vector<2x32xf32>, vector<2x32xf32> -> vector<2x64xf32>
    %400 = tpu.concatenate %110, %352 in 1 : vector<2x32xf32>, vector<2x32xf32> -> vector<2x64xf32>
    %401 = tpu.concatenate %158, %304 in 1 : vector<2x32xf32>, vector<2x32xf32> -> vector<2x64xf32>
    %402 = tpu.concatenate %206, %256 in 1 : vector<2x32xf32>, vector<2x32xf32> -> vector<2x64xf32>
    %403 = tpu.concatenate %254, %208 in 1 : vector<2x32xf32>, vector<2x32xf32> -> vector<2x64xf32>
    %404 = tpu.concatenate %302, %160 in 1 : vector<2x32xf32>, vector<2x32xf32> -> vector<2x64xf32>
    %405 = tpu.concatenate %350, %112 in 1 : vector<2x32xf32>, vector<2x32xf32> -> vector<2x64xf32>
    %406 = tpu.concatenate %396, %64 in 1 : vector<2x32xf32>, vector<2x32xf32> -> vector<2x64xf32>
    %407 = tpu.concatenate %399, %400, %401, %402, %403, %404, %405, %406 in 0 : vector<2x64xf32>, vector<2x64xf32>, vector<2x64xf32>, vector<2x64xf32>, vector<2x64xf32>, vector<2x64xf32>, vector<2x64xf32>, vector<2x64xf32> -> vector<16x64xf32>
    %c0_65 = arith.constant 0 : index
    %c0_66 = arith.constant 0 : index
    %408 = vector.load %arg5[%c0_65, %c0_66] : memref<16x64xf32, #tpu.memory_space<vmem>>, vector<16x64xf32>
    tpu.vector_store %arg5[%c0_65, %c0_66], %407 {strides = array<i32>} : memref<16x64xf32, #tpu.memory_space<vmem>>, vector<16x64xf32>,
    %409 = tpu.concatenate %393, %394 in 1 : vector<2x32xf32>, vector<2x32xf32> -> vector<2x64xf32>
    %c0_67 = arith.constant 0 : index
    %c0_68 = arith.constant 0 : index
    %410 = vector.load %arg6[%c0_67, %c0_68] : memref<2x64xf32, #tpu.memory_space<vmem>>, vector<2x64xf32>
    tpu.vector_store %arg6[%c0_67, %c0_68], %409 {strides = array<i32>} : memref<2x64xf32, #tpu.memory_space<vmem>>, vector<2x64xf32>,
    return
  }
}

module attributes {stable_mosaic.version = 11 : i64} {
  func.func @_bidir_lstm_layer_kernel(%arg0: memref<16x64xf32, #tpu.memory_space<vmem>>, %arg1: memref<16x32xf32, #tpu.memory_space<vmem>>, %arg2: memref<64x256xf32, #tpu.memory_space<vmem>>, %arg3: memref<2x32x128xf32, #tpu.memory_space<vmem>>, %arg4: memref<1x256xf32, #tpu.memory_space<vmem>>, %arg5: memref<16x64xf32, #tpu.memory_space<vmem>>, %arg6: memref<2x64xf32, #tpu.memory_space<vmem>>) attributes {dimension_semantics = [], scalar_prefetch = 0 : i64, scratch_operands = 0 : i64, tpu.core_type = #tpu.core_type<tc>} {
    %c0 = arith.constant 0 : index
    %c0_0 = arith.constant 0 : index
    %0 = vector.load %arg0[%c0, %c0_0] : memref<16x64xf32, #tpu.memory_space<vmem>>, vector<16x64xf32>
    %c0_1 = arith.constant 0 : index
    %c0_2 = arith.constant 0 : index
    %1 = vector.load %arg2[%c0_1, %c0_2] : memref<64x256xf32, #tpu.memory_space<vmem>>, vector<64x256xf32>
    %cst = arith.constant dense<0.000000e+00> : vector<16x256xf32>
    %2 = tpu.matmul %0, %1, %cst {dimension_numbers = #tpu.dot_dimension_numbers<[1], [0], [0], [1], [0, 0, 1, 1], [], []>} : vector<16x64xf32>, vector<64x256xf32>, vector<16x256xf32> -> vector<16x256xf32>
    %c0_3 = arith.constant 0 : index
    %c0_4 = arith.constant 0 : index
    %3 = vector.load %arg4[%c0_3, %c0_4] : memref<1x256xf32, #tpu.memory_space<vmem>>, vector<1x256xf32>
    %4 = vector.broadcast %3 : vector<1x256xf32> to vector<16x256xf32>
    %5 = arith.addf %2, %4 : vector<16x256xf32>
    %c0_5 = arith.constant 0 : index
    %c0_6 = arith.constant 0 : index
    %6 = vector.load %arg1[%c0_5, %c0_6] : memref<16x32xf32, #tpu.memory_space<vmem>>, vector<16x32xf32>
    %cst_7 = arith.constant 0.000000e+00 : f32
    %7 = vector.broadcast %cst_7 : f32 to vector<16x32xf32>
    %8 = arith.cmpf ogt, %6, %7 : vector<16x32xf32>
    %c0_8 = arith.constant 0 : index
    %c0_9 = arith.constant 0 : index
    %c0_10 = arith.constant 0 : index
    %9 = vector.load %arg3[%c0_8, %c0_9, %c0_10] : memref<2x32x128xf32, #tpu.memory_space<vmem>>, vector<1x32x128xf32>
    %10 = vector.shape_cast %9 : vector<1x32x128xf32> to vector<32x128xf32>
    %c1 = arith.constant 1 : index
    %c0_11 = arith.constant 0 : index
    %c0_12 = arith.constant 0 : index
    %11 = vector.load %arg3[%c1, %c0_11, %c0_12] : memref<2x32x128xf32, #tpu.memory_space<vmem>>, vector<1x32x128xf32>
    %12 = vector.shape_cast %11 : vector<1x32x128xf32> to vector<32x128xf32>
    %cst_13 = arith.constant 0.000000e+00 : f32
    %13 = vector.broadcast %cst_13 : f32 to vector<2x32xf32>
    %cst_14 = arith.constant 0.000000e+00 : f32
    %14 = vector.broadcast %cst_14 : f32 to vector<2x32xf32>
    %cst_15 = arith.constant 0.000000e+00 : f32
    %15 = vector.broadcast %cst_15 : f32 to vector<2x32xf32>
    %cst_16 = arith.constant 0.000000e+00 : f32
    %16 = vector.broadcast %cst_16 : f32 to vector<2x32xf32>
    %17 = vector.extract_strided_slice %5 {offsets = [0, 0], sizes = [2, 128], strides = [1, 1]} : vector<16x256xf32> to vector<2x128xf32>
    %cst_17 = arith.constant dense<0.000000e+00> : vector<2x128xf32>
    %18 = tpu.matmul %13, %10, %cst_17 {dimension_numbers = #tpu.dot_dimension_numbers<[1], [0], [0], [1], [0, 0, 1, 1], [], []>} : vector<2x32xf32>, vector<32x128xf32>, vector<2x128xf32> -> vector<2x128xf32>
    %19 = arith.addf %17, %18 : vector<2x128xf32>
    %20 = vector.extract_strided_slice %5 {offsets = [14, 128], sizes = [2, 128], strides = [1, 1]} : vector<16x256xf32> to vector<2x128xf32>
    %cst_18 = arith.constant dense<0.000000e+00> : vector<2x128xf32>
    %21 = tpu.matmul %15, %12, %cst_18 {dimension_numbers = #tpu.dot_dimension_numbers<[1], [0], [0], [1], [0, 0, 1, 1], [], []>} : vector<2x32xf32>, vector<32x128xf32>, vector<2x128xf32> -> vector<2x128xf32>
    %22 = arith.addf %20, %21 : vector<2x128xf32>
    %23 = vector.extract_strided_slice %19 {offsets = [0, 0], sizes = [2, 96], strides = [1, 1]} : vector<2x128xf32> to vector<2x96xf32>
    %24 = arith.negf %23 : vector<2x96xf32>
    %25 = math.exp %24 : vector<2x96xf32>
    %cst_19 = arith.constant 1.000000e+00 : f32
    %26 = vector.broadcast %cst_19 : f32 to vector<2x96xf32>
    %27 = arith.addf %26, %25 : vector<2x96xf32>
    %28 = arith.divf %26, %27 : vector<2x96xf32>
    %29 = vector.extract_strided_slice %19 {offsets = [0, 96], sizes = [2, 32], strides = [1, 1]} : vector<2x128xf32> to vector<2x32xf32>
    %30 = math.tanh %29 : vector<2x32xf32>
    %31 = vector.extract_strided_slice %28 {offsets = [0, 0], sizes = [2, 32], strides = [1, 1]} : vector<2x96xf32> to vector<2x32xf32>
    %32 = vector.extract_strided_slice %28 {offsets = [0, 32], sizes = [2, 32], strides = [1, 1]} : vector<2x96xf32> to vector<2x32xf32>
    %33 = vector.extract_strided_slice %28 {offsets = [0, 64], sizes = [2, 32], strides = [1, 1]} : vector<2x96xf32> to vector<2x32xf32>
    %34 = arith.mulf %32, %14 : vector<2x32xf32>
    %35 = arith.mulf %31, %30 : vector<2x32xf32>
    %36 = arith.addf %34, %35 : vector<2x32xf32>
    %37 = math.tanh %36 : vector<2x32xf32>
    %38 = arith.mulf %33, %37 : vector<2x32xf32>
    %39 = vector.extract_strided_slice %22 {offsets = [0, 0], sizes = [2, 96], strides = [1, 1]} : vector<2x128xf32> to vector<2x96xf32>
    %40 = arith.negf %39 : vector<2x96xf32>
    %41 = math.exp %40 : vector<2x96xf32>
    %cst_20 = arith.constant 1.000000e+00 : f32
    %42 = vector.broadcast %cst_20 : f32 to vector<2x96xf32>
    %43 = arith.addf %42, %41 : vector<2x96xf32>
    %44 = arith.divf %42, %43 : vector<2x96xf32>
    %45 = vector.extract_strided_slice %22 {offsets = [0, 96], sizes = [2, 32], strides = [1, 1]} : vector<2x128xf32> to vector<2x32xf32>
    %46 = math.tanh %45 : vector<2x32xf32>
    %47 = vector.extract_strided_slice %44 {offsets = [0, 0], sizes = [2, 32], strides = [1, 1]} : vector<2x96xf32> to vector<2x32xf32>
    %48 = vector.extract_strided_slice %44 {offsets = [0, 32], sizes = [2, 32], strides = [1, 1]} : vector<2x96xf32> to vector<2x32xf32>
    %49 = vector.extract_strided_slice %44 {offsets = [0, 64], sizes = [2, 32], strides = [1, 1]} : vector<2x96xf32> to vector<2x32xf32>
    %50 = arith.mulf %48, %16 : vector<2x32xf32>
    %51 = arith.mulf %47, %46 : vector<2x32xf32>
    %52 = arith.addf %50, %51 : vector<2x32xf32>
    %53 = math.tanh %52 : vector<2x32xf32>
    %54 = arith.mulf %49, %53 : vector<2x32xf32>
    %55 = vector.extract_strided_slice %8 {offsets = [0, 0], sizes = [2, 32], strides = [1, 1]} : vector<16x32xi1> to vector<2x32xi1>
    %56 = vector.extract_strided_slice %8 {offsets = [14, 0], sizes = [2, 32], strides = [1, 1]} : vector<16x32xi1> to vector<2x32xi1>
    %57 = arith.select %55, %38, %13 : vector<2x32xi1>, vector<2x32xf32>
    %58 = arith.select %55, %36, %14 : vector<2x32xi1>, vector<2x32xf32>
    %59 = arith.select %56, %54, %15 : vector<2x32xi1>, vector<2x32xf32>
    %60 = arith.select %56, %52, %16 : vector<2x32xi1>, vector<2x32xf32>
    %cst_21 = arith.constant 0.000000e+00 : f32
    %61 = vector.broadcast %cst_21 : f32 to vector<2x32xf32>
    %62 = arith.select %55, %38, %61 : vector<2x32xi1>, vector<2x32xf32>
    %cst_22 = arith.constant 0.000000e+00 : f32
    %63 = vector.broadcast %cst_22 : f32 to vector<2x32xf32>
    %64 = arith.select %56, %54, %63 : vector<2x32xi1>, vector<2x32xf32>
    %65 = vector.extract_strided_slice %5 {offsets = [2, 0], sizes = [2, 128], strides = [1, 1]} : vector<16x256xf32> to vector<2x128xf32>
    %cst_23 = arith.constant dense<0.000000e+00> : vector<2x128xf32>
    %66 = tpu.matmul %57, %10, %cst_23 {dimension_numbers = #tpu.dot_dimension_numbers<[1], [0], [0], [1], [0, 0, 1, 1], [], []>} : vector<2x32xf32>, vector<32x128xf32>, vector<2x128xf32> -> vector<2x128xf32>
    %67 = arith.addf %65, %66 : vector<2x128xf32>
    %68 = vector.extract_strided_slice %5 {offsets = [12, 128], sizes = [2, 128], strides = [1, 1]} : vector<16x256xf32> to vector<2x128xf32>
    %cst_24 = arith.constant dense<0.000000e+00> : vector<2x128xf32>
    %69 = tpu.matmul %59, %12, %cst_24 {dimension_numbers = #tpu.dot_dimension_numbers<[1], [0], [0], [1], [0, 0, 1, 1], [], []>} : vector<2x32xf32>, vector<32x128xf32>, vector<2x128xf32> -> vector<2x128xf32>
    %70 = arith.addf %68, %69 : vector<2x128xf32>
    %71 = vector.extract_strided_slice %67 {offsets = [0, 0], sizes = [2, 96], strides = [1, 1]} : vector<2x128xf32> to vector<2x96xf32>
    %72 = arith.negf %71 : vector<2x96xf32>
    %73 = math.exp %72 : vector<2x96xf32>
    %cst_25 = arith.constant 1.000000e+00 : f32
    %74 = vector.broadcast %cst_25 : f32 to vector<2x96xf32>
    %75 = arith.addf %74, %73 : vector<2x96xf32>
    %76 = arith.divf %74, %75 : vector<2x96xf32>
    %77 = vector.extract_strided_slice %67 {offsets = [0, 96], sizes = [2, 32], strides = [1, 1]} : vector<2x128xf32> to vector<2x32xf32>
    %78 = math.tanh %77 : vector<2x32xf32>
    %79 = vector.extract_strided_slice %76 {offsets = [0, 0], sizes = [2, 32], strides = [1, 1]} : vector<2x96xf32> to vector<2x32xf32>
    %80 = vector.extract_strided_slice %76 {offsets = [0, 32], sizes = [2, 32], strides = [1, 1]} : vector<2x96xf32> to vector<2x32xf32>
    %81 = vector.extract_strided_slice %76 {offsets = [0, 64], sizes = [2, 32], strides = [1, 1]} : vector<2x96xf32> to vector<2x32xf32>
    %82 = arith.mulf %80, %58 : vector<2x32xf32>
    %83 = arith.mulf %79, %78 : vector<2x32xf32>
    %84 = arith.addf %82, %83 : vector<2x32xf32>
    %85 = math.tanh %84 : vector<2x32xf32>
    %86 = arith.mulf %81, %85 : vector<2x32xf32>
    %87 = vector.extract_strided_slice %70 {offsets = [0, 0], sizes = [2, 96], strides = [1, 1]} : vector<2x128xf32> to vector<2x96xf32>
    %88 = arith.negf %87 : vector<2x96xf32>
    %89 = math.exp %88 : vector<2x96xf32>
    %cst_26 = arith.constant 1.000000e+00 : f32
    %90 = vector.broadcast %cst_26 : f32 to vector<2x96xf32>
    %91 = arith.addf %90, %89 : vector<2x96xf32>
    %92 = arith.divf %90, %91 : vector<2x96xf32>
    %93 = vector.extract_strided_slice %70 {offsets = [0, 96], sizes = [2, 32], strides = [1, 1]} : vector<2x128xf32> to vector<2x32xf32>
    %94 = math.tanh %93 : vector<2x32xf32>
    %95 = vector.extract_strided_slice %92 {offsets = [0, 0], sizes = [2, 32], strides = [1, 1]} : vector<2x96xf32> to vector<2x32xf32>
    %96 = vector.extract_strided_slice %92 {offsets = [0, 32], sizes = [2, 32], strides = [1, 1]} : vector<2x96xf32> to vector<2x32xf32>
    %97 = vector.extract_strided_slice %92 {offsets = [0, 64], sizes = [2, 32], strides = [1, 1]} : vector<2x96xf32> to vector<2x32xf32>
    %98 = arith.mulf %96, %60 : vector<2x32xf32>
    %99 = arith.mulf %95, %94 : vector<2x32xf32>
    %100 = arith.addf %98, %99 : vector<2x32xf32>
    %101 = math.tanh %100 : vector<2x32xf32>
    %102 = arith.mulf %97, %101 : vector<2x32xf32>
    %103 = vector.extract_strided_slice %8 {offsets = [2, 0], sizes = [2, 32], strides = [1, 1]} : vector<16x32xi1> to vector<2x32xi1>
    %104 = vector.extract_strided_slice %8 {offsets = [12, 0], sizes = [2, 32], strides = [1, 1]} : vector<16x32xi1> to vector<2x32xi1>
    %105 = arith.select %103, %86, %57 : vector<2x32xi1>, vector<2x32xf32>
    %106 = arith.select %103, %84, %58 : vector<2x32xi1>, vector<2x32xf32>
    %107 = arith.select %104, %102, %59 : vector<2x32xi1>, vector<2x32xf32>
    %108 = arith.select %104, %100, %60 : vector<2x32xi1>, vector<2x32xf32>
    %cst_27 = arith.constant 0.000000e+00 : f32
    %109 = vector.broadcast %cst_27 : f32 to vector<2x32xf32>
    %110 = arith.select %103, %86, %109 : vector<2x32xi1>, vector<2x32xf32>
    %cst_28 = arith.constant 0.000000e+00 : f32
    %111 = vector.broadcast %cst_28 : f32 to vector<2x32xf32>
    %112 = arith.select %104, %102, %111 : vector<2x32xi1>, vector<2x32xf32>
    %113 = vector.extract_strided_slice %5 {offsets = [4, 0], sizes = [2, 128], strides = [1, 1]} : vector<16x256xf32> to vector<2x128xf32>
    %cst_29 = arith.constant dense<0.000000e+00> : vector<2x128xf32>
    %114 = tpu.matmul %105, %10, %cst_29 {dimension_numbers = #tpu.dot_dimension_numbers<[1], [0], [0], [1], [0, 0, 1, 1], [], []>} : vector<2x32xf32>, vector<32x128xf32>, vector<2x128xf32> -> vector<2x128xf32>
    %115 = arith.addf %113, %114 : vector<2x128xf32>
    %116 = vector.extract_strided_slice %5 {offsets = [10, 128], sizes = [2, 128], strides = [1, 1]} : vector<16x256xf32> to vector<2x128xf32>
    %cst_30 = arith.constant dense<0.000000e+00> : vector<2x128xf32>
    %117 = tpu.matmul %107, %12, %cst_30 {dimension_numbers = #tpu.dot_dimension_numbers<[1], [0], [0], [1], [0, 0, 1, 1], [], []>} : vector<2x32xf32>, vector<32x128xf32>, vector<2x128xf32> -> vector<2x128xf32>
    %118 = arith.addf %116, %117 : vector<2x128xf32>
    %119 = vector.extract_strided_slice %115 {offsets = [0, 0], sizes = [2, 96], strides = [1, 1]} : vector<2x128xf32> to vector<2x96xf32>
    %120 = arith.negf %119 : vector<2x96xf32>
    %121 = math.exp %120 : vector<2x96xf32>
    %cst_31 = arith.constant 1.000000e+00 : f32
    %122 = vector.broadcast %cst_31 : f32 to vector<2x96xf32>
    %123 = arith.addf %122, %121 : vector<2x96xf32>
    %124 = arith.divf %122, %123 : vector<2x96xf32>
    %125 = vector.extract_strided_slice %115 {offsets = [0, 96], sizes = [2, 32], strides = [1, 1]} : vector<2x128xf32> to vector<2x32xf32>
    %126 = math.tanh %125 : vector<2x32xf32>
    %127 = vector.extract_strided_slice %124 {offsets = [0, 0], sizes = [2, 32], strides = [1, 1]} : vector<2x96xf32> to vector<2x32xf32>
    %128 = vector.extract_strided_slice %124 {offsets = [0, 32], sizes = [2, 32], strides = [1, 1]} : vector<2x96xf32> to vector<2x32xf32>
    %129 = vector.extract_strided_slice %124 {offsets = [0, 64], sizes = [2, 32], strides = [1, 1]} : vector<2x96xf32> to vector<2x32xf32>
    %130 = arith.mulf %128, %106 : vector<2x32xf32>
    %131 = arith.mulf %127, %126 : vector<2x32xf32>
    %132 = arith.addf %130, %131 : vector<2x32xf32>
    %133 = math.tanh %132 : vector<2x32xf32>
    %134 = arith.mulf %129, %133 : vector<2x32xf32>
    %135 = vector.extract_strided_slice %118 {offsets = [0, 0], sizes = [2, 96], strides = [1, 1]} : vector<2x128xf32> to vector<2x96xf32>
    %136 = arith.negf %135 : vector<2x96xf32>
    %137 = math.exp %136 : vector<2x96xf32>
    %cst_32 = arith.constant 1.000000e+00 : f32
    %138 = vector.broadcast %cst_32 : f32 to vector<2x96xf32>
    %139 = arith.addf %138, %137 : vector<2x96xf32>
    %140 = arith.divf %138, %139 : vector<2x96xf32>
    %141 = vector.extract_strided_slice %118 {offsets = [0, 96], sizes = [2, 32], strides = [1, 1]} : vector<2x128xf32> to vector<2x32xf32>
    %142 = math.tanh %141 : vector<2x32xf32>
    %143 = vector.extract_strided_slice %140 {offsets = [0, 0], sizes = [2, 32], strides = [1, 1]} : vector<2x96xf32> to vector<2x32xf32>
    %144 = vector.extract_strided_slice %140 {offsets = [0, 32], sizes = [2, 32], strides = [1, 1]} : vector<2x96xf32> to vector<2x32xf32>
    %145 = vector.extract_strided_slice %140 {offsets = [0, 64], sizes = [2, 32], strides = [1, 1]} : vector<2x96xf32> to vector<2x32xf32>
    %146 = arith.mulf %144, %108 : vector<2x32xf32>
    %147 = arith.mulf %143, %142 : vector<2x32xf32>
    %148 = arith.addf %146, %147 : vector<2x32xf32>
    %149 = math.tanh %148 : vector<2x32xf32>
    %150 = arith.mulf %145, %149 : vector<2x32xf32>
    %151 = vector.extract_strided_slice %8 {offsets = [4, 0], sizes = [2, 32], strides = [1, 1]} : vector<16x32xi1> to vector<2x32xi1>
    %152 = vector.extract_strided_slice %8 {offsets = [10, 0], sizes = [2, 32], strides = [1, 1]} : vector<16x32xi1> to vector<2x32xi1>
    %153 = arith.select %151, %134, %105 : vector<2x32xi1>, vector<2x32xf32>
    %154 = arith.select %151, %132, %106 : vector<2x32xi1>, vector<2x32xf32>
    %155 = arith.select %152, %150, %107 : vector<2x32xi1>, vector<2x32xf32>
    %156 = arith.select %152, %148, %108 : vector<2x32xi1>, vector<2x32xf32>
    %cst_33 = arith.constant 0.000000e+00 : f32
    %157 = vector.broadcast %cst_33 : f32 to vector<2x32xf32>
    %158 = arith.select %151, %134, %157 : vector<2x32xi1>, vector<2x32xf32>
    %cst_34 = arith.constant 0.000000e+00 : f32
    %159 = vector.broadcast %cst_34 : f32 to vector<2x32xf32>
    %160 = arith.select %152, %150, %159 : vector<2x32xi1>, vector<2x32xf32>
    %161 = vector.extract_strided_slice %5 {offsets = [6, 0], sizes = [2, 128], strides = [1, 1]} : vector<16x256xf32> to vector<2x128xf32>
    %cst_35 = arith.constant dense<0.000000e+00> : vector<2x128xf32>
    %162 = tpu.matmul %153, %10, %cst_35 {dimension_numbers = #tpu.dot_dimension_numbers<[1], [0], [0], [1], [0, 0, 1, 1], [], []>} : vector<2x32xf32>, vector<32x128xf32>, vector<2x128xf32> -> vector<2x128xf32>
    %163 = arith.addf %161, %162 : vector<2x128xf32>
    %164 = vector.extract_strided_slice %5 {offsets = [8, 128], sizes = [2, 128], strides = [1, 1]} : vector<16x256xf32> to vector<2x128xf32>
    %cst_36 = arith.constant dense<0.000000e+00> : vector<2x128xf32>
    %165 = tpu.matmul %155, %12, %cst_36 {dimension_numbers = #tpu.dot_dimension_numbers<[1], [0], [0], [1], [0, 0, 1, 1], [], []>} : vector<2x32xf32>, vector<32x128xf32>, vector<2x128xf32> -> vector<2x128xf32>
    %166 = arith.addf %164, %165 : vector<2x128xf32>
    %167 = vector.extract_strided_slice %163 {offsets = [0, 0], sizes = [2, 96], strides = [1, 1]} : vector<2x128xf32> to vector<2x96xf32>
    %168 = arith.negf %167 : vector<2x96xf32>
    %169 = math.exp %168 : vector<2x96xf32>
    %cst_37 = arith.constant 1.000000e+00 : f32
    %170 = vector.broadcast %cst_37 : f32 to vector<2x96xf32>
    %171 = arith.addf %170, %169 : vector<2x96xf32>
    %172 = arith.divf %170, %171 : vector<2x96xf32>
    %173 = vector.extract_strided_slice %163 {offsets = [0, 96], sizes = [2, 32], strides = [1, 1]} : vector<2x128xf32> to vector<2x32xf32>
    %174 = math.tanh %173 : vector<2x32xf32>
    %175 = vector.extract_strided_slice %172 {offsets = [0, 0], sizes = [2, 32], strides = [1, 1]} : vector<2x96xf32> to vector<2x32xf32>
    %176 = vector.extract_strided_slice %172 {offsets = [0, 32], sizes = [2, 32], strides = [1, 1]} : vector<2x96xf32> to vector<2x32xf32>
    %177 = vector.extract_strided_slice %172 {offsets = [0, 64], sizes = [2, 32], strides = [1, 1]} : vector<2x96xf32> to vector<2x32xf32>
    %178 = arith.mulf %176, %154 : vector<2x32xf32>
    %179 = arith.mulf %175, %174 : vector<2x32xf32>
    %180 = arith.addf %178, %179 : vector<2x32xf32>
    %181 = math.tanh %180 : vector<2x32xf32>
    %182 = arith.mulf %177, %181 : vector<2x32xf32>
    %183 = vector.extract_strided_slice %166 {offsets = [0, 0], sizes = [2, 96], strides = [1, 1]} : vector<2x128xf32> to vector<2x96xf32>
    %184 = arith.negf %183 : vector<2x96xf32>
    %185 = math.exp %184 : vector<2x96xf32>
    %cst_38 = arith.constant 1.000000e+00 : f32
    %186 = vector.broadcast %cst_38 : f32 to vector<2x96xf32>
    %187 = arith.addf %186, %185 : vector<2x96xf32>
    %188 = arith.divf %186, %187 : vector<2x96xf32>
    %189 = vector.extract_strided_slice %166 {offsets = [0, 96], sizes = [2, 32], strides = [1, 1]} : vector<2x128xf32> to vector<2x32xf32>
    %190 = math.tanh %189 : vector<2x32xf32>
    %191 = vector.extract_strided_slice %188 {offsets = [0, 0], sizes = [2, 32], strides = [1, 1]} : vector<2x96xf32> to vector<2x32xf32>
    %192 = vector.extract_strided_slice %188 {offsets = [0, 32], sizes = [2, 32], strides = [1, 1]} : vector<2x96xf32> to vector<2x32xf32>
    %193 = vector.extract_strided_slice %188 {offsets = [0, 64], sizes = [2, 32], strides = [1, 1]} : vector<2x96xf32> to vector<2x32xf32>
    %194 = arith.mulf %192, %156 : vector<2x32xf32>
    %195 = arith.mulf %191, %190 : vector<2x32xf32>
    %196 = arith.addf %194, %195 : vector<2x32xf32>
    %197 = math.tanh %196 : vector<2x32xf32>
    %198 = arith.mulf %193, %197 : vector<2x32xf32>
    %199 = vector.extract_strided_slice %8 {offsets = [6, 0], sizes = [2, 32], strides = [1, 1]} : vector<16x32xi1> to vector<2x32xi1>
    %200 = vector.extract_strided_slice %8 {offsets = [8, 0], sizes = [2, 32], strides = [1, 1]} : vector<16x32xi1> to vector<2x32xi1>
    %201 = arith.select %199, %182, %153 : vector<2x32xi1>, vector<2x32xf32>
    %202 = arith.select %199, %180, %154 : vector<2x32xi1>, vector<2x32xf32>
    %203 = arith.select %200, %198, %155 : vector<2x32xi1>, vector<2x32xf32>
    %204 = arith.select %200, %196, %156 : vector<2x32xi1>, vector<2x32xf32>
    %cst_39 = arith.constant 0.000000e+00 : f32
    %205 = vector.broadcast %cst_39 : f32 to vector<2x32xf32>
    %206 = arith.select %199, %182, %205 : vector<2x32xi1>, vector<2x32xf32>
    %cst_40 = arith.constant 0.000000e+00 : f32
    %207 = vector.broadcast %cst_40 : f32 to vector<2x32xf32>
    %208 = arith.select %200, %198, %207 : vector<2x32xi1>, vector<2x32xf32>
    %209 = vector.extract_strided_slice %5 {offsets = [8, 0], sizes = [2, 128], strides = [1, 1]} : vector<16x256xf32> to vector<2x128xf32>
    %cst_41 = arith.constant dense<0.000000e+00> : vector<2x128xf32>
    %210 = tpu.matmul %201, %10, %cst_41 {dimension_numbers = #tpu.dot_dimension_numbers<[1], [0], [0], [1], [0, 0, 1, 1], [], []>} : vector<2x32xf32>, vector<32x128xf32>, vector<2x128xf32> -> vector<2x128xf32>
    %211 = arith.addf %209, %210 : vector<2x128xf32>
    %212 = vector.extract_strided_slice %5 {offsets = [6, 128], sizes = [2, 128], strides = [1, 1]} : vector<16x256xf32> to vector<2x128xf32>
    %cst_42 = arith.constant dense<0.000000e+00> : vector<2x128xf32>
    %213 = tpu.matmul %203, %12, %cst_42 {dimension_numbers = #tpu.dot_dimension_numbers<[1], [0], [0], [1], [0, 0, 1, 1], [], []>} : vector<2x32xf32>, vector<32x128xf32>, vector<2x128xf32> -> vector<2x128xf32>
    %214 = arith.addf %212, %213 : vector<2x128xf32>
    %215 = vector.extract_strided_slice %211 {offsets = [0, 0], sizes = [2, 96], strides = [1, 1]} : vector<2x128xf32> to vector<2x96xf32>
    %216 = arith.negf %215 : vector<2x96xf32>
    %217 = math.exp %216 : vector<2x96xf32>
    %cst_43 = arith.constant 1.000000e+00 : f32
    %218 = vector.broadcast %cst_43 : f32 to vector<2x96xf32>
    %219 = arith.addf %218, %217 : vector<2x96xf32>
    %220 = arith.divf %218, %219 : vector<2x96xf32>
    %221 = vector.extract_strided_slice %211 {offsets = [0, 96], sizes = [2, 32], strides = [1, 1]} : vector<2x128xf32> to vector<2x32xf32>
    %222 = math.tanh %221 : vector<2x32xf32>
    %223 = vector.extract_strided_slice %220 {offsets = [0, 0], sizes = [2, 32], strides = [1, 1]} : vector<2x96xf32> to vector<2x32xf32>
    %224 = vector.extract_strided_slice %220 {offsets = [0, 32], sizes = [2, 32], strides = [1, 1]} : vector<2x96xf32> to vector<2x32xf32>
    %225 = vector.extract_strided_slice %220 {offsets = [0, 64], sizes = [2, 32], strides = [1, 1]} : vector<2x96xf32> to vector<2x32xf32>
    %226 = arith.mulf %224, %202 : vector<2x32xf32>
    %227 = arith.mulf %223, %222 : vector<2x32xf32>
    %228 = arith.addf %226, %227 : vector<2x32xf32>
    %229 = math.tanh %228 : vector<2x32xf32>
    %230 = arith.mulf %225, %229 : vector<2x32xf32>
    %231 = vector.extract_strided_slice %214 {offsets = [0, 0], sizes = [2, 96], strides = [1, 1]} : vector<2x128xf32> to vector<2x96xf32>
    %232 = arith.negf %231 : vector<2x96xf32>
    %233 = math.exp %232 : vector<2x96xf32>
    %cst_44 = arith.constant 1.000000e+00 : f32
    %234 = vector.broadcast %cst_44 : f32 to vector<2x96xf32>
    %235 = arith.addf %234, %233 : vector<2x96xf32>
    %236 = arith.divf %234, %235 : vector<2x96xf32>
    %237 = vector.extract_strided_slice %214 {offsets = [0, 96], sizes = [2, 32], strides = [1, 1]} : vector<2x128xf32> to vector<2x32xf32>
    %238 = math.tanh %237 : vector<2x32xf32>
    %239 = vector.extract_strided_slice %236 {offsets = [0, 0], sizes = [2, 32], strides = [1, 1]} : vector<2x96xf32> to vector<2x32xf32>
    %240 = vector.extract_strided_slice %236 {offsets = [0, 32], sizes = [2, 32], strides = [1, 1]} : vector<2x96xf32> to vector<2x32xf32>
    %241 = vector.extract_strided_slice %236 {offsets = [0, 64], sizes = [2, 32], strides = [1, 1]} : vector<2x96xf32> to vector<2x32xf32>
    %242 = arith.mulf %240, %204 : vector<2x32xf32>
    %243 = arith.mulf %239, %238 : vector<2x32xf32>
    %244 = arith.addf %242, %243 : vector<2x32xf32>
    %245 = math.tanh %244 : vector<2x32xf32>
    %246 = arith.mulf %241, %245 : vector<2x32xf32>
    %247 = vector.extract_strided_slice %8 {offsets = [8, 0], sizes = [2, 32], strides = [1, 1]} : vector<16x32xi1> to vector<2x32xi1>
    %248 = vector.extract_strided_slice %8 {offsets = [6, 0], sizes = [2, 32], strides = [1, 1]} : vector<16x32xi1> to vector<2x32xi1>
    %249 = arith.select %247, %230, %201 : vector<2x32xi1>, vector<2x32xf32>
    %250 = arith.select %247, %228, %202 : vector<2x32xi1>, vector<2x32xf32>
    %251 = arith.select %248, %246, %203 : vector<2x32xi1>, vector<2x32xf32>
    %252 = arith.select %248, %244, %204 : vector<2x32xi1>, vector<2x32xf32>
    %cst_45 = arith.constant 0.000000e+00 : f32
    %253 = vector.broadcast %cst_45 : f32 to vector<2x32xf32>
    %254 = arith.select %247, %230, %253 : vector<2x32xi1>, vector<2x32xf32>
    %cst_46 = arith.constant 0.000000e+00 : f32
    %255 = vector.broadcast %cst_46 : f32 to vector<2x32xf32>
    %256 = arith.select %248, %246, %255 : vector<2x32xi1>, vector<2x32xf32>
    %257 = vector.extract_strided_slice %5 {offsets = [10, 0], sizes = [2, 128], strides = [1, 1]} : vector<16x256xf32> to vector<2x128xf32>
    %cst_47 = arith.constant dense<0.000000e+00> : vector<2x128xf32>
    %258 = tpu.matmul %249, %10, %cst_47 {dimension_numbers = #tpu.dot_dimension_numbers<[1], [0], [0], [1], [0, 0, 1, 1], [], []>} : vector<2x32xf32>, vector<32x128xf32>, vector<2x128xf32> -> vector<2x128xf32>
    %259 = arith.addf %257, %258 : vector<2x128xf32>
    %260 = vector.extract_strided_slice %5 {offsets = [4, 128], sizes = [2, 128], strides = [1, 1]} : vector<16x256xf32> to vector<2x128xf32>
    %cst_48 = arith.constant dense<0.000000e+00> : vector<2x128xf32>
    %261 = tpu.matmul %251, %12, %cst_48 {dimension_numbers = #tpu.dot_dimension_numbers<[1], [0], [0], [1], [0, 0, 1, 1], [], []>} : vector<2x32xf32>, vector<32x128xf32>, vector<2x128xf32> -> vector<2x128xf32>
    %262 = arith.addf %260, %261 : vector<2x128xf32>
    %263 = vector.extract_strided_slice %259 {offsets = [0, 0], sizes = [2, 96], strides = [1, 1]} : vector<2x128xf32> to vector<2x96xf32>
    %264 = arith.negf %263 : vector<2x96xf32>
    %265 = math.exp %264 : vector<2x96xf32>
    %cst_49 = arith.constant 1.000000e+00 : f32
    %266 = vector.broadcast %cst_49 : f32 to vector<2x96xf32>
    %267 = arith.addf %266, %265 : vector<2x96xf32>
    %268 = arith.divf %266, %267 : vector<2x96xf32>
    %269 = vector.extract_strided_slice %259 {offsets = [0, 96], sizes = [2, 32], strides = [1, 1]} : vector<2x128xf32> to vector<2x32xf32>
    %270 = math.tanh %269 : vector<2x32xf32>
    %271 = vector.extract_strided_slice %268 {offsets = [0, 0], sizes = [2, 32], strides = [1, 1]} : vector<2x96xf32> to vector<2x32xf32>
    %272 = vector.extract_strided_slice %268 {offsets = [0, 32], sizes = [2, 32], strides = [1, 1]} : vector<2x96xf32> to vector<2x32xf32>
    %273 = vector.extract_strided_slice %268 {offsets = [0, 64], sizes = [2, 32], strides = [1, 1]} : vector<2x96xf32> to vector<2x32xf32>
    %274 = arith.mulf %272, %250 : vector<2x32xf32>
    %275 = arith.mulf %271, %270 : vector<2x32xf32>
    %276 = arith.addf %274, %275 : vector<2x32xf32>
    %277 = math.tanh %276 : vector<2x32xf32>
    %278 = arith.mulf %273, %277 : vector<2x32xf32>
    %279 = vector.extract_strided_slice %262 {offsets = [0, 0], sizes = [2, 96], strides = [1, 1]} : vector<2x128xf32> to vector<2x96xf32>
    %280 = arith.negf %279 : vector<2x96xf32>
    %281 = math.exp %280 : vector<2x96xf32>
    %cst_50 = arith.constant 1.000000e+00 : f32
    %282 = vector.broadcast %cst_50 : f32 to vector<2x96xf32>
    %283 = arith.addf %282, %281 : vector<2x96xf32>
    %284 = arith.divf %282, %283 : vector<2x96xf32>
    %285 = vector.extract_strided_slice %262 {offsets = [0, 96], sizes = [2, 32], strides = [1, 1]} : vector<2x128xf32> to vector<2x32xf32>
    %286 = math.tanh %285 : vector<2x32xf32>
    %287 = vector.extract_strided_slice %284 {offsets = [0, 0], sizes = [2, 32], strides = [1, 1]} : vector<2x96xf32> to vector<2x32xf32>
    %288 = vector.extract_strided_slice %284 {offsets = [0, 32], sizes = [2, 32], strides = [1, 1]} : vector<2x96xf32> to vector<2x32xf32>
    %289 = vector.extract_strided_slice %284 {offsets = [0, 64], sizes = [2, 32], strides = [1, 1]} : vector<2x96xf32> to vector<2x32xf32>
    %290 = arith.mulf %288, %252 : vector<2x32xf32>
    %291 = arith.mulf %287, %286 : vector<2x32xf32>
    %292 = arith.addf %290, %291 : vector<2x32xf32>
    %293 = math.tanh %292 : vector<2x32xf32>
    %294 = arith.mulf %289, %293 : vector<2x32xf32>
    %295 = vector.extract_strided_slice %8 {offsets = [10, 0], sizes = [2, 32], strides = [1, 1]} : vector<16x32xi1> to vector<2x32xi1>
    %296 = vector.extract_strided_slice %8 {offsets = [4, 0], sizes = [2, 32], strides = [1, 1]} : vector<16x32xi1> to vector<2x32xi1>
    %297 = arith.select %295, %278, %249 : vector<2x32xi1>, vector<2x32xf32>
    %298 = arith.select %295, %276, %250 : vector<2x32xi1>, vector<2x32xf32>
    %299 = arith.select %296, %294, %251 : vector<2x32xi1>, vector<2x32xf32>
    %300 = arith.select %296, %292, %252 : vector<2x32xi1>, vector<2x32xf32>
    %cst_51 = arith.constant 0.000000e+00 : f32
    %301 = vector.broadcast %cst_51 : f32 to vector<2x32xf32>
    %302 = arith.select %295, %278, %301 : vector<2x32xi1>, vector<2x32xf32>
    %cst_52 = arith.constant 0.000000e+00 : f32
    %303 = vector.broadcast %cst_52 : f32 to vector<2x32xf32>
    %304 = arith.select %296, %294, %303 : vector<2x32xi1>, vector<2x32xf32>
    %305 = vector.extract_strided_slice %5 {offsets = [12, 0], sizes = [2, 128], strides = [1, 1]} : vector<16x256xf32> to vector<2x128xf32>
    %cst_53 = arith.constant dense<0.000000e+00> : vector<2x128xf32>
    %306 = tpu.matmul %297, %10, %cst_53 {dimension_numbers = #tpu.dot_dimension_numbers<[1], [0], [0], [1], [0, 0, 1, 1], [], []>} : vector<2x32xf32>, vector<32x128xf32>, vector<2x128xf32> -> vector<2x128xf32>
    %307 = arith.addf %305, %306 : vector<2x128xf32>
    %308 = vector.extract_strided_slice %5 {offsets = [2, 128], sizes = [2, 128], strides = [1, 1]} : vector<16x256xf32> to vector<2x128xf32>
    %cst_54 = arith.constant dense<0.000000e+00> : vector<2x128xf32>
    %309 = tpu.matmul %299, %12, %cst_54 {dimension_numbers = #tpu.dot_dimension_numbers<[1], [0], [0], [1], [0, 0, 1, 1], [], []>} : vector<2x32xf32>, vector<32x128xf32>, vector<2x128xf32> -> vector<2x128xf32>
    %310 = arith.addf %308, %309 : vector<2x128xf32>
    %311 = vector.extract_strided_slice %307 {offsets = [0, 0], sizes = [2, 96], strides = [1, 1]} : vector<2x128xf32> to vector<2x96xf32>
    %312 = arith.negf %311 : vector<2x96xf32>
    %313 = math.exp %312 : vector<2x96xf32>
    %cst_55 = arith.constant 1.000000e+00 : f32
    %314 = vector.broadcast %cst_55 : f32 to vector<2x96xf32>
    %315 = arith.addf %314, %313 : vector<2x96xf32>
    %316 = arith.divf %314, %315 : vector<2x96xf32>
    %317 = vector.extract_strided_slice %307 {offsets = [0, 96], sizes = [2, 32], strides = [1, 1]} : vector<2x128xf32> to vector<2x32xf32>
    %318 = math.tanh %317 : vector<2x32xf32>
    %319 = vector.extract_strided_slice %316 {offsets = [0, 0], sizes = [2, 32], strides = [1, 1]} : vector<2x96xf32> to vector<2x32xf32>
    %320 = vector.extract_strided_slice %316 {offsets = [0, 32], sizes = [2, 32], strides = [1, 1]} : vector<2x96xf32> to vector<2x32xf32>
    %321 = vector.extract_strided_slice %316 {offsets = [0, 64], sizes = [2, 32], strides = [1, 1]} : vector<2x96xf32> to vector<2x32xf32>
    %322 = arith.mulf %320, %298 : vector<2x32xf32>
    %323 = arith.mulf %319, %318 : vector<2x32xf32>
    %324 = arith.addf %322, %323 : vector<2x32xf32>
    %325 = math.tanh %324 : vector<2x32xf32>
    %326 = arith.mulf %321, %325 : vector<2x32xf32>
    %327 = vector.extract_strided_slice %310 {offsets = [0, 0], sizes = [2, 96], strides = [1, 1]} : vector<2x128xf32> to vector<2x96xf32>
    %328 = arith.negf %327 : vector<2x96xf32>
    %329 = math.exp %328 : vector<2x96xf32>
    %cst_56 = arith.constant 1.000000e+00 : f32
    %330 = vector.broadcast %cst_56 : f32 to vector<2x96xf32>
    %331 = arith.addf %330, %329 : vector<2x96xf32>
    %332 = arith.divf %330, %331 : vector<2x96xf32>
    %333 = vector.extract_strided_slice %310 {offsets = [0, 96], sizes = [2, 32], strides = [1, 1]} : vector<2x128xf32> to vector<2x32xf32>
    %334 = math.tanh %333 : vector<2x32xf32>
    %335 = vector.extract_strided_slice %332 {offsets = [0, 0], sizes = [2, 32], strides = [1, 1]} : vector<2x96xf32> to vector<2x32xf32>
    %336 = vector.extract_strided_slice %332 {offsets = [0, 32], sizes = [2, 32], strides = [1, 1]} : vector<2x96xf32> to vector<2x32xf32>
    %337 = vector.extract_strided_slice %332 {offsets = [0, 64], sizes = [2, 32], strides = [1, 1]} : vector<2x96xf32> to vector<2x32xf32>
    %338 = arith.mulf %336, %300 : vector<2x32xf32>
    %339 = arith.mulf %335, %334 : vector<2x32xf32>
    %340 = arith.addf %338, %339 : vector<2x32xf32>
    %341 = math.tanh %340 : vector<2x32xf32>
    %342 = arith.mulf %337, %341 : vector<2x32xf32>
    %343 = vector.extract_strided_slice %8 {offsets = [12, 0], sizes = [2, 32], strides = [1, 1]} : vector<16x32xi1> to vector<2x32xi1>
    %344 = vector.extract_strided_slice %8 {offsets = [2, 0], sizes = [2, 32], strides = [1, 1]} : vector<16x32xi1> to vector<2x32xi1>
    %345 = arith.select %343, %326, %297 : vector<2x32xi1>, vector<2x32xf32>
    %346 = arith.select %343, %324, %298 : vector<2x32xi1>, vector<2x32xf32>
    %347 = arith.select %344, %342, %299 : vector<2x32xi1>, vector<2x32xf32>
    %348 = arith.select %344, %340, %300 : vector<2x32xi1>, vector<2x32xf32>
    %cst_57 = arith.constant 0.000000e+00 : f32
    %349 = vector.broadcast %cst_57 : f32 to vector<2x32xf32>
    %350 = arith.select %343, %326, %349 : vector<2x32xi1>, vector<2x32xf32>
    %cst_58 = arith.constant 0.000000e+00 : f32
    %351 = vector.broadcast %cst_58 : f32 to vector<2x32xf32>
    %352 = arith.select %344, %342, %351 : vector<2x32xi1>, vector<2x32xf32>
    %353 = vector.extract_strided_slice %5 {offsets = [14, 0], sizes = [2, 128], strides = [1, 1]} : vector<16x256xf32> to vector<2x128xf32>
    %cst_59 = arith.constant dense<0.000000e+00> : vector<2x128xf32>
    %354 = tpu.matmul %345, %10, %cst_59 {dimension_numbers = #tpu.dot_dimension_numbers<[1], [0], [0], [1], [0, 0, 1, 1], [], []>} : vector<2x32xf32>, vector<32x128xf32>, vector<2x128xf32> -> vector<2x128xf32>
    %355 = arith.addf %353, %354 : vector<2x128xf32>
    %356 = vector.extract_strided_slice %5 {offsets = [0, 128], sizes = [2, 128], strides = [1, 1]} : vector<16x256xf32> to vector<2x128xf32>
    %cst_60 = arith.constant dense<0.000000e+00> : vector<2x128xf32>
    %357 = tpu.matmul %347, %12, %cst_60 {dimension_numbers = #tpu.dot_dimension_numbers<[1], [0], [0], [1], [0, 0, 1, 1], [], []>} : vector<2x32xf32>, vector<32x128xf32>, vector<2x128xf32> -> vector<2x128xf32>
    %358 = arith.addf %356, %357 : vector<2x128xf32>
    %359 = vector.extract_strided_slice %355 {offsets = [0, 0], sizes = [2, 96], strides = [1, 1]} : vector<2x128xf32> to vector<2x96xf32>
    %360 = arith.negf %359 : vector<2x96xf32>
    %361 = math.exp %360 : vector<2x96xf32>
    %cst_61 = arith.constant 1.000000e+00 : f32
    %362 = vector.broadcast %cst_61 : f32 to vector<2x96xf32>
    %363 = arith.addf %362, %361 : vector<2x96xf32>
    %364 = arith.divf %362, %363 : vector<2x96xf32>
    %365 = vector.extract_strided_slice %355 {offsets = [0, 96], sizes = [2, 32], strides = [1, 1]} : vector<2x128xf32> to vector<2x32xf32>
    %366 = math.tanh %365 : vector<2x32xf32>
    %367 = vector.extract_strided_slice %364 {offsets = [0, 0], sizes = [2, 32], strides = [1, 1]} : vector<2x96xf32> to vector<2x32xf32>
    %368 = vector.extract_strided_slice %364 {offsets = [0, 32], sizes = [2, 32], strides = [1, 1]} : vector<2x96xf32> to vector<2x32xf32>
    %369 = vector.extract_strided_slice %364 {offsets = [0, 64], sizes = [2, 32], strides = [1, 1]} : vector<2x96xf32> to vector<2x32xf32>
    %370 = arith.mulf %368, %346 : vector<2x32xf32>
    %371 = arith.mulf %367, %366 : vector<2x32xf32>
    %372 = arith.addf %370, %371 : vector<2x32xf32>
    %373 = math.tanh %372 : vector<2x32xf32>
    %374 = arith.mulf %369, %373 : vector<2x32xf32>
    %375 = vector.extract_strided_slice %358 {offsets = [0, 0], sizes = [2, 96], strides = [1, 1]} : vector<2x128xf32> to vector<2x96xf32>
    %376 = arith.negf %375 : vector<2x96xf32>
    %377 = math.exp %376 : vector<2x96xf32>
    %cst_62 = arith.constant 1.000000e+00 : f32
    %378 = vector.broadcast %cst_62 : f32 to vector<2x96xf32>
    %379 = arith.addf %378, %377 : vector<2x96xf32>
    %380 = arith.divf %378, %379 : vector<2x96xf32>
    %381 = vector.extract_strided_slice %358 {offsets = [0, 96], sizes = [2, 32], strides = [1, 1]} : vector<2x128xf32> to vector<2x32xf32>
    %382 = math.tanh %381 : vector<2x32xf32>
    %383 = vector.extract_strided_slice %380 {offsets = [0, 0], sizes = [2, 32], strides = [1, 1]} : vector<2x96xf32> to vector<2x32xf32>
    %384 = vector.extract_strided_slice %380 {offsets = [0, 32], sizes = [2, 32], strides = [1, 1]} : vector<2x96xf32> to vector<2x32xf32>
    %385 = vector.extract_strided_slice %380 {offsets = [0, 64], sizes = [2, 32], strides = [1, 1]} : vector<2x96xf32> to vector<2x32xf32>
    %386 = arith.mulf %384, %348 : vector<2x32xf32>
    %387 = arith.mulf %383, %382 : vector<2x32xf32>
    %388 = arith.addf %386, %387 : vector<2x32xf32>
    %389 = math.tanh %388 : vector<2x32xf32>
    %390 = arith.mulf %385, %389 : vector<2x32xf32>
    %391 = vector.extract_strided_slice %8 {offsets = [14, 0], sizes = [2, 32], strides = [1, 1]} : vector<16x32xi1> to vector<2x32xi1>
    %392 = vector.extract_strided_slice %8 {offsets = [0, 0], sizes = [2, 32], strides = [1, 1]} : vector<16x32xi1> to vector<2x32xi1>
    %393 = arith.select %391, %374, %345 : vector<2x32xi1>, vector<2x32xf32>
    %394 = arith.select %392, %390, %347 : vector<2x32xi1>, vector<2x32xf32>
    %cst_63 = arith.constant 0.000000e+00 : f32
    %395 = vector.broadcast %cst_63 : f32 to vector<2x32xf32>
    %396 = arith.select %391, %374, %395 : vector<2x32xi1>, vector<2x32xf32>
    %cst_64 = arith.constant 0.000000e+00 : f32
    %397 = vector.broadcast %cst_64 : f32 to vector<2x32xf32>
    %398 = arith.select %392, %390, %397 : vector<2x32xi1>, vector<2x32xf32>
    %399 = tpu.concatenate %62, %398 in 1 : vector<2x32xf32>, vector<2x32xf32> -> vector<2x64xf32>
    %400 = tpu.concatenate %110, %352 in 1 : vector<2x32xf32>, vector<2x32xf32> -> vector<2x64xf32>
    %401 = tpu.concatenate %158, %304 in 1 : vector<2x32xf32>, vector<2x32xf32> -> vector<2x64xf32>
    %402 = tpu.concatenate %206, %256 in 1 : vector<2x32xf32>, vector<2x32xf32> -> vector<2x64xf32>
    %403 = tpu.concatenate %254, %208 in 1 : vector<2x32xf32>, vector<2x32xf32> -> vector<2x64xf32>
    %404 = tpu.concatenate %302, %160 in 1 : vector<2x32xf32>, vector<2x32xf32> -> vector<2x64xf32>
    %405 = tpu.concatenate %350, %112 in 1 : vector<2x32xf32>, vector<2x32xf32> -> vector<2x64xf32>
    %406 = tpu.concatenate %396, %64 in 1 : vector<2x32xf32>, vector<2x32xf32> -> vector<2x64xf32>
    %407 = tpu.concatenate %399, %400, %401, %402, %403, %404, %405, %406 in 0 : vector<2x64xf32>, vector<2x64xf32>, vector<2x64xf32>, vector<2x64xf32>, vector<2x64xf32>, vector<2x64xf32>, vector<2x64xf32>, vector<2x64xf32> -> vector<16x64xf32>
    %c0_65 = arith.constant 0 : index
    %c0_66 = arith.constant 0 : index
    %408 = vector.load %arg5[%c0_65, %c0_66] : memref<16x64xf32, #tpu.memory_space<vmem>>, vector<16x64xf32>
    tpu.vector_store %arg5[%c0_65, %c0_66], %407 {strides = array<i32>} : memref<16x64xf32, #tpu.memory_space<vmem>>, vector<16x64xf32>,
    %409 = tpu.concatenate %393, %394 in 1 : vector<2x32xf32>, vector<2x32xf32> -> vector<2x64xf32>
    %c0_67 = arith.constant 0 : index
    %c0_68 = arith.constant 0 : index
    %410 = vector.load %arg6[%c0_67, %c0_68] : memref<2x64xf32, #tpu.memory_space<vmem>>, vector<2x64xf32>
    tpu.vector_store %arg6[%c0_67, %c0_68], %409 {strides = array<i32>} : memref<2x64xf32, #tpu.memory_space<vmem>>, vector<2x64xf32>,
    return
  }
}

</mosaic_0001>

<bundles_post_ra>
// kernel: rnn_forward.2
= control target key start
LH: loop header
LB: loop body
LE: loop exit
PB: predicated region body
PF: predicated region fallthrough
CT: control target
= control target key end

     0   :  { %vm39_vm0 = vcmask 261120   ;;  %s2322_s0 = inlined_call_operand.vmem [shape: f32[16,32], index: 0, kind: input, shape index: {}]   ;;  %s2323_s1 = inlined_call_operand.vmem [shape: f32[16,32], index: 1, kind: input, shape index: {}]   ;;  %s2324_s2 = inlined_call_operand.vmem [shape: f32[32,256], index: 2, kind: input, shape index: {}]   ;;  %s2325_s3 = inlined_call_operand.vmem [shape: f32[2,32,128], index: 3, kind: input, shape index: {}]   ;;  %s2326_s4 = inlined_call_operand.vmem [shape: f32[1,256], index: 4, kind: input, shape index: {}]   ;;  %s2327_s5 = inlined_call_operand.vmem [shape: f32[16,64], index: 5, kind: output, shape index: {0}]   ;;  %s2328_s6 = inlined_call_operand.hbm [shape: f32[2,64], index: 6, kind: output, shape index: {1}]  }
   0x1   :  { %v32_v0 = vld [vmem:[%s2324_s2 + $0x38] sm:$0xff]  ;;  %v30_v1 = vld [vmem:[%s2324_s2 + $0x28] sm:$0xff]  ;;  %v1727_v3 = vld [vmem:[%s2325_s3 + $0x30] sm:$0xff] }
   0x2   :  { %v1721_v2 = vld [vmem:[%s2325_s3 + $0x38] sm:$0xff]  ;;  %81 = vmatpush.msra.mxu1 %v32_v0  ;;  %v1735_v5 = vld [vmem:[%s2325_s3 + $0x28] sm:$0xff]  ;;  %v1746_v7 = vld [vmem:[%s2325_s3 + $0x10] sm:$0xff] }
   0x3   :  { %141 = vmatpush.msra.mxu3 %v1721_v2  ;;  %v28_v4 = vld [vmem:[%s2324_s2 + $0x18] sm:$0xff]  ;;  %v26_v8 = vld [vmem:[%s2324_s2 + $0x8] sm:$0xff]  ;;  %v1754_v9 = vld [vmem:[%s2325_s3 + $0x20] sm:$0xff] }
   0x4   :  { %82 = vmatpush.msra.mxu1 %v30_v1  ;;  %v1741_v6 = vld [vmem:[%s2325_s3 + $0x18] sm:$0xff]  ;;  %v31_v10 = vld [vmem:[%s2324_s2 + $0x30] sm:$0xff]  ;;  %v23_v11 = vld [vmem:[%s2322_s0] sm:$0xff] }
   0x5   :  { %142 = vmatpush.msra.mxu3 %v1727_v3  ;;  %120 = vmatpush.msra.mxu2 %v1741_v6  ;;  %v1768_v12 = vld [vmem:[%s2325_s3 + $0x8] sm:$0xff]  ;;  %v29_v13 = vld [vmem:[%s2324_s2 + $0x20] sm:$0xff] }
   0x6   :  { %83 = vmatpush.msra.mxu1 %v28_v4  ;;  %58 = vmatpush.msra.mxu0 %v31_v10 }
   0x7   :  { %143 = vmatpush.msra.mxu3 %v1735_v5  ;;  %121 = vmatpush.msra.mxu2 %v1746_v7 }
   0x8   :  { %12 = vsyncpa [#allocation3], 0  ;;  %84 = vmatpush.msra.mxu1 %v26_v8  ;;  %v1672_v14 = vmov 0.0   ;;  %v1778_v15 = vld [vmem:[%s2325_s3] sm:$0xff]  ;;  %v27_v16 = vld [vmem:[%s2324_s2 + $0x10] sm:$0xff]  ;;  %59 = vmatpush.msra.mxu0 %v29_v13  ;;  %s1674_s8 = smov 96  }
   0x9   :  { %144 = vmatpush.msra.mxu3 %v1754_v9  ;;  %1477 = vmatmul.msk.f32.vlgmr.msra.gmra.mxu1 %vm39_vm0, %v23_v11  ;;  %v25_v17 = vld [vmem:[%s2324_s2] sm:$0xff]  ;;  %v24_v18 = vld [vmem:[%s2322_s0 + $0x8] sm:$0xff]  ;;  %s1675_s9 = smov 64   ;;  %s1676_s17 = smov [#allocation2]  }
   0xa   :  { %145 = vmatmul.f32.vlgmr.msra.gmra.mxu3 %v1672_v14  ;;  %122 = vmatpush.msra.mxu2 %v1768_v12  ;;  %v1829_v19 = vld [vmem:[%s2326_s4] sm:$0x3]  ;;  %s1673_s4 = smov 32   ;;  %s1462_s18 = sshll.u32 %s1676_s17, 4  ;;  %s1463_s18 = int_to_ptr.vmem [resolvable:$true] %s1462_s18 }
   0xb   :  { %290 = vmatpush.msrb.mxu3 %v1721_v2  ;;  %458 = vmatpush.msrb.mxu1 %v1721_v2  ;;  %v36_v20 = vperm.slane %v1829_v19, 1  ;;  %v35_v25 = vperm.slane %v1829_v19, 0  ;;  %s1464_s21 = sshll.u32 %s2328_s6, 4  ;;  %s1465_s21 = int_to_ptr.hbm [resolvable:$true] %s1464_s21 }
   0xc   :  { %123 = vmatpush.msra.mxu2 %v1778_v15  ;;  %60 = vmatpush.msra.mxu0 %v27_v16 }
   0xd   :  { %124 = vmatmul.f32.vlgmr.msra.gmra.mxu2 %v1672_v14  ;;  %291 = vmatpush.msrb.mxu3 %v1727_v3 }
   0xe   :  { %61 = vmatpush.msra.mxu0 %v25_v17  ;;  %262 = vmatpush.msrb.mxu2 %v1741_v6 }
   0xf   :  { %1475 = vmatmul.msk.f32.vlgmr.msra.gmra.mxu0 %vm39_vm0, %v23_v11  ;;  %292 = vmatpush.msrb.mxu3 %v1735_v5 }
  0x10   :  { %263 = vmatpush.msrb.mxu2 %v1746_v7  ;;  %430 = vmatpush.msrb.mxu0 %v1741_v6 }
  0x11   :  { %1478 = vmatmul.msk.f32.gmra.mxu1 %vm39_vm0, %v24_v18  ;;  %293 = vmatpush.msrb.mxu3 %v1754_v9 }
  0x12   :  { %264 = vmatpush.msrb.mxu2 %v1768_v12  ;;  %431 = vmatpush.msrb.mxu0 %v1746_v7 }
  0x13   :  { %459 = vmatpush.msrb.mxu1 %v1727_v3  ;;  %626 = vmatpush.msra.mxu3 %v1721_v2 }
  0x14   :  { %265 = vmatpush.msrb.mxu2 %v1778_v15  ;;  %432 = vmatpush.msrb.mxu0 %v1768_v12 }
  0x15   :  { %460 = vmatpush.msrb.mxu1 %v1735_v5  ;;  %627 = vmatpush.msra.mxu3 %v1727_v3 }
  0x16   :  { %598 = vmatpush.msra.mxu2 %v1741_v6  ;;  %433 = vmatpush.msrb.mxu0 %v1778_v15 }
  0x17   :  { %1476 = vmatmul.msk.f32.gmra.mxu0 %vm39_vm0, %v24_v18  ;;  %461 = vmatpush.msrb.mxu1 %v1754_v9 }
  0x18   :  { %599 = vmatpush.msra.mxu2 %v1746_v7  ;;  %628 = vmatpush.msra.mxu3 %v1735_v5 }
  0x19   :  { %762 = vmatpush.msra.mxu0 %v1741_v6  ;;  %786 = vmatpush.msra.mxu1 %v1721_v2 }
  0x1a   :  { %600 = vmatpush.msra.mxu2 %v1768_v12  ;;  %629 = vmatpush.msra.mxu3 %v1754_v9 }
  0x1b   :  { %763 = vmatpush.msra.mxu0 %v1746_v7  ;;  %787 = vmatpush.msra.mxu1 %v1727_v3 }
  0x1c   :  { %601 = vmatpush.msra.mxu2 %v1778_v15 }
  0x1d   :  { %764 = vmatpush.msra.mxu0 %v1768_v12  ;;  %788 = vmatpush.msra.mxu1 %v1735_v5 }
  0x1f   :  { %765 = vmatpush.msra.mxu0 %v1778_v15  ;;  %789 = vmatpush.msra.mxu1 %v1754_v9 }
  0x86   :  { %v86_v21 = vpop.f32.mrf.mxu1 }
  0x87   :  { %v1832_v22 = vadd.f32 %v86_v21, %v36_v20 }
  0x8c   :  { %v63_v27 = vpop.f32.mrf.mxu0 }
  0x8d   :  { %v146_v23 = vpop.f32.mrf.mxu3  ;;  %v1840_v30 = vadd.f32 %v63_v27, %v35_v25 }
  0x8e   :  { %v150_v24 = vrot.slane %v146_v23, 2  ;;  %v89_v26 = vpop.f32.mrf.mxu1  ;;  %v1856_v23 = vld [vmem:[%s2323_s1 + $0x8] sm:$0xff] }
  0x8f   :  { %v1835_v28 = vadd.f32 %v89_v26, %v36_v20  ;;  %vm95_vm9 = vcmp.gt.f32.partialorder %v1856_v23, 0.0 }
  0x90   :  { %v125_v31 = vpop.f32.mrf.mxu2 }
  0x91   :  { %v152_v29 = vadd.f32 %v150_v24, %v1835_v28  ;;  %v128_v32 = vadd.f32 %v125_v31, %v1840_v30 }
  0x93   :  { %1518 = vtanh.f32 %v152_v29  ;;  %v1484_v35 = vmul.f32 -1.442695, %v152_v29  ;;  %v1483_v36 = vmul.f32 -1.442695, %v128_v32  ;;  %v1867_v29 = vld [vmem:[%s2323_s1] sm:$0xff] }
  0x94   :  { %1520 = vtanh.f32 %v128_v32  ;;  %vm94_vm10 = vcmp.gt.f32.partialorder %v1867_v29, 0.0 }
  0x95   :  { %1522 = vpow2.f32 %v1484_v35 }
  0x96   :  { %1524 = vpow2.f32 %v1483_v36 }
  0x99   :  { %v1519_v33 = vpop.eup %1518 }
  0x9a   :  { %212 = vrot.lane.b32.xlu0 %v1519_v33, %s1673_s4  ;;  %v1521_v34 = vpop.eup %1520 }
  0x9b   :  { %v1523_v37 = vpop.eup %1522 }
  0x9c   :  { %v193_v38 = vadd.f32 1.0, %v1523_v37  ;;  %v1525_v39 = vpop.eup %1524 }
  0x9d   :  { %v156_v40 = vadd.f32 1.0, %v1525_v39 }
  0x9e   :  { %1526 = vrcp.f32 %v193_v38  ;;  %v205_v49 = vand.u32 2147483648, %v193_v38  ;;  %vm199_vm2 = vweird.f32 %v193_v38  ;;  %v203_v50 = vand.u32 2147483647, %v193_v38 }
  0x9f   :  { %1528 = vrcp.f32 %v156_v40  ;;  %vm162_vm4 = vweird.f32 %v156_v40  ;;  %v168_v54 = vand.u32 2147483648, %v156_v40  ;;  %v166_v56 = vand.u32 2147483647, %v156_v40 }
  0xa0   :  { %v206_v53 = vor.u32 1.1754944e-38, %v205_v49  ;;  %vm204_vm6 = vcmp.eq.f32.partialorder %v203_v50, 8.507059e+37 }
  0xa1   :  { %v169_v60 = vor.u32 1.1754944e-38, %v168_v54  ;;  %vm167_vm8 = vcmp.eq.f32.partialorder %v166_v56, 8.507059e+37 }
  0xa2   :  { %175 = vrot.lane.b32.xlu0 %v1521_v34, %s1673_s4 }
  0xa4   :  { %v1527_v41 = vpop.eup %1526 }
  0xa5   :  { %v195_v42 = vmul.f32 %v1527_v41, %v193_v38  ;;  %v1529_v43 = vpop.eup %1528  ;;  %vm200_vm1 = vweird.f32 %v1527_v41 }
  0xa6   :  { %v158_v45 = vmul.f32 %v1529_v43, %v156_v40  ;;  %vm201_vm3 = vmor %vm199_vm2, %vm200_vm1  ;;  %vm163_vm5 = vweird.f32 %v1529_v43 }
  0xa7   :  { %v196_v44 = vsub.f32 1.0, %v195_v42  ;;  %vm164_vm7 = vmor %vm162_vm4, %vm163_vm5 }
  0xa8   :  { %v159_v47 = vsub.f32 1.0, %v158_v45 }
  0xa9   :  { %v197_v46 = vmul.f32 %v1527_v41, %v196_v44 }
  0xaa   :  { %v160_v51 = vmul.f32 %v1529_v43, %v159_v47 }
  0xab   :  { %v198_v48 = vadd.f32 %v1527_v41, %v197_v46 }
  0xac   :  { %v161_v55 = vadd.f32 %v1529_v43, %v160_v51 }
  0xad   :  { %v202_v52 = vsel %vm201_vm3, %v1527_v41, %v198_v48 }
  0xae   :  { %v207_v58 = vsel %vm204_vm6, %v206_v53, %v202_v52  ;;  %v165_v61 = vsel %vm164_vm7, %v1529_v43, %v161_v55 }
  0xaf   :  { %v170_v62 = vsel %vm167_vm8, %v169_v60, %v165_v61  ;;  %v210_v1 = vmul.f32 0.0, %v207_v58 }
  0xb0   :  { %v173_v10 = vmul.f32 0.0, %v170_v62 }
 0x10c   :  { %v213_v57 = vpop.permute.xlu0 %212 }
 0x10d   :  { %v215_v59 = vmul.f32 %v213_v57, %v207_v58 }
 0x10f   :  { %217 = vrot.lane.b32.xlu1 %v215_v59, %s1673_s4 }
 0x114   :  { %v176_v63 = vpop.permute.xlu0 %175 }
 0x115   :  { %v178_v0 = vmul.f32 %v176_v63, %v170_v62 }
 0x117   :  { %180 = vrot.lane.b32.xlu1 %v178_v0, %s1673_s4 }
 0x181   :  { %v218_v4 = vpop.permute.xlu1 %217 }
 0x182   :  { %v220_v8 = vadd.f32 %v218_v4, %v210_v1 }
 0x184   :  { %1530 = vtanh.f32 %v220_v8 }
 0x189   :  { %v181_v11 = vpop.permute.xlu1 %180 }
 0x18a   :  { %v1531_v13 = vpop.eup %1530  ;;  %v183_v14 = vadd.f32 %v181_v11, %v173_v10 }
 0x18b   :  { %223 = vrot.lane.b32.xlu2 %v1531_v13, %s1673_s4 }
 0x18c   :  { %1532 = vtanh.f32 %v183_v14 }
 0x192   :  { %v1533_v16 = vpop.eup %1532 }
 0x193   :  { %186 = vrot.lane.b32.xlu2 %v1533_v16, %s1673_s4 }
 0x19b   :  { %243 = vrot.lane.b32.xlu2 %v220_v8, %s1674_s8 }
 0x1e5   :  { %v224_v17 = vpop.permute.xlu2 %223 }
 0x1e6   :  { %v226_v18 = vmul.f32 %v224_v17, %v207_v58 }
 0x1e8   :  { %238 = vrot.lane.b32.xlu0 %v226_v18, %s1675_s9 }
 0x1ed   :  { %v187_v20 = vpop.permute.xlu2 %186 }
 0x1ee   :  { %v189_v21 = vmul.f32 %v187_v20, %v170_v62 }
 0x1f0   :  { %228 = vrot.lane.b32.xlu1 %v189_v21, %s1675_s9 }
 0x1f5   :  { %v244_v40 = vpop.permute.xlu2 %243 }
 0x1f6   :  { %v1890_v41 = vsel %vm95_vm9, %v244_v40, 0.0 }
 0x1f7   :  { %v365_v43 = vrot.slane %v1890_v41, 2 }
 0x1f8   :  { %233 = vrot.lane.b32.xlu1 %v183_v14, %s1674_s8 }
 0x25a   :  { %v239_v24 = vpop.permute.xlu0 %238 }
 0x25b   :  { %v1861_v26 = vsel %vm95_vm9, %v239_v24, 0.0 }
 0x25c   :  { %v275_v27 = vrot.slane %v1861_v26, 6 }
 0x25e   :  { %1486 = vmatmul.msk.f32.vlgmr.msrb.gmra.mxu3 %vm39_vm0, %v275_v27 }
 0x25f   :  { %952 = vmatpush.msrb.mxu3 %v1721_v2 }
 0x261   :  { %953 = vmatpush.msrb.mxu3 %v1727_v3 }
 0x262   :  { %v229_v31 = vpop.permute.xlu1 %228 }
 0x263   :  { %v1875_v32 = vsel %vm94_vm10, %v229_v31, 0.0  ;;  %954 = vmatpush.msrb.mxu3 %v1735_v5 }
 0x264   :  { %1485 = vmatmul.msk.f32.vlgmr.msrb.gmra.mxu2 %vm39_vm0, %v1875_v32 }
 0x265   :  { %924 = vmatpush.msrb.mxu2 %v1741_v6  ;;  %955 = vmatpush.msrb.mxu3 %v1754_v9 }
 0x267   :  { %925 = vmatpush.msrb.mxu2 %v1746_v7 }
 0x269   :  { %926 = vmatpush.msrb.mxu2 %v1768_v12 }
 0x26a   :  { %v234_v44 = vpop.permute.xlu1 %233 }
 0x26b   :  { %927 = vmatpush.msrb.mxu2 %v1778_v15  ;;  %v1899_v45 = vsel %vm94_vm10, %v234_v44, 0.0 }
 0x26c   :  { %v323_v46 = vrot.slane %v1899_v45, 6 }
 0x2e1   :  { %v295_v33 = vpop.f32.mrf.mxu3 }
 0x2e2   :  { %v299_v34 = vrot.slane %v295_v33, 4 }
 0x2e4   :  { %v301_v35 = vadd.f32 %v299_v34, %v1835_v28 }
 0x2e6   :  { %1534 = vtanh.f32 %v301_v35  ;;  %v1488_v50 = vmul.f32 -1.442695, %v301_v35 }
 0x2e7   :  { %v267_v36 = vpop.f32.mrf.mxu2 }
 0x2e8   :  { %v271_v37 = vrot.slane %v267_v36, 6 }
 0x2ea   :  { %v273_v38 = vadd.f32 %v271_v37, %v1840_v30 }
 0x2ec   :  { %v1535_v39 = vpop.eup %1534  ;;  %1536 = vtanh.f32 %v273_v38  ;;  %v1487_v47 = vmul.f32 -1.442695, %v273_v38 }
 0x2ed   :  { %371 = vrot.lane.b32.xlu0 %v1535_v39, %s1673_s4 }
 0x2ee   :  { %1538 = vpow2.f32 %v1487_v47 }
 0x2f2   :  { %v1537_v42 = vpop.eup %1536 }
 0x2f3   :  { %329 = vrot.lane.b32.xlu2 %v1537_v42, %s1673_s4 }
 0x2f4   :  { %v1539_v48 = vpop.eup %1538 }
 0x2f5   :  { %366 = vrot.lane.b32.xlu0 %v365_v43, %s1673_s4  ;;  %v305_v49 = vadd.f32 1.0, %v1539_v48  ;;  %v390_v48 = vrot.slane %v1875_v32, 6 }
 0x2f7   :  { %1540 = vrcp.f32 %v305_v49  ;;  %v317_v58 = vand.u32 2147483648, %v305_v49  ;;  %vm311_vm12 = vweird.f32 %v305_v49  ;;  %v315_v59 = vand.u32 2147483647, %v305_v49 }
 0x2f8   :  { %1542 = vpow2.f32 %v1488_v50 }
 0x2f9   :  { %v318_v62 = vor.u32 1.1754944e-38, %v317_v58  ;;  %vm316_vm14 = vcmp.eq.f32.partialorder %v315_v59, 8.507059e+37 }
 0x2fb   :  { %324 = vrot.lane.b32.xlu2 %v323_v46, %s1673_s4 }
 0x2fd   :  { %v1541_v51 = vpop.eup %1540 }
 0x2fe   :  { %v307_v52 = vmul.f32 %v1541_v51, %v305_v49  ;;  %v1543_v53 = vpop.eup %1542  ;;  %vm312_vm11 = vweird.f32 %v1541_v51 }
 0x2ff   :  { %v347_v55 = vadd.f32 1.0, %v1543_v53  ;;  %vm313_vm13 = vmor %vm311_vm12, %vm312_vm11 }
 0x300   :  { %v308_v54 = vsub.f32 1.0, %v307_v52  ;;  %v403_v52 = vrot.slane %v1861_v26, 2 }
 0x301   :  { %1544 = vrcp.f32 %v347_v55  ;;  %v359_v13 = vand.u32 2147483648, %v347_v55  ;;  %vm353_vm1 = vweird.f32 %v347_v55  ;;  %v357_v14 = vand.u32 2147483647, %v347_v55 }
 0x302   :  { %v309_v56 = vmul.f32 %v1541_v51, %v308_v54 }
 0x303   :  { %v360_v17 = vor.u32 1.1754944e-38, %v359_v13  ;;  %vm358_vm3 = vcmp.eq.f32.partialorder %v357_v14, 8.507059e+37 }
 0x304   :  { %v310_v57 = vadd.f32 %v1541_v51, %v309_v56  ;;  %v1941_v56 = vpop.f32.mrf.mxu0 }
 0x306   :  { %v314_v61 = vsel %vm313_vm13, %v1541_v51, %v310_v57 }
 0x307   :  { %v1545_v60 = vpop.eup %1544  ;;  %v319_v0 = vsel %vm316_vm14, %v318_v62, %v314_v61 }
 0x308   :  { %v349_v63 = vmul.f32 %v1545_v60, %v347_v55  ;;  %vm354_vm15 = vweird.f32 %v1545_v60 }
 0x309   :  { %vm355_vm2 = vmor %vm353_vm1, %vm354_vm15 }
 0x30a   :  { %v350_v8 = vsub.f32 1.0, %v349_v63 }
 0x30c   :  { %v351_v10 = vmul.f32 %v1545_v60, %v350_v8 }
 0x30e   :  { %v352_v11 = vadd.f32 %v1545_v60, %v351_v10 }
 0x310   :  { %v356_v16 = vsel %vm355_vm2, %v1545_v60, %v352_v11 }
 0x311   :  { %v361_v20 = vsel %vm358_vm3, %v360_v17, %v356_v16 }
 0x34d   :  { %v330_v1 = vpop.permute.xlu2 %329 }
 0x34e   :  { %v332_v4 = vmul.f32 %v330_v1, %v319_v0 }
 0x350   :  { %334 = vrot.lane.b32.xlu0 %v332_v4, %s1673_s4 }
 0x355   :  { %v325_v27 = vpop.permute.xlu2 %324 }
 0x356   :  { %v327_v31 = vmul.f32 %v325_v27, %v319_v0 }
 0x35f   :  { %v372_v18 = vpop.permute.xlu0 %371 }
 0x360   :  { %v374_v21 = vmul.f32 %v372_v18, %v361_v20 }
 0x362   :  { %376 = vrot.lane.b32.xlu1 %v374_v21, %s1673_s4 }
 0x367   :  { %v367_v24 = vpop.permute.xlu0 %366 }
 0x368   :  { %v369_v36 = vmul.f32 %v367_v24, %v361_v20 }
 0x3c2   :  { %v335_v33 = vpop.permute.xlu0 %334 }
 0x3c3   :  { %v337_v34 = vadd.f32 %v335_v33, %v327_v31 }
 0x3c5   :  { %1546 = vtanh.f32 %v337_v34 }
 0x3cb   :  { %v1547_v35 = vpop.eup %1546 }
 0x3cc   :  { %340 = vrot.lane.b32.xlu2 %v1547_v35, %s1673_s4 }
 0x3d4   :  { %v377_v37 = vpop.permute.xlu1 %376 }
 0x3d5   :  { %v379_v38 = vadd.f32 %v377_v37, %v369_v36 }
 0x3d7   :  { %1548 = vtanh.f32 %v379_v38  ;;  %407 = vrot.lane.b32.xlu2 %v379_v38, %s1674_s8 }
 0x3dd   :  { %v1549_v39 = vpop.eup %1548 }
 0x3de   :  { %382 = vrot.lane.b32.xlu1 %v1549_v39, %s1673_s4 }
 0x426   :  { %v341_v40 = vpop.permute.xlu2 %340 }
 0x427   :  { %v343_v42 = vmul.f32 %v341_v40, %v319_v0 }
 0x429   :  { %387 = vrot.lane.b32.xlu1 %v343_v42, %s1675_s9 }
 0x431   :  { %394 = vrot.lane.b32.xlu1 %v337_v34, %s1674_s8  ;;  %v408_v10 = vpop.permute.xlu2 %407 }
 0x432   :  { %v1961_v45 = vsel %vm95_vm9, %v408_v10, %v365_v43 }
 0x433   :  { %v533_v11 = vrot.slane %v1961_v45, 2 }
 0x450   :  { %v383_v44 = vpop.permute.xlu1 %382 }
 0x451   :  { %v385_v47 = vmul.f32 %v383_v44, %v361_v20 }
 0x453   :  { %400 = vrot.lane.b32.xlu0 %v385_v47, %s1675_s9 }
 0x49b   :  { %v1914_v49 = vpop.permute.xlu1 %387 }
 0x49c   :  { %v1919_v50 = vsel %vm94_vm10, %v1914_v49, %v390_v48 }
 0x49d   :  { %v415_v51 = vrot.slane %v1919_v50, 2 }
 0x49f   :  { %1489 = vmatmul.msk.f32.vlgmr.msrb.gmra.mxu0 %vm39_vm0, %v415_v51 }
 0x4a0   :  { %1092 = vmatpush.msrb.mxu0 %v1741_v6 }
 0x4a2   :  { %1093 = vmatpush.msrb.mxu0 %v1746_v7 }
 0x4a3   :  { %v395_v61 = vpop.permute.xlu1 %394 }
 0x4a4   :  { %1094 = vmatpush.msrb.mxu0 %v1768_v12  ;;  %v1949_v62 = vsel %vm94_vm10, %v395_v61, %v323_v46 }
 0x4a5   :  { %v491_v63 = vrot.slane %v1949_v62, 6 }
 0x4a6   :  { %1095 = vmatpush.msrb.mxu0 %v1778_v15 }
 0x4c5   :  { %v1928_v53 = vpop.permute.xlu0 %400 }
 0x4c6   :  { %v1933_v54 = vsel %vm95_vm9, %v1928_v53, %v403_v52 }
 0x4c7   :  { %v443_v55 = vrot.slane %v1933_v54, 4 }
 0x4c9   :  { %1490 = vmatmul.msk.f32.vlgmr.msrb.gmra.mxu1 %vm39_vm0, %v443_v55 }
 0x4ca   :  { %1120 = vmatpush.msrb.mxu1 %v1721_v2 }
 0x4cc   :  { %1121 = vmatpush.msrb.mxu1 %v1727_v3 }
 0x4ce   :  { %1122 = vmatpush.msrb.mxu1 %v1735_v5 }
 0x4d0   :  { %1123 = vmatpush.msrb.mxu1 %v1754_v9 }
 0x51c   :  { %v435_v57 = vpop.f32.mrf.mxu0 }
 0x51d   :  { %v439_v58 = vrot.slane %v435_v57, 4 }
 0x51f   :  { %v441_v59 = vadd.f32 %v439_v58, %v1840_v30 }
 0x521   :  { %1550 = vtanh.f32 %v441_v59  ;;  %v1491_v46 = vmul.f32 -1.442695, %v441_v59 }
 0x527   :  { %v1551_v60 = vpop.eup %1550 }
 0x528   :  { %497 = vrot.lane.b32.xlu2 %v1551_v60, %s1673_s4 }
 0x530   :  { %492 = vrot.lane.b32.xlu2 %v491_v63, %s1673_s4 }
 0x546   :  { %v463_v0 = vpop.f32.mrf.mxu1 }
 0x547   :  { %v467_v1 = vrot.slane %v463_v0, 6 }
 0x549   :  { %v469_v4 = vadd.f32 %v467_v1, %v1835_v28 }
 0x54b   :  { %1552 = vtanh.f32 %v469_v4  ;;  %v1492_v35 = vmul.f32 -1.442695, %v469_v4 }
 0x54c   :  { %1554 = vpow2.f32 %v1491_v46 }
 0x551   :  { %v1553_v8 = vpop.eup %1552 }
 0x552   :  { %539 = vrot.lane.b32.xlu0 %v1553_v8, %s1673_s4  ;;  %v1555_v13 = vpop.eup %1554 }
 0x553   :  { %v473_v14 = vadd.f32 1.0, %v1555_v13 }
 0x555   :  { %1556 = vrcp.f32 %v473_v14  ;;  %v485_v21 = vand.u32 2147483648, %v473_v14  ;;  %vm479_vm5 = vweird.f32 %v473_v14  ;;  %v483_v43 = vand.u32 2147483647, %v473_v14 }
 0x556   :  { %1558 = vpow2.f32 %v1492_v35 }
 0x557   :  { %v486_v27 = vor.u32 1.1754944e-38, %v485_v21  ;;  %vm484_vm7 = vcmp.eq.f32.partialorder %v483_v43, 8.507059e+37  ;;  %v558_v43 = vrot.slane %v1919_v50, 6 }
 0x55a   :  { %534 = vrot.lane.b32.xlu0 %v533_v11, %s1673_s4 }
 0x55b   :  { %v1557_v16 = vpop.eup %1556 }
 0x55c   :  { %v475_v17 = vmul.f32 %v1557_v16, %v473_v14  ;;  %vm480_vm4 = vweird.f32 %v1557_v16  ;;  %v1559_v36 = vpop.eup %1558 }
 0x55d   :  { %vm481_vm6 = vmor %vm479_vm5, %vm480_vm4  ;;  %v515_v37 = vadd.f32 1.0, %v1559_v36 }
 0x55e   :  { %v476_v18 = vsub.f32 1.0, %v475_v17 }
 0x55f   :  { %1560 = vrcp.f32 %v515_v37  ;;  %v527_v47 = vand.u32 2147483648, %v515_v37  ;;  %vm521_vm11 = vweird.f32 %v515_v37  ;;  %v525_v48 = vand.u32 2147483647, %v515_v37 }
 0x560   :  { %v477_v20 = vmul.f32 %v1557_v16, %v476_v18 }
 0x561   :  { %v528_v52 = vor.u32 1.1754944e-38, %v527_v47  ;;  %vm526_vm13 = vcmp.eq.f32.partialorder %v525_v48, 8.507059e+37 }
 0x562   :  { %v478_v41 = vadd.f32 %v1557_v16, %v477_v20 }
 0x564   :  { %v482_v24 = vsel %vm481_vm6, %v1557_v16, %v478_v41 }
 0x565   :  { %v487_v31 = vsel %vm484_vm7, %v486_v27, %v482_v24  ;;  %v1561_v38 = vpop.eup %1560 }
 0x566   :  { %v517_v39 = vmul.f32 %v1561_v38, %v515_v37  ;;  %vm522_vm8 = vweird.f32 %v1561_v38 }
 0x567   :  { %vm523_vm12 = vmor %vm521_vm11, %vm522_vm8 }
 0x568   :  { %v518_v40 = vsub.f32 1.0, %v517_v39 }
 0x56a   :  { %v519_v42 = vmul.f32 %v1561_v38, %v518_v40 }
 0x56c   :  { %v520_v44 = vadd.f32 %v1561_v38, %v519_v42 }
 0x56e   :  { %v524_v51 = vsel %vm523_vm12, %v1561_v38, %v520_v44 }
 0x56f   :  { %v529_v57 = vsel %vm526_vm13, %v528_v52, %v524_v51 }
 0x582   :  { %v498_v33 = vpop.permute.xlu2 %497 }
 0x583   :  { %v500_v34 = vmul.f32 %v498_v33, %v487_v31 }
 0x585   :  { %502 = vrot.lane.b32.xlu0 %v500_v34, %s1673_s4 }
 0x58a   :  { %v493_v60 = vpop.permute.xlu2 %492 }
 0x58b   :  { %v495_v61 = vmul.f32 %v493_v60, %v487_v31 }
 0x5c4   :  { %v540_v55 = vpop.permute.xlu0 %539 }
 0x5c5   :  { %v542_v58 = vmul.f32 %v540_v55, %v529_v57 }
 0x5c7   :  { %544 = vrot.lane.b32.xlu1 %v542_v58, %s1673_s4 }
 0x5cc   :  { %v535_v59 = vpop.permute.xlu0 %534 }
 0x5cd   :  { %v537_v8 = vmul.f32 %v535_v59, %v529_v57 }
 0x5f7   :  { %v503_v0 = vpop.permute.xlu0 %502 }
 0x5f8   :  { %v505_v1 = vadd.f32 %v503_v0, %v495_v61 }
 0x5fa   :  { %1562 = vtanh.f32 %v505_v1 }
 0x600   :  { %v1563_v4 = vpop.eup %1562 }
 0x601   :  { %508 = vrot.lane.b32.xlu2 %v1563_v4, %s1673_s4 }
 0x639   :  { %v545_v10 = vpop.permute.xlu1 %544 }
 0x63a   :  { %v547_v46 = vadd.f32 %v545_v10, %v537_v8 }
 0x63c   :  { %1564 = vtanh.f32 %v547_v46  ;;  %575 = vrot.lane.b32.xlu2 %v547_v46, %s1674_s8 }
 0x642   :  { %v1565_v13 = vpop.eup %1564 }
 0x643   :  { %550 = vrot.lane.b32.xlu1 %v1565_v13, %s1673_s4 }
 0x65b   :  { %v509_v14 = vpop.permute.xlu2 %508 }
 0x65c   :  { %v511_v16 = vmul.f32 %v509_v14, %v487_v31 }
 0x65e   :  { %555 = vrot.lane.b32.xlu1 %v511_v16, %s1675_s9 }
 0x666   :  { %562 = vrot.lane.b32.xlu1 %v505_v1, %s1674_s8 }
 0x696   :  { %v576_v17 = vpop.permute.xlu2 %575 }
 0x697   :  { %v1978_v18 = vsel %vm95_vm9, %v576_v17, %v533_v11 }
 0x698   :  { %v698_v20 = vrot.slane %v1978_v18, 2 }
 0x69a   :  { %699 = vrot.lane.b32.xlu2 %v698_v20, %s1673_s4 }
 0x6b5   :  { %v551_v41 = vpop.permute.xlu1 %550 }
 0x6b6   :  { %v553_v21 = vmul.f32 %v551_v41, %v529_v57 }
 0x6b8   :  { %568 = vrot.lane.b32.xlu0 %v553_v21, %s1675_s9 }
 0x6d0   :  { %v1986_v24 = vpop.permute.xlu1 %555 }
 0x6d1   :  { %v1991_v45 = vsel %vm94_vm10, %v1986_v24, %v558_v43 }
 0x6d2   :  { %v583_v11 = vrot.slane %v1991_v45, 4 }
 0x6d4   :  { %1493 = vmatmul.msk.f32.vlgmr.msra.gmra.mxu2 %vm39_vm0, %v583_v11 }
 0x6d5   :  { %1260 = vmatpush.msra.mxu2 %v1741_v6  ;;  %v571_v6 = vrot.slane %v1933_v54, 2 }
 0x6d7   :  { %1261 = vmatpush.msra.mxu2 %v1746_v7 }
 0x6d8   :  { %v563_v27 = vpop.permute.xlu1 %562 }
 0x6d9   :  { %v2001_v50 = vsel %vm94_vm10, %v563_v27, %v491_v63  ;;  %1262 = vmatpush.msra.mxu2 %v1768_v12 }
 0x6da   :  { %v656_v31 = vrot.slane %v2001_v50, 6 }
 0x6db   :  { %1263 = vmatpush.msra.mxu2 %v1778_v15 }
 0x6dc   :  { %657 = vrot.lane.b32.xlu2 %v656_v31, %s1673_s4 }
 0x6f4   :  { %v700_v16 = vpop.permute.xlu2 %699 }
 0x72a   :  { %v2010_v7 = vpop.permute.xlu0 %568 }
 0x72b   :  { %v2015_v62 = vsel %vm95_vm9, %v2010_v7, %v571_v6 }
 0x72c   :  { %v611_v63 = vrot.slane %v2015_v62, 2 }
 0x72e   :  { %1494 = vmatmul.msk.f32.vlgmr.msra.gmra.mxu3 %vm39_vm0, %v611_v63 }
 0x72f   :  { %1288 = vmatpush.msra.mxu3 %v1721_v2 }
 0x731   :  { %1289 = vmatpush.msra.mxu3 %v1727_v3 }
 0x733   :  { %1290 = vmatpush.msra.mxu3 %v1735_v5 }
 0x735   :  { %1291 = vmatpush.msra.mxu3 %v1754_v9 }
 0x736   :  { %v658_v43 = vpop.permute.xlu2 %657 }
 0x757   :  { %v603_v12 = vpop.f32.mrf.mxu2 }
 0x758   :  { %v607_v33 = vrot.slane %v603_v12, 2 }
 0x75a   :  { %v609_v34 = vadd.f32 %v607_v33, %v1840_v30 }
 0x75c   :  { %v1495_v3 = vmul.f32 -1.442695, %v609_v34 }
 0x7b1   :  { %v631_v15 = vpop.f32.mrf.mxu3 }
 0x7b2   :  { %v634_v54 = vadd.f32 %v631_v15, %v1835_v28 }
 0x7b4   :  { %1566 = vtanh.f32 %v634_v54  ;;  %v1496_v2 = vmul.f32 -1.442695, %v634_v54 }
 0x7b5   :  { %1568 = vtanh.f32 %v609_v34 }
 0x7b6   :  { %1570 = vpow2.f32 %v1496_v2 }
 0x7b7   :  { %1572 = vpow2.f32 %v1495_v3 }
 0x7ba   :  { %v1567_v35 = vpop.eup %1566 }
 0x7bb   :  { %704 = vrot.lane.b32.xlu0 %v1567_v35, %s1673_s4  ;;  %v1569_v36 = vpop.eup %1568 }
 0x7bc   :  { %v1571_v5 = vpop.eup %1570 }
 0x7bd   :  { %v680_v9 = vadd.f32 1.0, %v1571_v5  ;;  %v1573_v37 = vpop.eup %1572  ;;  %v723_v5 = vrot.slane %v1991_v45, 6 }
 0x7be   :  { %v638_v28 = vadd.f32 1.0, %v1573_v37 }
 0x7bf   :  { %1574 = vrcp.f32 %v680_v9  ;;  %v692_v51 = vand.u32 2147483648, %v680_v9  ;;  %vm686_vm15 = vweird.f32 %v680_v9  ;;  %v690_v52 = vand.u32 2147483647, %v680_v9 }
 0x7c0   :  { %1576 = vrcp.f32 %v638_v28  ;;  %v650_v1 = vand.u32 2147483648, %v638_v28  ;;  %vm644_vm4 = vweird.f32 %v638_v28  ;;  %v648_v4 = vand.u32 2147483647, %v638_v28 }
 0x7c1   :  { %v693_v58 = vor.u32 1.1754944e-38, %v692_v51  ;;  %vm691_vm2 = vcmp.eq.f32.partialorder %v690_v52, 8.507059e+37 }
 0x7c2   :  { %v651_v10 = vor.u32 1.1754944e-38, %v650_v1  ;;  %vm649_vm6 = vcmp.eq.f32.partialorder %v648_v4, 8.507059e+37 }
 0x7c3   :  { %662 = vrot.lane.b32.xlu0 %v1569_v36, %s1673_s4 }
 0x7c5   :  { %v1575_v38 = vpop.eup %1574 }
 0x7c6   :  { %v682_v39 = vmul.f32 %v1575_v38, %v680_v9  ;;  %v1577_v40 = vpop.eup %1576  ;;  %vm687_vm14 = vweird.f32 %v1575_v38 }
 0x7c7   :  { %v640_v44 = vmul.f32 %v1577_v40, %v638_v28  ;;  %vm688_vm1 = vmor %vm686_vm15, %vm687_vm14  ;;  %vm645_vm3 = vweird.f32 %v1577_v40 }
 0x7c8   :  { %v683_v30 = vsub.f32 1.0, %v682_v39  ;;  %vm646_vm5 = vmor %vm644_vm4, %vm645_vm3 }
 0x7c9   :  { %v641_v48 = vsub.f32 1.0, %v640_v44 }
 0x7ca   :  { %v684_v42 = vmul.f32 %v1575_v38, %v683_v30 }
 0x7cb   :  { %v642_v57 = vmul.f32 %v1577_v40, %v641_v48 }
 0x7cc   :  { %v685_v47 = vadd.f32 %v1575_v38, %v684_v42  ;;  %v2084_v42 = vadd.f32 %v1941_v56, %v35_v25 }
 0x7cd   :  { %v643_v0 = vadd.f32 %v1577_v40, %v642_v57 }
 0x7ce   :  { %v689_v55 = vsel %vm688_vm1, %v1575_v38, %v685_v47 }
 0x7cf   :  { %v694_v60 = vsel %vm691_vm2, %v693_v58, %v689_v55  ;;  %v647_v8 = vsel %vm646_vm5, %v1577_v40, %v643_v0 }
 0x7d0   :  { %v652_v13 = vsel %vm649_vm6, %v651_v10, %v647_v8  ;;  %v702_v17 = vmul.f32 %v700_v16, %v694_v60 }
 0x7d1   :  { %v660_v11 = vmul.f32 %v658_v43, %v652_v13 }
 0x82d   :  { %v705_v59 = vpop.permute.xlu0 %704 }
 0x82e   :  { %v707_v61 = vmul.f32 %v705_v59, %v694_v60 }
 0x830   :  { %709 = vrot.lane.b32.xlu1 %v707_v61, %s1673_s4 }
 0x835   :  { %v663_v46 = vpop.permute.xlu0 %662 }
 0x836   :  { %v665_v14 = vmul.f32 %v663_v46, %v652_v13 }
 0x838   :  { %667 = vrot.lane.b32.xlu0 %v665_v14, %s1673_s4 }
 0x8a2   :  { %v710_v41 = vpop.permute.xlu1 %709 }
 0x8a3   :  { %v712_v21 = vadd.f32 %v710_v41, %v702_v17 }
 0x8a5   :  { %1578 = vtanh.f32 %v712_v21 }
 0x8aa   :  { %v668_v27 = vpop.permute.xlu0 %667 }
 0x8ab   :  { %v1579_v6 = vpop.eup %1578  ;;  %v670_v12 = vadd.f32 %v668_v27, %v660_v11 }
 0x8ac   :  { %715 = vrot.lane.b32.xlu1 %v1579_v6, %s1673_s4 }
 0x8ad   :  { %1580 = vtanh.f32 %v670_v12 }
 0x8b3   :  { %v1581_v15 = vpop.eup %1580 }
 0x8b4   :  { %673 = vrot.lane.b32.xlu2 %v1581_v15, %s1673_s4 }
 0x8bc   :  { %739 = vrot.lane.b32.xlu2 %v712_v21, %s1674_s8 }
 0x90e   :  { %v674_v54 = vpop.permute.xlu2 %673 }
 0x90f   :  { %v676_v33 = vmul.f32 %v674_v54, %v652_v13 }
 0x911   :  { %720 = vrot.lane.b32.xlu1 %v676_v33, %s1675_s9 }
 0x916   :  { %v740_v34 = vpop.permute.xlu2 %739 }
 0x917   :  { %v2039_v35 = vsel %vm95_vm9, %v740_v34, %v698_v20 }
 0x918   :  { %v861_v36 = vrot.slane %v2039_v35, 2 }
 0x919   :  { %727 = vrot.lane.b32.xlu1 %v670_v12, %s1674_s8 }
 0x91a   :  { %862 = vrot.lane.b32.xlu2 %v861_v36, %s1673_s4 }
 0x91e   :  { %v716_v2 = vpop.permute.xlu1 %715 }
 0x91f   :  { %v718_v3 = vmul.f32 %v716_v2, %v694_v60 }
 0x921   :  { %733 = vrot.lane.b32.xlu0 %v718_v3, %s1675_s9 }
 0x974   :  { %v863_v15 = vpop.permute.xlu2 %862 }
 0x983   :  { %v2048_v9 = vpop.permute.xlu1 %720 }
 0x984   :  { %v2053_v18 = vsel %vm94_vm10, %v2048_v9, %v723_v5 }
 0x985   :  { %v747_v20 = vrot.slane %v2053_v18, 6 }
 0x987   :  { %1497 = vmatmul.msk.f32.vlgmr.msra.gmra.mxu0 %vm39_vm0, %v747_v20 }
 0x98b   :  { %v728_v37 = vpop.permute.xlu1 %727 }
 0x98c   :  { %v2063_v28 = vsel %vm94_vm10, %v728_v37, %v656_v31 }
 0x98d   :  { %v819_v45 = vrot.slane %v2063_v28, 6 }
 0x98f   :  { %820 = vrot.lane.b32.xlu2 %v819_v45, %s1673_s4 }
 0x993   :  { %v2069_v38 = vpop.permute.xlu0 %733 }
 0x994   :  { %v2076_v39 = vsel %vm95_vm9, %v2069_v38, %v611_v63 }
 0x995   :  { %1498 = vmatmul.msk.f32.vlgmr.msra.gmra.mxu1 %vm39_vm0, %v2076_v39 }
 0x9e9   :  { %v821_v2 = vpop.permute.xlu2 %820 }
 0xa04   :  { %v767_v40 = vpop.f32.mrf.mxu0 }
 0xa05   :  { %v770_v62 = vadd.f32 %v767_v40, %v2084_v42 }
 0xa07   :  { %v1499_v48 = vmul.f32 -1.442695, %v770_v62 }
 0xa12   :  { %v791_v50 = vpop.f32.mrf.mxu1 }
 0xa13   :  { %v795_v31 = vrot.slane %v791_v50, 2 }
 0xa15   :  { %v797_v30 = vadd.f32 %v795_v31, %v1832_v22 }
 0xa17   :  { %1582 = vtanh.f32 %v797_v30  ;;  %v1500_v47 = vmul.f32 -1.442695, %v797_v30 }
 0xa18   :  { %1584 = vtanh.f32 %v770_v62 }
 0xa19   :  { %1586 = vpow2.f32 %v1500_v47 }
 0xa1a   :  { %1588 = vpow2.f32 %v1499_v48  ;;  %v898_v48 = vrot.slane %v2076_v39, 2 }
 0xa1d   :  { %v1583_v44 = vpop.eup %1582 }
 0xa1e   :  { %867 = vrot.lane.b32.xlu0 %v1583_v44, %s1673_s4  ;;  %v1585_v63 = vpop.eup %1584 }
 0xa1f   :  { %v1587_v51 = vpop.eup %1586 }
 0xa20   :  { %v843_v52 = vadd.f32 1.0, %v1587_v51  ;;  %v1589_v19 = vpop.eup %1588 }
 0xa21   :  { %v801_v55 = vadd.f32 1.0, %v1589_v19 }
 0xa22   :  { %1590 = vrcp.f32 %v843_v52  ;;  %v855_v1 = vand.u32 2147483648, %v843_v52  ;;  %vm849_vm8 = vweird.f32 %v843_v52  ;;  %v853_v4 = vand.u32 2147483647, %v843_v52 }
 0xa23   :  { %1592 = vrcp.f32 %v801_v55  ;;  %v813_v41 = vand.u32 2147483648, %v801_v55  ;;  %vm807_vm14 = vweird.f32 %v801_v55  ;;  %v811_v21 = vand.u32 2147483647, %v801_v55 }
 0xa24   :  { %v856_v46 = vor.u32 1.1754944e-38, %v855_v1  ;;  %vm854_vm12 = vcmp.eq.f32.partialorder %v853_v4, 8.507059e+37 }
 0xa25   :  { %v814_v11 = vor.u32 1.1754944e-38, %v813_v41  ;;  %vm812_vm1 = vcmp.eq.f32.partialorder %v811_v21, 8.507059e+37 }
 0xa26   :  { %825 = vrot.lane.b32.xlu0 %v1585_v63, %s1673_s4 }
 0xa28   :  { %v1591_v25 = vpop.eup %1590 }
 0xa29   :  { %v845_v56 = vmul.f32 %v1591_v25, %v843_v52  ;;  %v1593_v58 = vpop.eup %1592  ;;  %vm850_vm7 = vweird.f32 %v1591_v25 }
 0xa2a   :  { %v803_v60 = vmul.f32 %v1593_v58, %v801_v55  ;;  %vm851_vm11 = vmor %vm849_vm8, %vm850_vm7  ;;  %vm808_vm13 = vweird.f32 %v1593_v58 }
 0xa2b   :  { %v846_v57 = vsub.f32 1.0, %v845_v56  ;;  %vm809_vm15 = vmor %vm807_vm14, %vm808_vm13 }
 0xa2c   :  { %v804_v0 = vsub.f32 1.0, %v803_v60 }
 0xa2d   :  { %v847_v59 = vmul.f32 %v1591_v25, %v846_v57 }
 0xa2e   :  { %v805_v10 = vmul.f32 %v1593_v58, %v804_v0 }
 0xa2f   :  { %v848_v61 = vadd.f32 %v1591_v25, %v847_v59 }
 0xa30   :  { %v806_v17 = vadd.f32 %v1593_v58, %v805_v10 }
 0xa31   :  { %v852_v8 = vsel %vm851_vm11, %v1591_v25, %v848_v61 }
 0xa32   :  { %v857_v14 = vsel %vm854_vm12, %v856_v46, %v852_v8  ;;  %v810_v43 = vsel %vm809_vm15, %v1593_v58, %v806_v17 }
 0xa33   :  { %v815_v6 = vsel %vm812_vm1, %v814_v11, %v810_v43  ;;  %v865_v54 = vmul.f32 %v863_v15, %v857_v14 }
 0xa34   :  { %v823_v3 = vmul.f32 %v821_v2, %v815_v6 }
 0xa90   :  { %v868_v13 = vpop.permute.xlu0 %867 }
 0xa91   :  { %v870_v16 = vmul.f32 %v868_v13, %v857_v14 }
 0xa93   :  { %872 = vrot.lane.b32.xlu1 %v870_v16, %s1673_s4 }
 0xa98   :  { %v826_v27 = vpop.permute.xlu0 %825 }
 0xa99   :  { %v828_v12 = vmul.f32 %v826_v27, %v815_v6 }
 0xa9b   :  { %830 = vrot.lane.b32.xlu0 %v828_v12, %s1673_s4 }
 0xb05   :  { %v873_v33 = vpop.permute.xlu1 %872 }
 0xb06   :  { %v875_v34 = vadd.f32 %v873_v33, %v865_v54 }
 0xb08   :  { %1594 = vtanh.f32 %v875_v34 }
 0xb0d   :  { %v831_v5 = vpop.permute.xlu0 %830 }
 0xb0e   :  { %v1595_v37 = vpop.eup %1594  ;;  %v833_v50 = vadd.f32 %v831_v5, %v823_v3 }
 0xb0f   :  { %878 = vrot.lane.b32.xlu1 %v1595_v37, %s1673_s4 }
 0xb10   :  { %1596 = vtanh.f32 %v833_v50 }
 0xb16   :  { %v1597_v31 = vpop.eup %1596 }
 0xb17   :  { %836 = vrot.lane.b32.xlu2 %v1597_v31, %s1673_s4 }
 0xb1f   :  { %902 = vrot.lane.b32.xlu2 %v875_v34, %s1674_s8 }
 0xb71   :  { %v837_v30 = vpop.permute.xlu2 %836 }
 0xb72   :  { %v839_v40 = vmul.f32 %v837_v30, %v815_v6 }
 0xb74   :  { %883 = vrot.lane.b32.xlu1 %v839_v40, %s1675_s9 }
 0xb79   :  { %v903_v0 = vpop.permute.xlu2 %902 }
 0xb7a   :  { %v2136_v28 = vsel %vm94_vm10, %v903_v0, %v861_v36 }
 0xb7c   :  { %889 = vrot.lane.b32.xlu1 %v833_v50, %s1674_s8 }
 0xb81   :  { %v879_v62 = vpop.permute.xlu1 %878 }
 0xb82   :  { %v881_v44 = vmul.f32 %v879_v62, %v857_v14 }
 0xb84   :  { %895 = vrot.lane.b32.xlu0 %v881_v44, %s1675_s9 }
 0xbe6   :  { %v2097_v63 = vpop.permute.xlu1 %883 }
 0xbe7   :  { %v2104_v47 = vsel %vm95_vm9, %v2097_v63, %v747_v20 }
 0xbe8   :  { %1501 = vmatmul.msk.f32.vlgmr.msrb.gmra.mxu2 %vm39_vm0, %v2104_v47 }
 0xbee   :  { %v890_v56 = vpop.permute.xlu1 %889 }
 0xbef   :  { %v2124_v39 = vsel %vm95_vm9, %v890_v56, %v819_v45  ;;  %v1027_v45 = vrot.slane %v2136_v28, 2 }
 0xbf0   :  { %v985_v57 = vrot.slane %v2124_v39, 6 }
 0xbf6   :  { %v2109_v51 = vpop.permute.xlu0 %895 }
 0xbf7   :  { %v2114_v52 = vsel %vm94_vm10, %v2109_v51, %v898_v48 }
 0xbf8   :  { %v937_v19 = vrot.slane %v2114_v52, 6 }
 0xbfa   :  { %1502 = vmatmul.msk.f32.vlgmr.msrb.gmra.mxu3 %vm39_vm0, %v937_v19 }
 0xc6b   :  { %v929_v18 = vpop.f32.mrf.mxu2 }
 0xc6c   :  { %v933_v55 = vrot.slane %v929_v18, 6 }
 0xc6e   :  { %v935_v20 = vadd.f32 %v933_v55, %v2084_v42 }
 0xc70   :  { %1598 = vtanh.f32 %v935_v20  ;;  %v1503_v1 = vmul.f32 -1.442695, %v935_v20 }
 0xc76   :  { %v1599_v25 = vpop.eup %1598 }
 0xc77   :  { %991 = vrot.lane.b32.xlu2 %v1599_v25, %s1673_s4 }
 0xc7d   :  { %v957_v58 = vpop.f32.mrf.mxu3 }
 0xc7e   :  { %v961_v59 = vrot.slane %v957_v58, 4 }
 0xc7f   :  { %986 = vrot.lane.b32.xlu2 %v985_v57, %s1673_s4 }
 0xc80   :  { %v963_v60 = vadd.f32 %v961_v59, %v1832_v22 }
 0xc82   :  { %1600 = vtanh.f32 %v963_v60  ;;  %v1504_v17 = vmul.f32 -1.442695, %v963_v60 }
 0xc83   :  { %1602 = vpow2.f32 %v1503_v1  ;;  %v1052_v1 = vrot.slane %v2104_v47, 6 }
 0xc88   :  { %v1601_v61 = vpop.eup %1600 }
 0xc89   :  { %1033 = vrot.lane.b32.xlu0 %v1601_v61, %s1673_s4  ;;  %v1603_v4 = vpop.eup %1602 }
 0xc8a   :  { %v967_v8 = vadd.f32 1.0, %v1603_v4 }
 0xc8c   :  { %1604 = vrcp.f32 %v967_v8  ;;  %v979_v16 = vand.u32 2147483648, %v967_v8  ;;  %vm973_vm3 = vweird.f32 %v967_v8  ;;  %v977_v36 = vand.u32 2147483647, %v967_v8 }
 0xc8d   :  { %1606 = vpow2.f32 %v1504_v17 }
 0xc8e   :  { %v980_v21 = vor.u32 1.1754944e-38, %v979_v16  ;;  %vm978_vm5 = vcmp.eq.f32.partialorder %v977_v36, 8.507059e+37 }
 0xc91   :  { %1028 = vrot.lane.b32.xlu0 %v1027_v45, %s1673_s4 }
 0xc92   :  { %v1605_v10 = vpop.eup %1604 }
 0xc93   :  { %v969_v46 = vmul.f32 %v1605_v10, %v967_v8  ;;  %vm974_vm2 = vweird.f32 %v1605_v10  ;;  %v1607_v6 = vpop.eup %1606 }
 0xc94   :  { %vm975_vm4 = vmor %vm973_vm3, %vm974_vm2  ;;  %v1009_v12 = vadd.f32 1.0, %v1607_v6 }
 0xc95   :  { %v970_v13 = vsub.f32 1.0, %v969_v46  ;;  %v1065_v46 = vrot.slane %v2114_v52, 2 }
 0xc96   :  { %1608 = vrcp.f32 %v1009_v12  ;;  %v1021_v3 = vand.u32 2147483648, %v1009_v12  ;;  %vm1015_vm7 = vweird.f32 %v1009_v12  ;;  %v1019_v5 = vand.u32 2147483647, %v1009_v12 }
 0xc97   :  { %v971_v14 = vmul.f32 %v1605_v10, %v970_v13 }
 0xc98   :  { %v1022_v50 = vor.u32 1.1754944e-38, %v1021_v3  ;;  %vm1020_vm11 = vcmp.eq.f32.partialorder %v1019_v5, 8.507059e+37 }
 0xc99   :  { %v972_v35 = vadd.f32 %v1605_v10, %v971_v14 }
 0xc9b   :  { %v976_v41 = vsel %vm975_vm4, %v1605_v10, %v972_v35 }
 0xc9c   :  { %v981_v43 = vsel %vm978_vm5, %v980_v21, %v976_v41  ;;  %v1609_v15 = vpop.eup %1608 }
 0xc9d   :  { %v1011_v54 = vmul.f32 %v1609_v15, %v1009_v12  ;;  %vm1016_vm6 = vweird.f32 %v1609_v15 }
 0xc9e   :  { %vm1017_vm8 = vmor %vm1015_vm7, %vm1016_vm6 }
 0xc9f   :  { %v1012_v33 = vsub.f32 1.0, %v1011_v54 }
 0xca1   :  { %v1013_v34 = vmul.f32 %v1609_v15, %v1012_v33 }
 0xca3   :  { %v1014_v2 = vadd.f32 %v1609_v15, %v1013_v34 }
 0xca5   :  { %v1018_v37 = vsel %vm1017_vm8, %v1609_v15, %v1014_v2 }
 0xca6   :  { %v1023_v30 = vsel %vm1020_vm11, %v1022_v50, %v1018_v37 }
 0xcd1   :  { %v992_v11 = vpop.permute.xlu2 %991 }
 0xcd2   :  { %v994_v27 = vmul.f32 %v992_v11, %v981_v43 }
 0xcd4   :  { %996 = vrot.lane.b32.xlu0 %v994_v27, %s1673_s4 }
 0xcd9   :  { %v987_v44 = vpop.permute.xlu2 %986 }
 0xcda   :  { %v989_v48 = vmul.f32 %v987_v44, %v981_v43 }
 0xcfb   :  { %v1034_v31 = vpop.permute.xlu0 %1033 }
 0xcfc   :  { %v1036_v40 = vmul.f32 %v1034_v31, %v1023_v30 }
 0xcfe   :  { %1038 = vrot.lane.b32.xlu1 %v1036_v40, %s1673_s4 }
 0xd03   :  { %v1029_v62 = vpop.permute.xlu0 %1028 }
 0xd04   :  { %v1031_v20 = vmul.f32 %v1029_v62, %v1023_v30 }
 0xd46   :  { %v997_v19 = vpop.permute.xlu0 %996 }
 0xd47   :  { %v999_v18 = vadd.f32 %v997_v19, %v989_v48 }
 0xd49   :  { %1610 = vtanh.f32 %v999_v18 }
 0xd4f   :  { %v1611_v55 = vpop.eup %1610 }
 0xd50   :  { %1002 = vrot.lane.b32.xlu2 %v1611_v55, %s1673_s4 }
 0xd70   :  { %v1039_v25 = vpop.permute.xlu1 %1038 }
 0xd71   :  { %v1041_v56 = vadd.f32 %v1039_v25, %v1031_v20 }
 0xd73   :  { %1612 = vtanh.f32 %v1041_v56  ;;  %1069 = vrot.lane.b32.xlu2 %v1041_v56, %s1674_s8 }
 0xd79   :  { %v1613_v58 = vpop.eup %1612 }
 0xd7a   :  { %1044 = vrot.lane.b32.xlu1 %v1613_v58, %s1673_s4 }
 0xdaa   :  { %v1003_v59 = vpop.permute.xlu2 %1002 }
 0xdab   :  { %v1005_v60 = vmul.f32 %v1003_v59, %v981_v43 }
 0xdad   :  { %1049 = vrot.lane.b32.xlu1 %v1005_v60, %s1675_s9 }
 0xdb5   :  { %1056 = vrot.lane.b32.xlu1 %v999_v18, %s1674_s8 }
 0xdcd   :  { %v1070_v54 = vpop.permute.xlu2 %1069 }
 0xdce   :  { %v2188_v33 = vsel %vm94_vm10, %v1070_v54, %v1027_v45 }
 0xdcf   :  { %v1195_v2 = vrot.slane %v2188_v33, 2 }
 0xdec   :  { %v1045_v61 = vpop.permute.xlu1 %1044 }
 0xded   :  { %v1047_v0 = vmul.f32 %v1045_v61, %v1023_v30 }
 0xdef   :  { %1062 = vrot.lane.b32.xlu0 %v1047_v0, %s1675_s9 }
 0xe1f   :  { %v2151_v4 = vpop.permute.xlu1 %1049 }
 0xe20   :  { %v2156_v8 = vsel %vm95_vm9, %v2151_v4, %v1052_v1 }
 0xe21   :  { %v1077_v10 = vrot.slane %v2156_v8, 2 }
 0xe23   :  { %1505 = vmatmul.msk.f32.vlgmr.msrb.gmra.mxu0 %vm39_vm0, %v1077_v10 }
 0xe27   :  { %v1057_v41 = vpop.permute.xlu1 %1056 }
 0xe28   :  { %v2176_v52 = vsel %vm95_vm9, %v1057_v41, %v985_v57 }
 0xe29   :  { %v1153_v21 = vrot.slane %v2176_v52, 6 }
 0xe61   :  { %v2161_v13 = vpop.permute.xlu0 %1062 }
 0xe62   :  { %v2166_v14 = vsel %vm94_vm10, %v2161_v13, %v1065_v46 }
 0xe63   :  { %v1105_v47 = vrot.slane %v2166_v14, 4 }
 0xe65   :  { %1506 = vmatmul.msk.f32.vlgmr.msrb.gmra.mxu1 %vm39_vm0, %v1105_v47 }
 0xea0   :  { %v1097_v35 = vpop.f32.mrf.mxu0 }
 0xea1   :  { %v1101_v16 = vrot.slane %v1097_v35, 4 }
 0xea3   :  { %v1103_v36 = vadd.f32 %v1101_v16, %v2084_v42 }
 0xea5   :  { %1614 = vtanh.f32 %v1103_v36  ;;  %v1507_v43 = vmul.f32 -1.442695, %v1103_v36 }
 0xea7   :  { %1616 = vpow2.f32 %v1507_v43 }
 0xeab   :  { %v1615_v17 = vpop.eup %1614 }
 0xeac   :  { %1159 = vrot.lane.b32.xlu2 %v1615_v17, %s1673_s4 }
 0xead   :  { %v1617_v27 = vpop.eup %1616 }
 0xeae   :  { %v1135_v15 = vadd.f32 1.0, %v1617_v27 }
 0xeb0   :  { %v1147_v50 = vand.u32 2147483648, %v1135_v15  ;;  %vm1141_vm13 = vweird.f32 %v1135_v15  ;;  %v1145_v31 = vand.u32 2147483647, %v1135_v15 }
 0xeb2   :  { %v1148_v40 = vor.u32 1.1754944e-38, %v1147_v50  ;;  %vm1146_vm15 = vcmp.eq.f32.partialorder %v1145_v31, 8.507059e+37 }
 0xeb4   :  { %1154 = vrot.lane.b32.xlu2 %v1153_v21, %s1673_s4 }
 0xee2   :  { %v1125_v11 = vpop.f32.mrf.mxu1 }
 0xee3   :  { %v1129_v6 = vrot.slane %v1125_v11, 6 }
 0xee5   :  { %v1131_v12 = vadd.f32 %v1129_v6, %v1832_v22 }
 0xee7   :  { %1618 = vtanh.f32 %v1131_v12  ;;  %v1508_v44 = vmul.f32 -1.442695, %v1131_v12 }
 0xee8   :  { %1620 = vrcp.f32 %v1135_v15 }
 0xee9   :  { %1622 = vpow2.f32 %v1508_v44 }
 0xeed   :  { %v1619_v39 = vpop.eup %1618 }
 0xeee   :  { %1201 = vrot.lane.b32.xlu0 %v1619_v39, %s1673_s4  ;;  %v1621_v57 = vpop.eup %1620 }
 0xeef   :  { %v1137_v34 = vmul.f32 %v1621_v57, %v1135_v15  ;;  %vm1142_vm12 = vweird.f32 %v1621_v57  ;;  %v1623_v48 = vpop.eup %1622 }
 0xef0   :  { %vm1143_vm14 = vmor %vm1141_vm13, %vm1142_vm12  ;;  %v1177_v19 = vadd.f32 1.0, %v1623_v48 }
 0xef1   :  { %v1138_v3 = vsub.f32 1.0, %v1137_v34  ;;  %v1220_v34 = vrot.slane %v2156_v8, 6  ;;  %v1233_v8 = vrot.slane %v2166_v14, 2 }
 0xef2   :  { %1624 = vrcp.f32 %v1177_v19  ;;  %v1189_v58 = vand.u32 2147483648, %v1177_v19  ;;  %vm1183_vm2 = vweird.f32 %v1177_v19  ;;  %v1187_v59 = vand.u32 2147483647, %v1177_v19 }
 0xef3   :  { %v1139_v5 = vmul.f32 %v1621_v57, %v1138_v3 }
 0xef4   :  { %v1190_v61 = vor.u32 1.1754944e-38, %v1189_v58  ;;  %vm1188_vm4 = vcmp.eq.f32.partialorder %v1187_v59, 8.507059e+37 }
 0xef5   :  { %v1140_v37 = vadd.f32 %v1621_v57, %v1139_v5 }
 0xef6   :  { %1196 = vrot.lane.b32.xlu0 %v1195_v2, %s1673_s4 }
 0xef7   :  { %v1144_v30 = vsel %vm1143_vm14, %v1621_v57, %v1140_v37 }
 0xef8   :  { %v1149_v28 = vsel %vm1146_vm15, %v1148_v40, %v1144_v30  ;;  %v1625_v18 = vpop.eup %1624  ;;  %vm1435_vm15 = vcmask 1041408  }
 0xef9   :  { %v1179_v55 = vmul.f32 %v1625_v18, %v1177_v19  ;;  %vm1184_vm1 = vweird.f32 %v1625_v18 }
 0xefa   :  { %vm1185_vm3 = vmor %vm1183_vm2, %vm1184_vm1  ;;  %vm1437_vm1 = vcmask 1043456   ;;  %vm1439_vm2 = vcmask 1045504  }
 0xefb   :  { %v1180_v20 = vsub.f32 1.0, %v1179_v55 }
 0xefd   :  { %v1181_v25 = vmul.f32 %v1625_v18, %v1180_v20 }
 0xeff   :  { %v1182_v56 = vadd.f32 %v1625_v18, %v1181_v25 }
 0xf01   :  { %v1186_v60 = vsel %vm1185_vm3, %v1625_v18, %v1182_v56  ;;  %vm1444_vm3 = vcmask 523264  }
 0xf02   :  { %v1191_v1 = vsel %vm1188_vm4, %v1190_v61, %v1186_v60 }
 0xf06   :  { %v1160_v62 = vpop.permute.xlu2 %1159 }
 0xf07   :  { %v1162_v45 = vmul.f32 %v1160_v62, %v1149_v28 }
 0xf09   :  { %1164 = vrot.lane.b32.xlu0 %v1162_v45, %s1673_s4 }
 0xf0e   :  { %v1155_v47 = vpop.permute.xlu2 %1154 }
 0xf0f   :  { %v1157_v35 = vmul.f32 %v1155_v47, %v1149_v28 }
 0xf60   :  { %v1202_v0 = vpop.permute.xlu0 %1201 }
 0xf61   :  { %v1204_v10 = vmul.f32 %v1202_v0, %v1191_v1 }
 0xf63   :  { %1206 = vrot.lane.b32.xlu1 %v1204_v10, %s1673_s4 }
 0xf68   :  { %v1197_v46 = vpop.permute.xlu0 %1196 }
 0xf69   :  { %v1199_v41 = vmul.f32 %v1197_v46, %v1191_v1 }
 0xf7b   :  { %v1165_v16 = vpop.permute.xlu0 %1164 }
 0xf7c   :  { %v1167_v36 = vadd.f32 %v1165_v16, %v1157_v35 }
 0xf7e   :  { %1626 = vtanh.f32 %v1167_v36 }
 0xf84   :  { %v1627_v17 = vpop.eup %1626 }
 0xf85   :  { %1170 = vrot.lane.b32.xlu2 %v1627_v17, %s1673_s4 }
 0xfd5   :  { %v1207_v43 = vpop.permute.xlu1 %1206 }
 0xfd6   :  { %v1209_v11 = vadd.f32 %v1207_v43, %v1199_v41 }
 0xfd8   :  { %1628 = vtanh.f32 %v1209_v11  ;;  %1237 = vrot.lane.b32.xlu2 %v1209_v11, %s1674_s8 }
 0xfde   :  { %v1629_v27 = vpop.eup %1628 }
 0xfdf   :  { %1212 = vrot.lane.b32.xlu1 %v1629_v27, %s1673_s4  ;;  %v1171_v6 = vpop.permute.xlu2 %1170 }
 0xfe0   :  { %v1173_v12 = vmul.f32 %v1171_v6, %v1149_v28 }
 0xfe7   :  { %1217 = vrot.lane.b32.xlu1 %v1173_v12, %s1675_s9 }
 0xfef   :  { %1224 = vrot.lane.b32.xlu1 %v1167_v36, %s1674_s8 }
0x1032   :  { %v1238_v15 = vpop.permute.xlu2 %1237 }
0x1033   :  { %v1241_v39 = vsel %vm94_vm10, %v1238_v15, %v1195_v2 }
0x1034   :  { %v1360_v54 = vrot.slane %v1241_v39, 2 }
0x1036   :  { %1361 = vrot.lane.b32.xlu2 %v1360_v54, %s1673_s4 }
0x1051   :  { %v1213_v57 = vpop.permute.xlu1 %1212 }
0x1052   :  { %v1215_v33 = vmul.f32 %v1213_v57, %v1191_v1 }
0x1054   :  { %1230 = vrot.lane.b32.xlu0 %v1215_v33, %s1675_s9 }
0x1059   :  { %v2204_v3 = vpop.permute.xlu1 %1217 }
0x105a   :  { %v2209_v5 = vsel %vm95_vm9, %v2204_v3, %v1220_v34 }
0x105b   :  { %v1245_v37 = vrot.slane %v2209_v5, 4 }
0x105d   :  { %1509 = vmatmul.msk.f32.vlgmr.msra.gmra.mxu2 %vm39_vm0, %v1245_v37 }
0x1061   :  { %v1225_v2 = vpop.permute.xlu1 %1224 }
0x1062   :  { %v1228_v50 = vsel %vm95_vm9, %v1225_v2, %v1153_v21 }
0x1063   :  { %v1318_v31 = vrot.slane %v1228_v50, 6 }
0x1065   :  { %1319 = vrot.lane.b32.xlu2 %v1318_v31, %s1673_s4 }
0x1090   :  { %v1362_v57 = vpop.permute.xlu2 %1361 }
0x10bf   :  { %v1320_v2 = vpop.permute.xlu2 %1319 }
0x10c6   :  { %v2219_v30 = vpop.permute.xlu0 %1230 }
0x10c7   :  { %v2224_v40 = vsel %vm94_vm10, %v2219_v30, %v1233_v8 }
0x10c8   :  { %v1273_v28 = vrot.slane %v2224_v40, 2  ;;  %v1242_v40 = vsel %vm95_vm9, %v2204_v3, 0.0 }
0x10ca   :  { %1510 = vmatmul.msk.f32.vlgmr.msra.gmra.mxu3 %vm39_vm0, %v1273_v28 }
0x10e0   :  { %v1265_v52 = vpop.f32.mrf.mxu2 }
0x10e1   :  { %v1269_v45 = vrot.slane %v1265_v52, 2 }
0x10e3   :  { %v1271_v14 = vadd.f32 %v1269_v45, %v2084_v42  ;;  %v413_v45 = vsel %vm95_vm9, %v1928_v53, 0.0 }
0x10e5   :  { %v1511_v18 = vmul.f32 -1.442695, %v1271_v14 }
0x114d   :  { %v1293_v21 = vpop.f32.mrf.mxu3 }
0x114e   :  { %v1296_v62 = vadd.f32 %v1293_v21, %v1832_v22 }
0x1150   :  { %1630 = vtanh.f32 %v1296_v62  ;;  %v1512_v19 = vmul.f32 -1.442695, %v1296_v62  ;;  %v581_v62 = vsel %vm95_vm9, %v2010_v7, 0.0  ;;  %v908_v7 = vsel %vm94_vm10, %v2109_v51, 0.0 }
0x1151   :  { %1632 = vtanh.f32 %v1271_v14  ;;  %v1243_v14 = vsel %vm94_vm10, %v2219_v30, 0.0  ;;  %v745_v30 = vsel %vm95_vm9, %v2069_v38, 0.0 }
0x1152   :  { %1634 = vpow2.f32 %v1512_v19 }
0x1153   :  { %1636 = vpow2.f32 %v1511_v18  ;;  %v1075_v18 = vsel %vm94_vm10, %v2161_v13, 0.0 }
0x1156   :  { %v1631_v44 = vpop.eup %1630 }
0x1157   :  { %1366 = vrot.lane.b32.xlu0 %v1631_v44, %s1673_s4  ;;  %v1633_v48 = vpop.eup %1632 }
0x1158   :  { %v1635_v55 = vpop.eup %1634 }
0x1159   :  { %v1342_v20 = vadd.f32 1.0, %v1635_v55  ;;  %v1637_v25 = vpop.eup %1636  ;;  %v1385_v55 = vrot.slane %v2209_v5, 6  ;;  %v907_v5 = vsel %vm95_vm9, %v2097_v63, 0.0 }
0x115a   :  { %v1300_v22 = vadd.f32 1.0, %v1637_v25 }
0x115b   :  { %1638 = vrcp.f32 %v1342_v20  ;;  %v1354_v10 = vand.u32 2147483648, %v1342_v20  ;;  %vm1348_vm6 = vweird.f32 %v1342_v20  ;;  %v1352_v46 = vand.u32 2147483647, %v1342_v20 }
0x115c   :  { %1640 = vrcp.f32 %v1300_v22  ;;  %v1312_v11 = vand.u32 2147483648, %v1300_v22  ;;  %vm1306_vm12 = vweird.f32 %v1300_v22  ;;  %v1310_v27 = vand.u32 2147483647, %v1300_v22 }
0x115d   :  { %v1355_v16 = vor.u32 1.1754944e-38, %v1354_v10  ;;  %vm1353_vm8 = vcmp.eq.f32.partialorder %v1352_v46, 8.507059e+37 }
0x115e   :  { %v1313_v12 = vor.u32 1.1754944e-38, %v1312_v11  ;;  %vm1311_vm14 = vcmp.eq.f32.partialorder %v1310_v27, 8.507059e+37 }
0x115f   :  { %1324 = vrot.lane.b32.xlu0 %v1633_v48, %s1673_s4 }
0x1161   :  { %v1639_v56 = vpop.eup %1638 }
0x1162   :  { %v1344_v58 = vmul.f32 %v1639_v56, %v1342_v20  ;;  %v1641_v59 = vpop.eup %1640  ;;  %vm1349_vm5 = vweird.f32 %v1639_v56 }
0x1163   :  { %v1302_v61 = vmul.f32 %v1641_v59, %v1300_v22  ;;  %vm1350_vm7 = vmor %vm1348_vm6, %vm1349_vm5  ;;  %vm1307_vm11 = vweird.f32 %v1641_v59 }
0x1164   :  { %v1345_v42 = vsub.f32 1.0, %v1344_v58  ;;  %vm1308_vm13 = vmor %vm1306_vm12, %vm1307_vm11  ;;  %v1074_v58 = vsel %vm95_vm9, %v2151_v4, 0.0  ;;  %v580_v4 = vsel %vm94_vm10, %v1986_v24, 0.0  ;;  %v412_v24 = vsel %vm94_vm10, %v1914_v49, 0.0 }
0x1165   :  { %v1303_v1 = vsub.f32 1.0, %v1302_v61 }
0x1166   :  { %v1346_v60 = vmul.f32 %v1639_v56, %v1345_v42 }
0x1167   :  { %v1304_v35 = vmul.f32 %v1641_v59, %v1303_v1 }
0x1168   :  { %v1347_v0 = vadd.f32 %v1639_v56, %v1346_v60 }
0x1169   :  { %v1305_v43 = vadd.f32 %v1641_v59, %v1304_v35 }
0x116a   :  { %v1351_v47 = vsel %vm1350_vm7, %v1639_v56, %v1347_v0 }
0x116b   :  { %v1356_v17 = vsel %vm1353_vm8, %v1355_v16, %v1351_v47  ;;  %v1309_v6 = vsel %vm1308_vm13, %v1641_v59, %v1305_v43 }
0x116c   :  { %v1314_v39 = vsel %vm1311_vm14, %v1313_v12, %v1309_v6  ;;  %v1364_v33 = vmul.f32 %v1362_v57, %v1356_v17 }
0x116d   :  { %v1322_v50 = vmul.f32 %v1320_v2, %v1314_v39 }
0x11c9   :  { %v1367_v36 = vpop.permute.xlu0 %1366 }
0x11ca   :  { %v1369_v41 = vmul.f32 %v1367_v36, %v1356_v17 }
0x11cc   :  { %1371 = vrot.lane.b32.xlu1 %v1369_v41, %s1673_s4  ;;  %v744_v41 = vsel %vm94_vm10, %v2048_v9, 0.0 }
0x11d1   :  { %v1325_v15 = vpop.permute.xlu0 %1324 }
0x11d2   :  { %v1327_v54 = vmul.f32 %v1325_v15, %v1314_v39 }
0x11d4   :  { %1329 = vrot.lane.b32.xlu0 %v1327_v54, %s1673_s4 }
0x123e   :  { %v1372_v34 = vpop.permute.xlu1 %1371 }
0x123f   :  { %v1374_v37 = vadd.f32 %v1372_v34, %v1364_v33 }
0x1241   :  { %1642 = vtanh.f32 %v1374_v37 }
0x1246   :  { %v1330_v31 = vpop.permute.xlu0 %1329 }
0x1247   :  { %v1643_v8 = vpop.eup %1642  ;;  %v1332_v52 = vadd.f32 %v1330_v31, %v1322_v50 }
0x1248   :  { %1377 = vrot.lane.b32.xlu1 %v1643_v8, %s1673_s4 }
0x1249   :  { %1644 = vtanh.f32 %v1332_v52 }
0x124f   :  { %v1645_v21 = vpop.eup %1644 }
0x1250   :  { %1422 = vrot.lane.b32.xlu1 %v581_v62, %s1673_s4  ;;  %1335 = vrot.lane.b32.xlu2 %v1645_v21, %s1673_s4 }
0x1258   :  { %1427 = vrot.lane.b32.xlu1 %v413_v45, %s1673_s4  ;;  %1402 = vrot.lane.b32.xlu2 %v1243_v14, %s1673_s4 }
0x12aa   :  { %v1336_v44 = vpop.permute.xlu2 %1335 }
0x12ab   :  { %v1338_v48 = vmul.f32 %v1336_v44, %v1314_v39 }
0x12ad   :  { %1382 = vrot.lane.b32.xlu2 %v1338_v48, %s1675_s9 }
0x12b2   :  { %v1403_v51 = vpop.permute.xlu2 %1402 }
0x12b5   :  { %1412 = vrot.lane.b32.xlu2 %v908_v7, %s1673_s4 }
0x12ba   :  { %v1378_v19 = vpop.permute.xlu1 %1377 }
0x12bb   :  { %v1380_v53 = vmul.f32 %v1378_v19, %v1356_v17  ;;  %v1405_v17 = vsel %vm39_vm0, %v412_v24, %v1403_v51 }
0x12bd   :  { %1389 = vrot.lane.b32.xlu0 %v1380_v53, %s1675_s9 }
0x12c2   :  { %v1423_v22 = vpop.permute.xlu1 %1422 }
0x12c3   :  { %v1425_v60 = vsel %vm39_vm0, %v1074_v58, %v1423_v22 }
0x12c5   :  { %1417 = vrot.lane.b32.xlu0 %v745_v30, %s1673_s4 }
0x12cd   :  { %1407 = vrot.lane.b32.xlu0 %v1075_v18, %s1673_s4 }
0x12d5   :  { %1431 = vrot.lane.b32.xlu0 %v1861_v26, %s1673_s4  ;;  %v1428_v26 = vpop.permute.xlu1 %1427 }
0x12d6   :  { %v1430_v61 = vsel %vm39_vm0, %v1242_v40, %v1428_v26 }
0x1307   :  { %v1383_v20 = vpop.permute.xlu2 %1382 }
0x1308   :  { %v1387_v25 = vsel %vm95_vm9, %v1383_v20, %v1385_v55  ;;  %v1394_v3 = vsel %vm95_vm9, %v1383_v20, 0.0  ;;  %vm1453_vm9 = vcmask 523270  }
0x130f   :  { %v1413_v16 = vpop.permute.xlu2 %1412 }
0x1310   :  { %v1415_v11 = vsel %vm39_vm0, %v744_v41, %v1413_v16 }
0x132f   :  { %v1390_v38 = vpop.permute.xlu0 %1389 }
0x1330   :  { %v1395_v56 = vsel %vm94_vm10, %v1390_v38, 0.0  ;;  %v1393_v13 = vsel %vm94_vm10, %v1390_v38, %v1273_v28 }
0x1331   :  { %1397 = vrot.lane.b32.xlu1 %v1395_v56, %s1673_s4  ;;  %v1448_v42 = vrot.slane %v1393_v13, 2 }
0x1337   :  { %v1418_v59 = vpop.permute.xlu0 %1417 }
0x1338   :  { %v1420_v28 = vsel %vm39_vm0, %v907_v5, %v1418_v59 }
0x1339   :  { %v1441_v0 = vsel %vm1435_vm15, %v1420_v28, %v1425_v60  ;;  %1449 = vrot.lane.b32.xlu1 %v1448_v42, %s1673_s4 }
0x133a   :  { %v1442_v63 = vsel %vm1437_vm1, %v1441_v0, %v1430_v61 }
0x133f   :  { %v1408_v1 = vpop.permute.xlu0 %1407 }
0x1340   :  { %v1410_v10 = vsel %vm39_vm0, %v580_v4, %v1408_v1 }
0x1347   :  { %v1432_v46 = vpop.permute.xlu0 %1431 }
0x1348   :  { %v1434_v47 = vsel %vm39_vm0, %v1394_v3, %v1432_v46 }
0x1349   :  { %v1443_v35 = vsel %vm1439_vm2, %v1442_v63, %v1434_v47 }
0x134a   :  { %1446 = vst.msk [vmem:[%s2327_s5 + $0x8] sm:$0xff] %vm1444_vm3, %v1443_v35 }
0x13a3   :  { %v1398_v36 = vpop.permute.xlu1 %1397 }
0x13a4   :  { %v1400_v23 = vsel %vm39_vm0, %v1875_v32, %v1398_v36 }
0x13a5   :  { %v1436_v43 = vsel %vm1435_vm15, %v1400_v23, %v1405_v17 }
0x13a6   :  { %v1438_v27 = vsel %vm1437_vm1, %v1436_v43, %v1410_v10 }
0x13a7   :  { %v1440_v6 = vsel %vm1439_vm2, %v1438_v27, %v1415_v11 }
0x13a8   :  { %1445 = vst.msk [vmem:[%s2327_s5] sm:$0xff] %vm1444_vm3, %v1440_v6 }
0x13ab   :  { %v1450_v29 = vpop.permute.xlu1 %1449 }
0x13ac   :  { %v1452_v32 = vsel %vm39_vm0, %v1387_v25, %v1450_v29 }
0x13ad   :  { %1454 = vst.msk [vmem:[#allocation2 - $0x6] sm:$0xc0] %vm1453_vm9, %v1452_v32 }
0x13ae   :  { %1467 = dma.vmem_to_hbm [thread:$0]  %s1463_s18, 32, %s1465_s21, [#allocation3]  }
0x13af   :  { %1670 = dma.done.wait [#allocation3], 32  }
0x13b0   :  { %1671 = vsyncadd [#allocation3], 4294967264 }
0x13b1   :  { %1474 = vsyncpa [#allocation3], 1 }

// kernel: rnn_forward.3
= control target key start
LH: loop header
LB: loop body
LE: loop exit
PB: predicated region body
PF: predicated region fallthrough
CT: control target
= control target key end

     0   :  { %12 = vsyncpa [#allocation3], 0  ;;  %s2385_s0 = inlined_call_operand.vmem [shape: f32[16,64], index: 0, kind: input, shape index: {}]   ;;  %s2386_s1 = inlined_call_operand.vmem [shape: f32[16,32], index: 1, kind: input, shape index: {}]   ;;  %s2387_s2 = inlined_call_operand.vmem [shape: f32[64,256], index: 2, kind: input, shape index: {}]   ;;  %s2388_s3 = inlined_call_operand.hbm [shape: f32[2,32,128], index: 3, kind: input, shape index: {}]   ;;  %s2389_s4 = inlined_call_operand.vmem [shape: f32[1,256], index: 4, kind: input, shape index: {}]   ;;  %s2390_s5 = inlined_call_operand.hbm [shape: f32[16,64], index: 5, kind: output, shape index: {0}]   ;;  %s2391_s6 = inlined_call_operand.vmem [shape: f32[2,64], index: 6, kind: output, shape index: {1}]  }
   0x1   :  { %13 = vsyncpa [#allocation4], 0  ;;  %s24_s23 = sshll.u32 %s2388_s3, 4  ;;  %s1724_s24 = smov [#allocation2]   ;;  %s25_s23 = int_to_ptr.hbm [resolvable:$true] %s24_s23 }
   0x2   :  { %s26_s25 = sshll.u32 %s1724_s24, 4  ;;  %s1725_s26 = smov 128   ;;  %s27_s25 = int_to_ptr.vmem [resolvable:$true] %s26_s25 }
   0x3   :  { %s1726_s27 = smov 8  }
   0x4   :  { %32 = dma.hbm_to_vmem [thread:$0]  %s25_s23, 1024, %s27_s25, [#allocation3], %s1725_s26, %s1725_s26, %s1726_s27  }
   0x5   :  { %1720 = dma.done.wait [#allocation3], 1024  }
   0x6   :  { %1721 = vsyncadd [#allocation3], 4294966272  ;;  %v56_v0 = vld [vmem:[%s2387_s2 + $0x78] sm:$0xff]  ;;  %v54_v1 = vld [vmem:[%s2387_s2 + $0x68] sm:$0xff]  ;;  %v1727_v18 = vmov 0.0   ;;  %vm63_vm0 = vcmask 523264  }
   0x7   :  { %101 = vmatpush.msra.mxu1 %v56_v0  ;;  %v52_v2 = vld [vmem:[%s2387_s2 + $0x58] sm:$0xff]  ;;  %v1784_v4 = vld [vmem:[#allocation2 + $0x30] sm:$0xff]  ;;  %v50_v5 = vld [vmem:[%s2387_s2 + $0x48] sm:$0xff]  ;;  %s1729_s16 = smov 96   ;;  %s1730_s17 = smov 64   ;;  %vm129_vm10 = vcmask 261120  }
   0x8   :  { %v1782_v3 = vld [vmem:[#allocation2 + $0x38] sm:$0xff]  ;;  %v1790_v6 = vld [vmem:[#allocation2 + $0x28] sm:$0xff]  ;;  %v55_v7 = vld [vmem:[%s2387_s2 + $0x70] sm:$0xff]  ;;  %s1485_s25 = sshll.u32 %s2390_s5, 4  ;;  %s1486_s25 = int_to_ptr.hbm [resolvable:$true] %s1485_s25 }
   0x9   :  { %102 = vmatpush.msra.mxu1 %v54_v1  ;;  %166 = vmatpush.msra.mxu3 %v1782_v3  ;;  %v53_v8 = vld [vmem:[%s2387_s2 + $0x60] sm:$0xff]  ;;  %v1799_v9 = vld [vmem:[#allocation2 + $0x18] sm:$0xff]  ;;  %v1807_v12 = vld [vmem:[#allocation2 + $0x10] sm:$0xff] }
   0xa   :  { %v48_v10 = vld [vmem:[%s2387_s2 + $0x38] sm:$0xff]  ;;  %78 = vmatpush.msra.mxu0 %v55_v7  ;;  %v1804_v11 = vld [vmem:[#allocation2 + $0x20] sm:$0xff]  ;;  %145 = vmatpush.msra.mxu2 %v1799_v9  ;;  %v51_v13 = vld [vmem:[%s2387_s2 + $0x50] sm:$0xff] }
   0xb   :  { %103 = vmatpush.msra.mxu1 %v52_v2  ;;  %167 = vmatpush.msra.mxu3 %v1784_v4  ;;  %v46_v14 = vld [vmem:[%s2387_s2 + $0x28] sm:$0xff]  ;;  %v49_v16 = vld [vmem:[%s2387_s2 + $0x40] sm:$0xff]  ;;  %v44_v17 = vld [vmem:[%s2387_s2 + $0x18] sm:$0xff] }
   0xc   :  { %79 = vmatpush.msra.mxu0 %v53_v8  ;;  %146 = vmatpush.msra.mxu2 %v1807_v12  ;;  %v1817_v15 = vld [vmem:[#allocation2 + $0x8] sm:$0xff]  ;;  %v1826_v19 = vld [vmem:[#allocation2] sm:$0xff]  ;;  %v47_v20 = vld [vmem:[%s2387_s2 + $0x30] sm:$0xff] }
   0xd   :  { %104 = vmatpush.msra.mxu1 %v50_v5  ;;  %168 = vmatpush.msra.mxu3 %v1790_v6  ;;  %v42_v21 = vld [vmem:[%s2387_s2 + $0x8] sm:$0xff]  ;;  %v39_v22 = vld [vmem:[%s2385_s0] sm:$0xff]  ;;  %v43_v24 = vld [vmem:[%s2387_s2 + $0x10] sm:$0xff] }
   0xe   :  { %80 = vmatpush.msra.mxu0 %v51_v13  ;;  %147 = vmatpush.msra.mxu2 %v1817_v15  ;;  %v45_v23 = vld [vmem:[%s2387_s2 + $0x20] sm:$0xff]  ;;  %v40_v26 = vld [vmem:[%s2385_s0 + $0x8] sm:$0xff] }
   0xf   :  { %105 = vmatpush.msra.mxu1 %v48_v10  ;;  %169 = vmatpush.msra.mxu3 %v1804_v11  ;;  %v41_v25 = vld [vmem:[%s2387_s2] sm:$0xff] }
  0x10   :  { %170 = vmatmul.f32.vlgmr.msra.gmra.mxu3 %v1727_v18  ;;  %81 = vmatpush.msra.mxu0 %v49_v16  ;;  %v1890_v27 = vld [vmem:[%s2389_s4] sm:$0x3]  ;;  %s1728_s4 = smov 32  }
  0x11   :  { %106 = vmatpush.msra.mxu1 %v46_v14  ;;  %315 = vmatpush.msrb.mxu3 %v1782_v3  ;;  %v60_v28 = vperm.slane %v1890_v27, 1  ;;  %v59_v33 = vperm.slane %v1890_v27, 0 }
  0x12   :  { %148 = vmatpush.msra.mxu2 %v1826_v19  ;;  %82 = vmatpush.msra.mxu0 %v47_v20 }
  0x13   :  { %107 = vmatpush.msra.mxu1 %v44_v17  ;;  %149 = vmatmul.f32.vlgmr.msra.gmra.mxu2 %v1727_v18 }
  0x14   :  { %316 = vmatpush.msrb.mxu3 %v1784_v4  ;;  %83 = vmatpush.msra.mxu0 %v45_v23 }
  0x15   :  { %108 = vmatpush.msra.mxu1 %v42_v21  ;;  %287 = vmatpush.msrb.mxu2 %v1799_v9 }
  0x16   :  { %1504 = vmatmul.msk.f32.vlgmr.msra.gmra.mxu1 %vm63_vm0, %v39_v22  ;;  %317 = vmatpush.msrb.mxu3 %v1790_v6 }
  0x17   :  { %84 = vmatpush.msra.mxu0 %v43_v24  ;;  %651 = vmatpush.msrb.mxu1 %v1782_v3 }
  0x18   :  { %318 = vmatpush.msrb.mxu3 %v1804_v11  ;;  %288 = vmatpush.msrb.mxu2 %v1807_v12 }
  0x19   :  { %85 = vmatpush.msra.mxu0 %v41_v25  ;;  %652 = vmatpush.msrb.mxu1 %v1784_v4 }
  0x1a   :  { %483 = vmatpush.msra.mxu3 %v1782_v3  ;;  %1502 = vmatmul.msk.f32.vlgmr.msra.gmra.mxu0 %vm63_vm0, %v39_v22 }
  0x1b   :  { %289 = vmatpush.msrb.mxu2 %v1817_v15  ;;  %623 = vmatpush.msrb.mxu0 %v1799_v9 }
  0x1c   :  { %484 = vmatpush.msra.mxu3 %v1784_v4  ;;  %653 = vmatpush.msrb.mxu1 %v1790_v6 }
  0x1d   :  { %290 = vmatpush.msrb.mxu2 %v1826_v19  ;;  %624 = vmatpush.msrb.mxu0 %v1807_v12 }
  0x1e   :  { %1505 = vmatmul.msk.f32.gmra.mxu1 %vm63_vm0, %v40_v26  ;;  %485 = vmatpush.msra.mxu3 %v1790_v6 }
  0x1f   :  { %455 = vmatpush.msra.mxu2 %v1799_v9  ;;  %625 = vmatpush.msrb.mxu0 %v1817_v15 }
  0x20   :  { %486 = vmatpush.msra.mxu3 %v1804_v11  ;;  %654 = vmatpush.msrb.mxu1 %v1804_v11 }
  0x21   :  { %456 = vmatpush.msra.mxu2 %v1807_v12  ;;  %626 = vmatpush.msrb.mxu0 %v1826_v19 }
  0x22   :  { %1503 = vmatmul.msk.f32.gmra.mxu0 %vm63_vm0, %v40_v26  ;;  %977 = vmatpush.msra.mxu1 %v1782_v3 }
  0x23   :  { %457 = vmatpush.msra.mxu2 %v1817_v15  ;;  %949 = vmatpush.msra.mxu0 %v1799_v9 }
  0x24   :  { %978 = vmatpush.msra.mxu1 %v1784_v4 }
  0x25   :  { %458 = vmatpush.msra.mxu2 %v1826_v19  ;;  %950 = vmatpush.msra.mxu0 %v1807_v12 }
  0x26   :  { %979 = vmatpush.msra.mxu1 %v1790_v6 }
  0x27   :  { %951 = vmatpush.msra.mxu0 %v1817_v15 }
  0x28   :  { %980 = vmatpush.msra.mxu1 %v1804_v11 }
  0x29   :  { %952 = vmatpush.msra.mxu0 %v1826_v19 }
  0x93   :  { %v110_v29 = vpop.f32.mrf.mxu1  ;;  %v171_v31 = vpop.f32.mrf.mxu3 }
  0x94   :  { %v1893_v30 = vadd.f32 %v110_v29, %v60_v28  ;;  %v175_v32 = vrot.slane %v171_v31, 2  ;;  %v1917_v31 = vld [vmem:[%s2386_s1 + $0x8] sm:$0xff] }
  0x95   :  { %vm119_vm9 = vcmp.gt.f32.partialorder %v1917_v31, 0.0 }
  0x96   :  { %v150_v39 = vpop.f32.mrf.mxu2 }
  0x97   :  { %v87_v35 = vpop.f32.mrf.mxu0 }
  0x98   :  { %v1901_v38 = vadd.f32 %v87_v35, %v59_v33 }
  0x9a   :  { %v153_v40 = vadd.f32 %v150_v39, %v1901_v38 }
  0x9b   :  { %v113_v34 = vpop.f32.mrf.mxu1 }
  0x9c   :  { %v1896_v36 = vadd.f32 %v113_v34, %v60_v28  ;;  %v1506_v44 = vmul.f32 -1.442695, %v153_v40 }
  0x9e   :  { %v177_v37 = vadd.f32 %v175_v32, %v1896_v36 }
  0xa0   :  { %1544 = vtanh.f32 %v177_v37  ;;  %v1507_v43 = vmul.f32 -1.442695, %v177_v37  ;;  %v1928_v37 = vld [vmem:[%s2386_s1] sm:$0xff]  ;;  %s1731_s1 = smov [#allocation5]  }
  0xa1   :  { %1546 = vtanh.f32 %v153_v40  ;;  %vm118_vm11 = vcmp.gt.f32.partialorder %v1928_v37, 0.0  ;;  %s1483_s22 = sshll.u32 %s1731_s1, 4  ;;  %s1484_s22 = int_to_ptr.vmem [resolvable:$true] %s1483_s22 }
  0xa2   :  { %1548 = vpow2.f32 %v1507_v43 }
  0xa3   :  { %1550 = vpow2.f32 %v1506_v44 }
  0xa6   :  { %v1545_v41 = vpop.eup %1544 }
  0xa7   :  { %237 = vrot.lane.b32.xlu0 %v1545_v41, %s1728_s4  ;;  %v1547_v42 = vpop.eup %1546 }
  0xa8   :  { %v1549_v45 = vpop.eup %1548 }
  0xa9   :  { %v218_v46 = vadd.f32 1.0, %v1549_v45  ;;  %v1551_v47 = vpop.eup %1550 }
  0xaa   :  { %v181_v48 = vadd.f32 1.0, %v1551_v47 }
  0xab   :  { %1552 = vrcp.f32 %v218_v46  ;;  %v230_v57 = vand.u32 2147483648, %v218_v46  ;;  %vm224_vm2 = vweird.f32 %v218_v46  ;;  %v228_v58 = vand.u32 2147483647, %v218_v46 }
  0xac   :  { %1554 = vrcp.f32 %v181_v48  ;;  %vm187_vm4 = vweird.f32 %v181_v48  ;;  %v193_v62 = vand.u32 2147483648, %v181_v48  ;;  %v191_v0 = vand.u32 2147483647, %v181_v48 }
  0xad   :  { %v231_v61 = vor.u32 1.1754944e-38, %v230_v57  ;;  %vm229_vm6 = vcmp.eq.f32.partialorder %v228_v58, 8.507059e+37 }
  0xae   :  { %v194_v7 = vor.u32 1.1754944e-38, %v193_v62  ;;  %vm192_vm8 = vcmp.eq.f32.partialorder %v191_v0, 8.507059e+37 }
  0xaf   :  { %200 = vrot.lane.b32.xlu0 %v1547_v42, %s1728_s4 }
  0xb1   :  { %v1553_v49 = vpop.eup %1552 }
  0xb2   :  { %v220_v50 = vmul.f32 %v1553_v49, %v218_v46  ;;  %v1555_v51 = vpop.eup %1554  ;;  %vm225_vm1 = vweird.f32 %v1553_v49 }
  0xb3   :  { %v183_v53 = vmul.f32 %v1555_v51, %v181_v48  ;;  %vm226_vm3 = vmor %vm224_vm2, %vm225_vm1  ;;  %vm188_vm5 = vweird.f32 %v1555_v51 }
  0xb4   :  { %v221_v52 = vsub.f32 1.0, %v220_v50  ;;  %vm189_vm7 = vmor %vm187_vm4, %vm188_vm5 }
  0xb5   :  { %v184_v55 = vsub.f32 1.0, %v183_v53 }
  0xb6   :  { %v222_v54 = vmul.f32 %v1553_v49, %v221_v52 }
  0xb7   :  { %v185_v59 = vmul.f32 %v1555_v51, %v184_v55 }
  0xb8   :  { %v223_v56 = vadd.f32 %v1553_v49, %v222_v54 }
  0xb9   :  { %v186_v63 = vadd.f32 %v1555_v51, %v185_v59 }
  0xba   :  { %v227_v60 = vsel %vm226_vm3, %v1553_v49, %v223_v56 }
  0xbb   :  { %v232_v2 = vsel %vm229_vm6, %v231_v61, %v227_v60  ;;  %v190_v8 = vsel %vm189_vm7, %v1555_v51, %v186_v63 }
  0xbc   :  { %v195_v10 = vsel %vm192_vm8, %v194_v7, %v190_v8  ;;  %v235_v16 = vmul.f32 0.0, %v232_v2 }
  0xbd   :  { %v198_v20 = vmul.f32 0.0, %v195_v10 }
 0x119   :  { %v238_v1 = vpop.permute.xlu0 %237 }
 0x11a   :  { %v240_v5 = vmul.f32 %v238_v1, %v232_v2 }
 0x11c   :  { %242 = vrot.lane.b32.xlu1 %v240_v5, %s1728_s4 }
 0x121   :  { %v201_v13 = vpop.permute.xlu0 %200 }
 0x122   :  { %v203_v14 = vmul.f32 %v201_v13, %v195_v10 }
 0x124   :  { %205 = vrot.lane.b32.xlu1 %v203_v14, %s1728_s4 }
 0x18e   :  { %v243_v17 = vpop.permute.xlu1 %242 }
 0x18f   :  { %v245_v18 = vadd.f32 %v243_v17, %v235_v16 }
 0x191   :  { %1556 = vtanh.f32 %v245_v18 }
 0x196   :  { %v206_v21 = vpop.permute.xlu1 %205 }
 0x197   :  { %v1557_v22 = vpop.eup %1556  ;;  %v208_v23 = vadd.f32 %v206_v21, %v198_v20 }
 0x198   :  { %248 = vrot.lane.b32.xlu2 %v1557_v22, %s1728_s4 }
 0x199   :  { %1558 = vtanh.f32 %v208_v23 }
 0x19f   :  { %v1559_v24 = vpop.eup %1558 }
 0x1a0   :  { %211 = vrot.lane.b32.xlu2 %v1559_v24, %s1728_s4 }
 0x1a8   :  { %268 = vrot.lane.b32.xlu2 %v245_v18, %s1729_s16 }
 0x1f2   :  { %v249_v25 = vpop.permute.xlu2 %248 }
 0x1f3   :  { %v251_v26 = vmul.f32 %v249_v25, %v232_v2 }
 0x1f5   :  { %263 = vrot.lane.b32.xlu0 %v251_v26, %s1730_s17 }
 0x1fa   :  { %v212_v28 = vpop.permute.xlu2 %211 }
 0x1fb   :  { %v214_v29 = vmul.f32 %v212_v28, %v195_v10 }
 0x1fd   :  { %253 = vrot.lane.b32.xlu1 %v214_v29, %s1730_s17 }
 0x202   :  { %v269_v48 = vpop.permute.xlu2 %268 }
 0x203   :  { %v1951_v49 = vsel %vm119_vm9, %v269_v48, 0.0 }
 0x204   :  { %v390_v51 = vrot.slane %v1951_v49, 2 }
 0x205   :  { %258 = vrot.lane.b32.xlu1 %v208_v23, %s1729_s16 }
 0x267   :  { %v264_v32 = vpop.permute.xlu0 %263 }
 0x268   :  { %v1922_v34 = vsel %vm119_vm9, %v264_v32, 0.0 }
 0x269   :  { %v300_v35 = vrot.slane %v1922_v34, 6 }
 0x26b   :  { %1509 = vmatmul.msk.f32.vlgmr.msrb.gmra.mxu3 %vm129_vm10, %v300_v35 }
 0x26c   :  { %811 = vmatpush.msrb.mxu3 %v1782_v3 }
 0x26e   :  { %812 = vmatpush.msrb.mxu3 %v1784_v4 }
 0x26f   :  { %v254_v39 = vpop.permute.xlu1 %253 }
 0x270   :  { %v1936_v40 = vsel %vm118_vm11, %v254_v39, 0.0  ;;  %813 = vmatpush.msrb.mxu3 %v1790_v6 }
 0x271   :  { %1508 = vmatmul.msk.f32.vlgmr.msrb.gmra.mxu2 %vm129_vm10, %v1936_v40 }
 0x272   :  { %787 = vmatpush.msrb.mxu2 %v1799_v9  ;;  %814 = vmatpush.msrb.mxu3 %v1804_v11 }
 0x274   :  { %788 = vmatpush.msrb.mxu2 %v1807_v12 }
 0x276   :  { %789 = vmatpush.msrb.mxu2 %v1817_v15 }
 0x277   :  { %v259_v52 = vpop.permute.xlu1 %258 }
 0x278   :  { %790 = vmatpush.msrb.mxu2 %v1826_v19  ;;  %v1960_v53 = vsel %vm118_vm11, %v259_v52, 0.0 }
 0x279   :  { %v348_v54 = vrot.slane %v1960_v53, 6 }
 0x2ee   :  { %v320_v41 = vpop.f32.mrf.mxu3 }
 0x2ef   :  { %v324_v42 = vrot.slane %v320_v41, 4 }
 0x2f1   :  { %v326_v43 = vadd.f32 %v324_v42, %v1896_v36 }
 0x2f3   :  { %1560 = vtanh.f32 %v326_v43  ;;  %v1511_v58 = vmul.f32 -1.442695, %v326_v43 }
 0x2f4   :  { %v292_v44 = vpop.f32.mrf.mxu2 }
 0x2f5   :  { %v296_v45 = vrot.slane %v292_v44, 6 }
 0x2f7   :  { %v298_v46 = vadd.f32 %v296_v45, %v1901_v38 }
 0x2f9   :  { %v1561_v47 = vpop.eup %1560  ;;  %1562 = vtanh.f32 %v298_v46  ;;  %v1510_v55 = vmul.f32 -1.442695, %v298_v46 }
 0x2fa   :  { %396 = vrot.lane.b32.xlu0 %v1561_v47, %s1728_s4 }
 0x2fb   :  { %1564 = vpow2.f32 %v1510_v55 }
 0x2ff   :  { %v1563_v50 = vpop.eup %1562 }
 0x300   :  { %354 = vrot.lane.b32.xlu2 %v1563_v50, %s1728_s4 }
 0x301   :  { %v1565_v56 = vpop.eup %1564 }
 0x302   :  { %391 = vrot.lane.b32.xlu0 %v390_v51, %s1728_s4  ;;  %v330_v57 = vadd.f32 1.0, %v1565_v56  ;;  %v415_v56 = vrot.slane %v1936_v40, 6 }
 0x304   :  { %1566 = vrcp.f32 %v330_v57  ;;  %v342_v2 = vand.u32 2147483648, %v330_v57  ;;  %vm336_vm13 = vweird.f32 %v330_v57  ;;  %v340_v5 = vand.u32 2147483647, %v330_v57 }
 0x305   :  { %1568 = vpow2.f32 %v1511_v58 }
 0x306   :  { %v343_v10 = vor.u32 1.1754944e-38, %v342_v2  ;;  %vm341_vm15 = vcmp.eq.f32.partialorder %v340_v5, 8.507059e+37 }
 0x308   :  { %349 = vrot.lane.b32.xlu2 %v348_v54, %s1728_s4 }
 0x30a   :  { %v1567_v59 = vpop.eup %1566 }
 0x30b   :  { %v332_v60 = vmul.f32 %v1567_v59, %v330_v57  ;;  %v1569_v61 = vpop.eup %1568  ;;  %vm337_vm12 = vweird.f32 %v1567_v59 }
 0x30c   :  { %v372_v63 = vadd.f32 1.0, %v1569_v61  ;;  %vm338_vm14 = vmor %vm336_vm13, %vm337_vm12 }
 0x30d   :  { %v333_v62 = vsub.f32 1.0, %v332_v60  ;;  %v428_v60 = vrot.slane %v1922_v34, 2 }
 0x30e   :  { %1570 = vrcp.f32 %v372_v63  ;;  %v384_v22 = vand.u32 2147483648, %v372_v63  ;;  %vm378_vm2 = vweird.f32 %v372_v63  ;;  %v382_v23 = vand.u32 2147483647, %v372_v63 }
 0x30f   :  { %v334_v0 = vmul.f32 %v1567_v59, %v333_v62 }
 0x310   :  { %v385_v25 = vor.u32 1.1754944e-38, %v384_v22  ;;  %vm383_vm4 = vcmp.eq.f32.partialorder %v382_v23, 8.507059e+37 }
 0x311   :  { %v335_v1 = vadd.f32 %v1567_v59, %v334_v0 }
 0x313   :  { %v339_v8 = vsel %vm338_vm14, %v1567_v59, %v335_v1 }
 0x314   :  { %v1571_v7 = vpop.eup %1570  ;;  %v344_v14 = vsel %vm341_vm15, %v343_v10, %v339_v8 }
 0x315   :  { %v374_v13 = vmul.f32 %v1571_v7, %v372_v63  ;;  %vm379_vm1 = vweird.f32 %v1571_v7 }
 0x316   :  { %vm380_vm3 = vmor %vm378_vm2, %vm379_vm1 }
 0x317   :  { %v375_v18 = vsub.f32 1.0, %v374_v13 }
 0x319   :  { %v376_v20 = vmul.f32 %v1571_v7, %v375_v18 }
 0x31b   :  { %v377_v21 = vadd.f32 %v1571_v7, %v376_v20 }
 0x31d   :  { %v381_v24 = vsel %vm380_vm3, %v1571_v7, %v377_v21 }
 0x31e   :  { %v386_v28 = vsel %vm383_vm4, %v385_v25, %v381_v24 }
 0x35a   :  { %v355_v16 = vpop.permute.xlu2 %354 }
 0x35b   :  { %v357_v17 = vmul.f32 %v355_v16, %v344_v14 }
 0x35d   :  { %359 = vrot.lane.b32.xlu0 %v357_v17, %s1728_s4 }
 0x362   :  { %v350_v35 = vpop.permute.xlu2 %349 }
 0x363   :  { %v352_v39 = vmul.f32 %v350_v35, %v344_v14 }
 0x36c   :  { %v397_v26 = vpop.permute.xlu0 %396 }
 0x36d   :  { %v399_v29 = vmul.f32 %v397_v26, %v386_v28 }
 0x36f   :  { %401 = vrot.lane.b32.xlu1 %v399_v29, %s1728_s4 }
 0x374   :  { %v392_v32 = vpop.permute.xlu0 %391 }
 0x375   :  { %v394_v44 = vmul.f32 %v392_v32, %v386_v28 }
 0x3cf   :  { %v360_v41 = vpop.permute.xlu0 %359 }
 0x3d0   :  { %v362_v42 = vadd.f32 %v360_v41, %v352_v39 }
 0x3d2   :  { %1572 = vtanh.f32 %v362_v42 }
 0x3d8   :  { %v1573_v43 = vpop.eup %1572 }
 0x3d9   :  { %365 = vrot.lane.b32.xlu2 %v1573_v43, %s1728_s4 }
 0x3e1   :  { %v402_v45 = vpop.permute.xlu1 %401 }
 0x3e2   :  { %v404_v46 = vadd.f32 %v402_v45, %v394_v44 }
 0x3e4   :  { %1574 = vtanh.f32 %v404_v46  ;;  %432 = vrot.lane.b32.xlu2 %v404_v46, %s1729_s16 }
 0x3ea   :  { %v1575_v47 = vpop.eup %1574 }
 0x3eb   :  { %407 = vrot.lane.b32.xlu1 %v1575_v47, %s1728_s4 }
 0x433   :  { %v366_v48 = vpop.permute.xlu2 %365 }
 0x434   :  { %v368_v50 = vmul.f32 %v366_v48, %v344_v14 }
 0x436   :  { %412 = vrot.lane.b32.xlu1 %v368_v50, %s1730_s17 }
 0x43e   :  { %419 = vrot.lane.b32.xlu1 %v362_v42, %s1729_s16  ;;  %v433_v18 = vpop.permute.xlu2 %432 }
 0x43f   :  { %v2020_v53 = vsel %vm119_vm9, %v433_v18, %v390_v51 }
 0x440   :  { %v558_v20 = vrot.slane %v2020_v53, 2 }
 0x45d   :  { %v408_v52 = vpop.permute.xlu1 %407 }
 0x45e   :  { %v410_v55 = vmul.f32 %v408_v52, %v386_v28 }
 0x460   :  { %425 = vrot.lane.b32.xlu0 %v410_v55, %s1730_s17 }
 0x4a8   :  { %v1975_v57 = vpop.permute.xlu1 %412 }
 0x4a9   :  { %v1980_v58 = vsel %vm118_vm11, %v1975_v57, %v415_v56 }
 0x4aa   :  { %v440_v59 = vrot.slane %v1980_v58, 2 }
 0x4ac   :  { %1512 = vmatmul.msk.f32.vlgmr.msra.gmra.mxu2 %vm129_vm10, %v440_v59 }
 0x4ad   :  { %1117 = vmatpush.msra.mxu2 %v1799_v9 }
 0x4af   :  { %1118 = vmatpush.msra.mxu2 %v1807_v12 }
 0x4b0   :  { %v420_v7 = vpop.permute.xlu1 %419 }
 0x4b1   :  { %1119 = vmatpush.msra.mxu2 %v1817_v15  ;;  %v2008_v8 = vsel %vm118_vm11, %v420_v7, %v348_v54 }
 0x4b2   :  { %v516_v10 = vrot.slane %v2008_v8, 6 }
 0x4b3   :  { %1120 = vmatpush.msra.mxu2 %v1826_v19 }
 0x4d2   :  { %v1989_v61 = vpop.permute.xlu0 %425 }
 0x4d3   :  { %v1994_v62 = vsel %vm119_vm9, %v1989_v61, %v428_v60 }
 0x4d4   :  { %v468_v63 = vrot.slane %v1994_v62, 4 }
 0x4d6   :  { %1513 = vmatmul.msk.f32.vlgmr.msra.gmra.mxu3 %vm129_vm10, %v468_v63 }
 0x4d7   :  { %1145 = vmatpush.msra.mxu3 %v1782_v3 }
 0x4d9   :  { %1146 = vmatpush.msra.mxu3 %v1784_v4 }
 0x4db   :  { %1147 = vmatpush.msra.mxu3 %v1790_v6 }
 0x4dd   :  { %1148 = vmatpush.msra.mxu3 %v1804_v11 }
 0x52f   :  { %v460_v0 = vpop.f32.mrf.mxu2 }
 0x530   :  { %v464_v1 = vrot.slane %v460_v0, 4 }
 0x532   :  { %v466_v2 = vadd.f32 %v464_v1, %v1901_v38 }
 0x534   :  { %1576 = vtanh.f32 %v466_v2  ;;  %v1514_v54 = vmul.f32 -1.442695, %v466_v2 }
 0x53a   :  { %v1577_v5 = vpop.eup %1576 }
 0x53b   :  { %522 = vrot.lane.b32.xlu2 %v1577_v5, %s1728_s4 }
 0x543   :  { %517 = vrot.lane.b32.xlu2 %v516_v10, %s1728_s4 }
 0x559   :  { %v488_v13 = vpop.f32.mrf.mxu3 }
 0x55a   :  { %v492_v14 = vrot.slane %v488_v13, 6 }
 0x55c   :  { %v494_v16 = vadd.f32 %v492_v14, %v1896_v36 }
 0x55e   :  { %1578 = vtanh.f32 %v494_v16  ;;  %v1515_v42 = vmul.f32 -1.442695, %v494_v16 }
 0x55f   :  { %1580 = vpow2.f32 %v1514_v54 }
 0x564   :  { %v1579_v17 = vpop.eup %1578 }
 0x565   :  { %564 = vrot.lane.b32.xlu0 %v1579_v17, %s1728_s4  ;;  %v1581_v21 = vpop.eup %1580 }
 0x566   :  { %v498_v22 = vadd.f32 1.0, %v1581_v21 }
 0x568   :  { %1582 = vrcp.f32 %v498_v22  ;;  %v510_v28 = vand.u32 2147483648, %v498_v22  ;;  %vm504_vm6 = vweird.f32 %v498_v22  ;;  %v508_v51 = vand.u32 2147483647, %v498_v22 }
 0x569   :  { %1584 = vpow2.f32 %v1515_v42 }
 0x56a   :  { %v511_v32 = vor.u32 1.1754944e-38, %v510_v28  ;;  %vm509_vm8 = vcmp.eq.f32.partialorder %v508_v51, 8.507059e+37  ;;  %v583_v28 = vrot.slane %v1980_v58, 6 }
 0x56d   :  { %559 = vrot.lane.b32.xlu0 %v558_v20, %s1728_s4 }
 0x56e   :  { %v1583_v23 = vpop.eup %1582 }
 0x56f   :  { %v500_v24 = vmul.f32 %v1583_v23, %v498_v22  ;;  %vm505_vm5 = vweird.f32 %v1583_v23  ;;  %v1585_v43 = vpop.eup %1584 }
 0x570   :  { %vm506_vm7 = vmor %vm504_vm6, %vm505_vm5  ;;  %v540_v44 = vadd.f32 1.0, %v1585_v43 }
 0x571   :  { %v501_v25 = vsub.f32 1.0, %v500_v24 }
 0x572   :  { %1586 = vrcp.f32 %v540_v44  ;;  %v552_v52 = vand.u32 2147483648, %v540_v44  ;;  %vm546_vm13 = vweird.f32 %v540_v44  ;;  %v550_v55 = vand.u32 2147483647, %v540_v44 }
 0x573   :  { %v502_v26 = vmul.f32 %v1583_v23, %v501_v25 }
 0x574   :  { %v553_v59 = vor.u32 1.1754944e-38, %v552_v52  ;;  %vm551_vm15 = vcmp.eq.f32.partialorder %v550_v55, 8.507059e+37 }
 0x575   :  { %v503_v49 = vadd.f32 %v1583_v23, %v502_v26 }
 0x577   :  { %v507_v29 = vsel %vm506_vm7, %v1583_v23, %v503_v49 }
 0x578   :  { %v512_v35 = vsel %vm509_vm8, %v511_v32, %v507_v29  ;;  %v1587_v45 = vpop.eup %1586 }
 0x579   :  { %v542_v46 = vmul.f32 %v1587_v45, %v540_v44  ;;  %vm547_vm12 = vweird.f32 %v1587_v45 }
 0x57a   :  { %vm548_vm14 = vmor %vm546_vm13, %vm547_vm12 }
 0x57b   :  { %v543_v47 = vsub.f32 1.0, %v542_v46 }
 0x57d   :  { %v544_v48 = vmul.f32 %v1587_v45, %v543_v47 }
 0x57f   :  { %v545_v50 = vadd.f32 %v1587_v45, %v544_v48 }
 0x581   :  { %v549_v56 = vsel %vm548_vm14, %v1587_v45, %v545_v50 }
 0x582   :  { %v554_v63 = vsel %vm551_vm15, %v553_v59, %v549_v56 }
 0x595   :  { %v523_v39 = vpop.permute.xlu2 %522 }
 0x596   :  { %v525_v41 = vmul.f32 %v523_v39, %v512_v35 }
 0x598   :  { %527 = vrot.lane.b32.xlu0 %v525_v41, %s1728_s4 }
 0x59d   :  { %v518_v2 = vpop.permute.xlu2 %517 }
 0x59e   :  { %v520_v5 = vmul.f32 %v518_v2, %v512_v35 }
 0x5d7   :  { %v565_v60 = vpop.permute.xlu0 %564 }
 0x5d8   :  { %v567_v0 = vmul.f32 %v565_v60, %v554_v63 }
 0x5da   :  { %569 = vrot.lane.b32.xlu1 %v567_v0, %s1728_s4 }
 0x5df   :  { %v560_v1 = vpop.permute.xlu0 %559 }
 0x5e0   :  { %v562_v16 = vmul.f32 %v560_v1, %v554_v63 }
 0x60a   :  { %v528_v7 = vpop.permute.xlu0 %527 }
 0x60b   :  { %v530_v13 = vadd.f32 %v528_v7, %v520_v5 }
 0x60d   :  { %1588 = vtanh.f32 %v530_v13 }
 0x613   :  { %v1589_v14 = vpop.eup %1588 }
 0x614   :  { %533 = vrot.lane.b32.xlu2 %v1589_v14, %s1728_s4 }
 0x64c   :  { %v570_v17 = vpop.permute.xlu1 %569 }
 0x64d   :  { %v572_v18 = vadd.f32 %v570_v17, %v562_v16 }
 0x64f   :  { %1590 = vtanh.f32 %v572_v18  ;;  %600 = vrot.lane.b32.xlu2 %v572_v18, %s1729_s16 }
 0x655   :  { %v1591_v54 = vpop.eup %1590 }
 0x656   :  { %575 = vrot.lane.b32.xlu1 %v1591_v54, %s1728_s4 }
 0x66e   :  { %v534_v21 = vpop.permute.xlu2 %533 }
 0x66f   :  { %v536_v22 = vmul.f32 %v534_v21, %v512_v35 }
 0x671   :  { %580 = vrot.lane.b32.xlu1 %v536_v22, %s1730_s17 }
 0x679   :  { %587 = vrot.lane.b32.xlu1 %v530_v13, %s1729_s16 }
 0x6a9   :  { %v601_v23 = vpop.permute.xlu2 %600 }
 0x6aa   :  { %v2037_v24 = vsel %vm119_vm9, %v601_v23, %v558_v20 }
 0x6ab   :  { %v723_v25 = vrot.slane %v2037_v24, 2 }
 0x6ad   :  { %724 = vrot.lane.b32.xlu2 %v723_v25, %s1728_s4 }
 0x6c8   :  { %v576_v26 = vpop.permute.xlu1 %575 }
 0x6c9   :  { %v578_v49 = vmul.f32 %v576_v26, %v554_v63 }
 0x6cb   :  { %593 = vrot.lane.b32.xlu0 %v578_v49, %s1730_s17 }
 0x6e3   :  { %v2045_v51 = vpop.permute.xlu1 %580 }
 0x6e4   :  { %v2050_v53 = vsel %vm118_vm11, %v2045_v51, %v583_v28 }
 0x6e5   :  { %v608_v20 = vrot.slane %v2050_v53, 4 }
 0x6e7   :  { %1516 = vmatmul.msk.f32.vlgmr.msrb.gmra.mxu0 %vm129_vm10, %v608_v20 }
 0x6e8   :  { %1285 = vmatpush.msrb.mxu0 %v1799_v9  ;;  %v596_v9 = vrot.slane %v1994_v62, 2 }
 0x6ea   :  { %1286 = vmatpush.msrb.mxu0 %v1807_v12 }
 0x6eb   :  { %v588_v29 = vpop.permute.xlu1 %587 }
 0x6ec   :  { %v2060_v58 = vsel %vm118_vm11, %v588_v29, %v516_v10  ;;  %1287 = vmatpush.msrb.mxu0 %v1817_v15  ;;  %v2084_v15 = vpop.f32.mrf.mxu0 }
 0x6ed   :  { %v681_v32 = vrot.slane %v2060_v58, 6 }
 0x6ee   :  { %1288 = vmatpush.msrb.mxu0 %v1826_v19 }
 0x6ef   :  { %682 = vrot.lane.b32.xlu2 %v681_v32, %s1728_s4 }
 0x707   :  { %v725_v22 = vpop.permute.xlu2 %724 }
 0x73d   :  { %v2069_v12 = vpop.permute.xlu0 %593 }
 0x73e   :  { %v2074_v8 = vsel %vm119_vm9, %v2069_v12, %v596_v9 }
 0x73f   :  { %v636_v10 = vrot.slane %v2074_v8, 2 }
 0x741   :  { %1517 = vmatmul.msk.f32.vlgmr.msrb.gmra.mxu1 %vm129_vm10, %v636_v10 }
 0x742   :  { %1313 = vmatpush.msrb.mxu1 %v1782_v3 }
 0x744   :  { %1314 = vmatpush.msrb.mxu1 %v1784_v4 }
 0x746   :  { %1315 = vmatpush.msrb.mxu1 %v1790_v6 }
 0x748   :  { %1316 = vmatpush.msrb.mxu1 %v1804_v11 }
 0x749   :  { %v683_v28 = vpop.permute.xlu2 %682 }
 0x764   :  { %v628_v19 = vpop.f32.mrf.mxu0 }
 0x765   :  { %v632_v39 = vrot.slane %v628_v19, 2 }
 0x767   :  { %v634_v41 = vadd.f32 %v632_v39, %v1901_v38 }
 0x769   :  { %v1518_v6 = vmul.f32 -1.442695, %v634_v41 }
 0x7be   :  { %v656_v62 = vpop.f32.mrf.mxu1 }
 0x7bf   :  { %v659_v35 = vadd.f32 %v656_v62, %v1896_v36 }
 0x7c1   :  { %1592 = vtanh.f32 %v659_v35  ;;  %v1519_v4 = vmul.f32 -1.442695, %v659_v35 }
 0x7c2   :  { %1594 = vtanh.f32 %v634_v41 }
 0x7c3   :  { %1596 = vpow2.f32 %v1519_v4 }
 0x7c4   :  { %1598 = vpow2.f32 %v1518_v6 }
 0x7c7   :  { %v1593_v42 = vpop.eup %1592 }
 0x7c8   :  { %729 = vrot.lane.b32.xlu0 %v1593_v42, %s1728_s4  ;;  %v1595_v3 = vpop.eup %1594 }
 0x7c9   :  { %v1597_v11 = vpop.eup %1596 }
 0x7ca   :  { %v705_v43 = vadd.f32 1.0, %v1597_v11  ;;  %v1599_v44 = vpop.eup %1598  ;;  %v748_v11 = vrot.slane %v2050_v53, 6 }
 0x7cb   :  { %v663_v36 = vadd.f32 1.0, %v1599_v44 }
 0x7cc   :  { %1600 = vrcp.f32 %v705_v43  ;;  %v717_v56 = vand.u32 2147483648, %v705_v43  ;;  %vm711_vm2 = vweird.f32 %v705_v43  ;;  %v715_v59 = vand.u32 2147483647, %v705_v43 }
 0x7cd   :  { %1602 = vrcp.f32 %v663_v36  ;;  %v675_v13 = vand.u32 2147483648, %v663_v36  ;;  %vm669_vm6 = vweird.f32 %v663_v36  ;;  %v673_v14 = vand.u32 2147483647, %v663_v36 }
 0x7ce   :  { %v718_v0 = vor.u32 1.1754944e-38, %v717_v56  ;;  %vm716_vm4 = vcmp.eq.f32.partialorder %v715_v59, 8.507059e+37 }
 0x7cf   :  { %v676_v17 = vor.u32 1.1754944e-38, %v675_v13  ;;  %vm674_vm8 = vcmp.eq.f32.partialorder %v673_v14, 8.507059e+37 }
 0x7d0   :  { %687 = vrot.lane.b32.xlu0 %v1595_v3, %s1728_s4 }
 0x7d2   :  { %v1601_v45 = vpop.eup %1600 }
 0x7d3   :  { %v707_v46 = vmul.f32 %v1601_v45, %v705_v43  ;;  %v1603_v47 = vpop.eup %1602  ;;  %vm712_vm1 = vweird.f32 %v1601_v45 }
 0x7d4   :  { %v665_v50 = vmul.f32 %v1603_v47, %v663_v36  ;;  %vm713_vm3 = vmor %vm711_vm2, %vm712_vm1  ;;  %vm670_vm5 = vweird.f32 %v1603_v47 }
 0x7d5   :  { %v708_v38 = vsub.f32 1.0, %v707_v46  ;;  %vm671_vm7 = vmor %vm669_vm6, %vm670_vm5 }
 0x7d6   :  { %v666_v55 = vsub.f32 1.0, %v665_v50 }
 0x7d7   :  { %v709_v48 = vmul.f32 %v1601_v45, %v708_v38 }
 0x7d8   :  { %v667_v63 = vmul.f32 %v1603_v47, %v666_v55 }
 0x7d9   :  { %v710_v52 = vadd.f32 %v1601_v45, %v709_v48  ;;  %v2145_v48 = vadd.f32 %v2084_v15, %v59_v33 }
 0x7da   :  { %v668_v7 = vadd.f32 %v1603_v47, %v667_v63 }
 0x7db   :  { %v714_v60 = vsel %vm713_vm3, %v1601_v45, %v710_v52 }
 0x7dc   :  { %v719_v2 = vsel %vm716_vm4, %v718_v0, %v714_v60  ;;  %v672_v16 = vsel %vm671_vm7, %v1603_v47, %v668_v7 }
 0x7dd   :  { %v677_v54 = vsel %vm674_vm8, %v676_v17, %v672_v16  ;;  %v727_v23 = vmul.f32 %v725_v22, %v719_v2 }
 0x7de   :  { %v685_v20 = vmul.f32 %v683_v28, %v677_v54 }
 0x83a   :  { %v730_v1 = vpop.permute.xlu0 %729 }
 0x83b   :  { %v732_v5 = vmul.f32 %v730_v1, %v719_v2 }
 0x83d   :  { %734 = vrot.lane.b32.xlu1 %v732_v5, %s1728_s4 }
 0x842   :  { %v688_v18 = vpop.permute.xlu0 %687 }
 0x843   :  { %v690_v21 = vmul.f32 %v688_v18, %v677_v54 }
 0x845   :  { %692 = vrot.lane.b32.xlu0 %v690_v21, %s1728_s4 }
 0x8af   :  { %v735_v26 = vpop.permute.xlu1 %734 }
 0x8b0   :  { %v737_v49 = vadd.f32 %v735_v26, %v727_v23 }
 0x8b2   :  { %1604 = vtanh.f32 %v737_v49 }
 0x8b7   :  { %v693_v29 = vpop.permute.xlu0 %692 }
 0x8b8   :  { %v1605_v9 = vpop.eup %1604  ;;  %v695_v19 = vadd.f32 %v693_v29, %v685_v20 }
 0x8b9   :  { %740 = vrot.lane.b32.xlu1 %v1605_v9, %s1728_s4 }
 0x8ba   :  { %1606 = vtanh.f32 %v695_v19 }
 0x8c0   :  { %v1607_v62 = vpop.eup %1606 }
 0x8c1   :  { %698 = vrot.lane.b32.xlu2 %v1607_v62, %s1728_s4 }
 0x8c9   :  { %764 = vrot.lane.b32.xlu2 %v737_v49, %s1729_s16 }
 0x91b   :  { %v699_v35 = vpop.permute.xlu2 %698 }
 0x91c   :  { %v701_v39 = vmul.f32 %v699_v35, %v677_v54 }
 0x91e   :  { %745 = vrot.lane.b32.xlu1 %v701_v39, %s1730_s17 }
 0x923   :  { %v765_v41 = vpop.permute.xlu2 %764 }
 0x924   :  { %v2100_v42 = vsel %vm119_vm9, %v765_v41, %v723_v25 }
 0x925   :  { %v886_v3 = vrot.slane %v2100_v42, 2 }
 0x926   :  { %752 = vrot.lane.b32.xlu1 %v695_v19, %s1729_s16 }
 0x927   :  { %887 = vrot.lane.b32.xlu2 %v886_v3, %s1728_s4 }
 0x92b   :  { %v741_v4 = vpop.permute.xlu1 %740 }
 0x92c   :  { %v743_v6 = vmul.f32 %v741_v4, %v719_v2 }
 0x92e   :  { %758 = vrot.lane.b32.xlu0 %v743_v6, %s1730_s17 }
 0x981   :  { %v888_v62 = vpop.permute.xlu2 %887 }
 0x990   :  { %v2109_v43 = vpop.permute.xlu1 %745 }
 0x991   :  { %v2114_v24 = vsel %vm118_vm11, %v2109_v43, %v748_v11 }
 0x992   :  { %v772_v25 = vrot.slane %v2114_v24, 6 }
 0x994   :  { %1520 = vmatmul.msk.f32.vlgmr.msrb.gmra.mxu2 %vm129_vm10, %v772_v25 }
 0x998   :  { %v753_v44 = vpop.permute.xlu1 %752 }
 0x999   :  { %v2124_v36 = vsel %vm118_vm11, %v753_v44, %v681_v32 }
 0x99a   :  { %v844_v53 = vrot.slane %v2124_v36, 6 }
 0x99c   :  { %845 = vrot.lane.b32.xlu2 %v844_v53, %s1728_s4 }
 0x9a0   :  { %v2130_v45 = vpop.permute.xlu0 %758 }
 0x9a1   :  { %v2137_v46 = vsel %vm119_vm9, %v2130_v45, %v636_v10 }
 0x9a2   :  { %1521 = vmatmul.msk.f32.vlgmr.msrb.gmra.mxu3 %vm129_vm10, %v2137_v46 }
 0x9f6   :  { %v846_v4 = vpop.permute.xlu2 %845 }
 0xa17   :  { %v792_v47 = vpop.f32.mrf.mxu2 }
 0xa18   :  { %v795_v8 = vadd.f32 %v792_v47, %v2145_v48 }
 0xa1a   :  { %v1522_v55 = vmul.f32 -1.442695, %v795_v8 }
 0xa25   :  { %v816_v58 = vpop.f32.mrf.mxu3 }
 0xa26   :  { %v820_v32 = vrot.slane %v816_v58, 2 }
 0xa28   :  { %v822_v38 = vadd.f32 %v820_v32, %v1893_v30 }
 0xa2a   :  { %1608 = vtanh.f32 %v822_v38  ;;  %v1523_v52 = vmul.f32 -1.442695, %v822_v38 }
 0xa2b   :  { %1610 = vtanh.f32 %v795_v8 }
 0xa2c   :  { %1612 = vpow2.f32 %v1523_v52 }
 0xa2d   :  { %1614 = vpow2.f32 %v1522_v55  ;;  %v923_v55 = vrot.slane %v2137_v46, 2 }
 0xa30   :  { %v1609_v50 = vpop.eup %1608 }
 0xa31   :  { %892 = vrot.lane.b32.xlu0 %v1609_v50, %s1728_s4  ;;  %v1611_v10 = vpop.eup %1610 }
 0xa32   :  { %v1613_v56 = vpop.eup %1612 }
 0xa33   :  { %v868_v59 = vadd.f32 1.0, %v1613_v56  ;;  %v1615_v27 = vpop.eup %1614 }
 0xa34   :  { %v826_v60 = vadd.f32 1.0, %v1615_v27 }
 0xa35   :  { %1616 = vrcp.f32 %v868_v59  ;;  %v880_v13 = vand.u32 2147483648, %v868_v59  ;;  %vm874_vm13 = vweird.f32 %v868_v59  ;;  %v878_v14 = vand.u32 2147483647, %v868_v59 }
 0xa36   :  { %1618 = vrcp.f32 %v826_v60  ;;  %v838_v26 = vand.u32 2147483648, %v826_v60  ;;  %vm832_vm2 = vweird.f32 %v826_v60  ;;  %v836_v49 = vand.u32 2147483647, %v826_v60 }
 0xa37   :  { %v881_v18 = vor.u32 1.1754944e-38, %v880_v13  ;;  %vm879_vm15 = vcmp.eq.f32.partialorder %v878_v14, 8.507059e+37 }
 0xa38   :  { %v839_v20 = vor.u32 1.1754944e-38, %v838_v26  ;;  %vm837_vm4 = vcmp.eq.f32.partialorder %v836_v49, 8.507059e+37 }
 0xa39   :  { %850 = vrot.lane.b32.xlu0 %v1611_v10, %s1728_s4 }
 0xa3b   :  { %v1617_v33 = vpop.eup %1616 }
 0xa3c   :  { %v870_v15 = vmul.f32 %v1617_v33, %v868_v59  ;;  %v1619_v0 = vpop.eup %1618  ;;  %vm875_vm12 = vweird.f32 %v1617_v33 }
 0xa3d   :  { %v828_v2 = vmul.f32 %v1619_v0, %v826_v60  ;;  %vm876_vm14 = vmor %vm874_vm13, %vm875_vm12  ;;  %vm833_vm1 = vweird.f32 %v1619_v0 }
 0xa3e   :  { %v871_v63 = vsub.f32 1.0, %v870_v15  ;;  %vm834_vm3 = vmor %vm832_vm2, %vm833_vm1 }
 0xa3f   :  { %v829_v7 = vsub.f32 1.0, %v828_v2 }
 0xa40   :  { %v872_v1 = vmul.f32 %v1617_v33, %v871_v63 }
 0xa41   :  { %v830_v17 = vmul.f32 %v1619_v0, %v829_v7 }
 0xa42   :  { %v873_v5 = vadd.f32 %v1617_v33, %v872_v1 }
 0xa43   :  { %v831_v23 = vadd.f32 %v1619_v0, %v830_v17 }
 0xa44   :  { %v877_v16 = vsel %vm876_vm14, %v1617_v33, %v873_v5 }
 0xa45   :  { %v882_v21 = vsel %vm879_vm15, %v881_v18, %v877_v16  ;;  %v835_v28 = vsel %vm834_vm3, %v1619_v0, %v831_v23 }
 0xa46   :  { %v840_v9 = vsel %vm837_vm4, %v839_v20, %v835_v28  ;;  %v890_v35 = vmul.f32 %v888_v62, %v882_v21 }
 0xa47   :  { %v848_v6 = vmul.f32 %v846_v4, %v840_v9 }
 0xaa3   :  { %v893_v54 = vpop.permute.xlu0 %892 }
 0xaa4   :  { %v895_v22 = vmul.f32 %v893_v54, %v882_v21 }
 0xaa6   :  { %897 = vrot.lane.b32.xlu1 %v895_v22, %s1728_s4 }
 0xaab   :  { %v851_v29 = vpop.permute.xlu0 %850 }
 0xaac   :  { %v853_v19 = vmul.f32 %v851_v29, %v840_v9 }
 0xaae   :  { %855 = vrot.lane.b32.xlu0 %v853_v19, %s1728_s4 }
 0xb18   :  { %v898_v39 = vpop.permute.xlu1 %897 }
 0xb19   :  { %v900_v41 = vadd.f32 %v898_v39, %v890_v35 }
 0xb1b   :  { %1620 = vtanh.f32 %v900_v41 }
 0xb20   :  { %v856_v11 = vpop.permute.xlu0 %855 }
 0xb21   :  { %v1621_v44 = vpop.eup %1620  ;;  %v858_v58 = vadd.f32 %v856_v11, %v848_v6 }
 0xb22   :  { %903 = vrot.lane.b32.xlu1 %v1621_v44, %s1728_s4 }
 0xb23   :  { %1622 = vtanh.f32 %v858_v58 }
 0xb29   :  { %v1623_v32 = vpop.eup %1622 }
 0xb2a   :  { %861 = vrot.lane.b32.xlu2 %v1623_v32, %s1728_s4 }
 0xb32   :  { %927 = vrot.lane.b32.xlu2 %v900_v41, %s1729_s16 }
 0xb84   :  { %v862_v38 = vpop.permute.xlu2 %861 }
 0xb85   :  { %v864_v47 = vmul.f32 %v862_v38, %v840_v9 }
 0xb87   :  { %908 = vrot.lane.b32.xlu1 %v864_v47, %s1730_s17 }
 0xb8c   :  { %v928_v7 = vpop.permute.xlu2 %927 }
 0xb8d   :  { %v2197_v36 = vsel %vm118_vm11, %v928_v7, %v886_v3 }
 0xb8f   :  { %914 = vrot.lane.b32.xlu1 %v858_v58, %s1729_s16 }
 0xb94   :  { %v904_v8 = vpop.permute.xlu1 %903 }
 0xb95   :  { %v906_v50 = vmul.f32 %v904_v8, %v882_v21 }
 0xb97   :  { %920 = vrot.lane.b32.xlu0 %v906_v50, %s1730_s17 }
 0xbf9   :  { %v2158_v10 = vpop.permute.xlu1 %908 }
 0xbfa   :  { %v2165_v52 = vsel %vm119_vm9, %v2158_v10, %v772_v25 }
 0xbfb   :  { %1524 = vmatmul.msk.f32.vlgmr.msra.gmra.mxu0 %vm129_vm10, %v2165_v52 }
 0xc01   :  { %v915_v15 = vpop.permute.xlu1 %914 }
 0xc02   :  { %v2185_v46 = vsel %vm119_vm9, %v915_v15, %v844_v53  ;;  %v1052_v53 = vrot.slane %v2197_v36, 2 }
 0xc03   :  { %v1010_v63 = vrot.slane %v2185_v46, 6 }
 0xc09   :  { %v2170_v56 = vpop.permute.xlu0 %920 }
 0xc0a   :  { %v2175_v59 = vsel %vm118_vm11, %v2170_v56, %v923_v55 }
 0xc0b   :  { %v962_v27 = vrot.slane %v2175_v59, 6 }
 0xc0d   :  { %1525 = vmatmul.msk.f32.vlgmr.msra.gmra.mxu1 %vm129_vm10, %v962_v27 }
 0xc78   :  { %v954_v24 = vpop.f32.mrf.mxu0 }
 0xc79   :  { %v958_v60 = vrot.slane %v954_v24, 6 }
 0xc7b   :  { %v960_v25 = vadd.f32 %v958_v60, %v2145_v48 }
 0xc7d   :  { %1624 = vtanh.f32 %v960_v25  ;;  %v1526_v13 = vmul.f32 -1.442695, %v960_v25 }
 0xc83   :  { %v1625_v33 = vpop.eup %1624 }
 0xc84   :  { %1016 = vrot.lane.b32.xlu2 %v1625_v33, %s1728_s4 }
 0xc8a   :  { %v982_v0 = vpop.f32.mrf.mxu1 }
 0xc8b   :  { %v986_v1 = vrot.slane %v982_v0, 4 }
 0xc8c   :  { %1011 = vrot.lane.b32.xlu2 %v1010_v63, %s1728_s4 }
 0xc8d   :  { %v988_v2 = vadd.f32 %v986_v1, %v1893_v30 }
 0xc8f   :  { %1626 = vtanh.f32 %v988_v2  ;;  %v1527_v23 = vmul.f32 -1.442695, %v988_v2 }
 0xc90   :  { %1628 = vpow2.f32 %v1526_v13  ;;  %v1077_v13 = vrot.slane %v2165_v52, 6 }
 0xc95   :  { %v1627_v5 = vpop.eup %1626 }
 0xc96   :  { %1058 = vrot.lane.b32.xlu0 %v1627_v5, %s1728_s4  ;;  %v1629_v14 = vpop.eup %1628 }
 0xc97   :  { %v992_v16 = vadd.f32 1.0, %v1629_v14 }
 0xc99   :  { %1630 = vrcp.f32 %v992_v16  ;;  %v1004_v22 = vand.u32 2147483648, %v992_v16  ;;  %vm998_vm6 = vweird.f32 %v992_v16  ;;  %v1002_v3 = vand.u32 2147483647, %v992_v16 }
 0xc9a   :  { %1632 = vpow2.f32 %v1527_v23 }
 0xc9b   :  { %v1005_v49 = vor.u32 1.1754944e-38, %v1004_v22  ;;  %vm1003_vm8 = vcmp.eq.f32.partialorder %v1002_v3, 8.507059e+37 }
 0xc9e   :  { %1053 = vrot.lane.b32.xlu0 %v1052_v53, %s1728_s4 }
 0xc9f   :  { %v1631_v17 = vpop.eup %1630 }
 0xca0   :  { %v994_v18 = vmul.f32 %v1631_v17, %v992_v16  ;;  %vm999_vm5 = vweird.f32 %v1631_v17  ;;  %v1633_v9 = vpop.eup %1632 }
 0xca1   :  { %vm1000_vm7 = vmor %vm998_vm6, %vm999_vm5  ;;  %v1034_v19 = vadd.f32 1.0, %v1633_v9 }
 0xca2   :  { %v995_v54 = vsub.f32 1.0, %v994_v18  ;;  %v1090_v18 = vrot.slane %v2175_v59, 2 }
 0xca3   :  { %1634 = vrcp.f32 %v1034_v19  ;;  %v1046_v6 = vand.u32 2147483648, %v1034_v19  ;;  %vm1040_vm13 = vweird.f32 %v1034_v19  ;;  %v1044_v11 = vand.u32 2147483647, %v1034_v19 }
 0xca4   :  { %v996_v21 = vmul.f32 %v1631_v17, %v995_v54 }
 0xca5   :  { %v1047_v58 = vor.u32 1.1754944e-38, %v1046_v6  ;;  %vm1045_vm15 = vcmp.eq.f32.partialorder %v1044_v11, 8.507059e+37 }
 0xca6   :  { %v997_v42 = vadd.f32 %v1631_v17, %v996_v21 }
 0xca8   :  { %v1001_v26 = vsel %vm1000_vm7, %v1631_v17, %v997_v42 }
 0xca9   :  { %v1006_v28 = vsel %vm1003_vm8, %v1005_v49, %v1001_v26  ;;  %v1635_v62 = vpop.eup %1634 }
 0xcaa   :  { %v1036_v35 = vmul.f32 %v1635_v62, %v1034_v19  ;;  %vm1041_vm12 = vweird.f32 %v1635_v62 }
 0xcab   :  { %vm1042_vm14 = vmor %vm1040_vm13, %vm1041_vm12 }
 0xcac   :  { %v1037_v39 = vsub.f32 1.0, %v1036_v35 }
 0xcae   :  { %v1038_v41 = vmul.f32 %v1635_v62, %v1037_v39 }
 0xcb0   :  { %v1039_v4 = vadd.f32 %v1635_v62, %v1038_v41 }
 0xcb2   :  { %v1043_v44 = vsel %vm1042_vm14, %v1635_v62, %v1039_v4 }
 0xcb3   :  { %v1048_v38 = vsel %vm1045_vm15, %v1047_v58, %v1043_v44 }
 0xcde   :  { %v1017_v20 = vpop.permute.xlu2 %1016 }
 0xcdf   :  { %v1019_v29 = vmul.f32 %v1017_v20, %v1006_v28 }
 0xce1   :  { %1021 = vrot.lane.b32.xlu0 %v1019_v29, %s1728_s4 }
 0xce6   :  { %v1012_v50 = vpop.permute.xlu2 %1011 }
 0xce7   :  { %v1014_v55 = vmul.f32 %v1012_v50, %v1006_v28 }
 0xd08   :  { %v1059_v32 = vpop.permute.xlu0 %1058 }
 0xd09   :  { %v1061_v47 = vmul.f32 %v1059_v32, %v1048_v38 }
 0xd0b   :  { %1063 = vrot.lane.b32.xlu1 %v1061_v47, %s1728_s4 }
 0xd10   :  { %v1054_v8 = vpop.permute.xlu0 %1053 }
 0xd11   :  { %v1056_v25 = vmul.f32 %v1054_v8, %v1048_v38 }
 0xd53   :  { %v1022_v27 = vpop.permute.xlu0 %1021 }
 0xd54   :  { %v1024_v24 = vadd.f32 %v1022_v27, %v1014_v55 }
 0xd56   :  { %1636 = vtanh.f32 %v1024_v24 }
 0xd5c   :  { %v1637_v60 = vpop.eup %1636 }
 0xd5d   :  { %1027 = vrot.lane.b32.xlu2 %v1637_v60, %s1728_s4 }
 0xd7d   :  { %v1064_v33 = vpop.permute.xlu1 %1063 }
 0xd7e   :  { %v1066_v15 = vadd.f32 %v1064_v33, %v1056_v25 }
 0xd80   :  { %1638 = vtanh.f32 %v1066_v15  ;;  %1094 = vrot.lane.b32.xlu2 %v1066_v15, %s1729_s16 }
 0xd86   :  { %v1639_v0 = vpop.eup %1638 }
 0xd87   :  { %1069 = vrot.lane.b32.xlu1 %v1639_v0, %s1728_s4 }
 0xdb7   :  { %v1028_v1 = vpop.permute.xlu2 %1027 }
 0xdb8   :  { %v1030_v2 = vmul.f32 %v1028_v1, %v1006_v28 }
 0xdba   :  { %1074 = vrot.lane.b32.xlu1 %v1030_v2, %s1730_s17 }
 0xdc2   :  { %1081 = vrot.lane.b32.xlu1 %v1024_v24, %s1729_s16 }
 0xdda   :  { %v1095_v35 = vpop.permute.xlu2 %1094 }
 0xddb   :  { %v2249_v39 = vsel %vm118_vm11, %v1095_v35, %v1052_v53 }
 0xddc   :  { %v1220_v4 = vrot.slane %v2249_v39, 2 }
 0xdf9   :  { %v1070_v5 = vpop.permute.xlu1 %1069 }
 0xdfa   :  { %v1072_v7 = vmul.f32 %v1070_v5, %v1048_v38 }
 0xdfc   :  { %1087 = vrot.lane.b32.xlu0 %v1072_v7, %s1730_s17 }
 0xe2c   :  { %v2212_v14 = vpop.permute.xlu1 %1074 }
 0xe2d   :  { %v2217_v16 = vsel %vm119_vm9, %v2212_v14, %v1077_v13 }
 0xe2e   :  { %v1102_v17 = vrot.slane %v2217_v16, 2 }
 0xe30   :  { %1528 = vmatmul.msk.f32.vlgmr.msra.gmra.mxu2 %vm129_vm10, %v1102_v17 }
 0xe34   :  { %v1082_v26 = vpop.permute.xlu1 %1081 }
 0xe35   :  { %v2237_v59 = vsel %vm119_vm9, %v1082_v26, %v1010_v63 }
 0xe36   :  { %v1178_v49 = vrot.slane %v2237_v59, 6 }
 0xe6e   :  { %v2222_v54 = vpop.permute.xlu0 %1087 }
 0xe6f   :  { %v2227_v21 = vsel %vm118_vm11, %v2222_v54, %v1090_v18 }
 0xe70   :  { %v1130_v52 = vrot.slane %v2227_v21, 4 }
 0xe72   :  { %1529 = vmatmul.msk.f32.vlgmr.msra.gmra.mxu3 %vm129_vm10, %v1130_v52 }
 0xeb3   :  { %v1122_v42 = vpop.f32.mrf.mxu2 }
 0xeb4   :  { %v1126_v22 = vrot.slane %v1122_v42, 4 }
 0xeb6   :  { %v1128_v3 = vadd.f32 %v1126_v22, %v2145_v48 }
 0xeb8   :  { %1640 = vtanh.f32 %v1128_v3  ;;  %v1530_v28 = vmul.f32 -1.442695, %v1128_v3 }
 0xeba   :  { %1642 = vpow2.f32 %v1530_v28 }
 0xebe   :  { %v1641_v23 = vpop.eup %1640 }
 0xebf   :  { %1184 = vrot.lane.b32.xlu2 %v1641_v23, %s1728_s4 }
 0xec0   :  { %v1643_v29 = vpop.eup %1642 }
 0xec1   :  { %v1160_v62 = vadd.f32 1.0, %v1643_v29 }
 0xec3   :  { %v1172_v58 = vand.u32 2147483648, %v1160_v62  ;;  %vm1166_vm2 = vweird.f32 %v1160_v62  ;;  %v1170_v32 = vand.u32 2147483647, %v1160_v62 }
 0xec5   :  { %v1173_v47 = vor.u32 1.1754944e-38, %v1172_v58  ;;  %vm1171_vm4 = vcmp.eq.f32.partialorder %v1170_v32, 8.507059e+37 }
 0xec7   :  { %1179 = vrot.lane.b32.xlu2 %v1178_v49, %s1728_s4 }
 0xef5   :  { %v1150_v20 = vpop.f32.mrf.mxu3 }
 0xef6   :  { %v1154_v9 = vrot.slane %v1150_v20, 6 }
 0xef8   :  { %v1156_v19 = vadd.f32 %v1154_v9, %v1893_v30 }
 0xefa   :  { %1644 = vtanh.f32 %v1156_v19  ;;  %v1531_v50 = vmul.f32 -1.442695, %v1156_v19 }
 0xefb   :  { %1646 = vrcp.f32 %v1160_v62 }
 0xefc   :  { %1648 = vpow2.f32 %v1531_v50 }
 0xf00   :  { %v1645_v46 = vpop.eup %1644 }
 0xf01   :  { %1226 = vrot.lane.b32.xlu0 %v1645_v46, %s1728_s4  ;;  %v1647_v63 = vpop.eup %1646 }
 0xf02   :  { %v1162_v41 = vmul.f32 %v1647_v63, %v1160_v62  ;;  %vm1167_vm1 = vweird.f32 %v1647_v63  ;;  %v1649_v55 = vpop.eup %1648 }
 0xf03   :  { %vm1168_vm3 = vmor %vm1166_vm2, %vm1167_vm1  ;;  %v1202_v27 = vadd.f32 1.0, %v1649_v55 }
 0xf04   :  { %v1163_v6 = vsub.f32 1.0, %v1162_v41  ;;  %v1245_v41 = vrot.slane %v2217_v16, 6  ;;  %v1258_v16 = vrot.slane %v2227_v21, 2 }
 0xf05   :  { %1650 = vrcp.f32 %v1202_v27  ;;  %v1214_v0 = vand.u32 2147483648, %v1202_v27  ;;  %vm1208_vm6 = vweird.f32 %v1202_v27  ;;  %v1212_v1 = vand.u32 2147483647, %v1202_v27 }
 0xf06   :  { %v1164_v11 = vmul.f32 %v1647_v63, %v1163_v6 }
 0xf07   :  { %v1215_v5 = vor.u32 1.1754944e-38, %v1214_v0  ;;  %vm1213_vm8 = vcmp.eq.f32.partialorder %v1212_v1, 8.507059e+37 }
 0xf08   :  { %v1165_v44 = vadd.f32 %v1647_v63, %v1164_v11 }
 0xf09   :  { %1221 = vrot.lane.b32.xlu0 %v1220_v4, %s1728_s4 }
 0xf0a   :  { %v1169_v38 = vsel %vm1168_vm3, %v1647_v63, %v1165_v44 }
 0xf0b   :  { %v1174_v36 = vsel %vm1171_vm4, %v1173_v47, %v1169_v38  ;;  %v1651_v24 = vpop.eup %1650 }
 0xf0c   :  { %v1204_v60 = vmul.f32 %v1651_v24, %v1202_v27  ;;  %vm1209_vm5 = vweird.f32 %v1651_v24 }
 0xf0d   :  { %vm1210_vm7 = vmor %vm1208_vm6, %vm1209_vm5  ;;  %vm1460_vm5 = vcmask 1041408   ;;  %vm1462_vm6 = vcmask 1043456  }
 0xf0e   :  { %v1205_v25 = vsub.f32 1.0, %v1204_v60 }
 0xf10   :  { %v1206_v33 = vmul.f32 %v1651_v24, %v1205_v25 }
 0xf12   :  { %v1207_v15 = vadd.f32 %v1651_v24, %v1206_v33 }
 0xf14   :  { %v1211_v2 = vsel %vm1210_vm7, %v1651_v24, %v1207_v15  ;;  %vm1464_vm7 = vcmask 1045504  }
 0xf15   :  { %v1216_v13 = vsel %vm1213_vm8, %v1215_v5, %v1211_v2 }
 0xf19   :  { %v1185_v8 = vpop.permute.xlu2 %1184 }
 0xf1a   :  { %v1187_v53 = vmul.f32 %v1185_v8, %v1174_v36 }
 0xf1c   :  { %1189 = vrot.lane.b32.xlu0 %v1187_v53, %s1728_s4 }
 0xf21   :  { %v1180_v52 = vpop.permute.xlu2 %1179 }
 0xf22   :  { %v1182_v42 = vmul.f32 %v1180_v52, %v1174_v36 }
 0xf73   :  { %v1227_v7 = vpop.permute.xlu0 %1226 }
 0xf74   :  { %v1229_v17 = vmul.f32 %v1227_v7, %v1216_v13 }
 0xf76   :  { %1231 = vrot.lane.b32.xlu1 %v1229_v17, %s1728_s4 }
 0xf7b   :  { %v1222_v18 = vpop.permute.xlu0 %1221 }
 0xf7c   :  { %v1224_v26 = vmul.f32 %v1222_v18, %v1216_v13 }
 0xf8e   :  { %v1190_v22 = vpop.permute.xlu0 %1189 }
 0xf8f   :  { %v1192_v3 = vadd.f32 %v1190_v22, %v1182_v42 }
 0xf91   :  { %1652 = vtanh.f32 %v1192_v3 }
 0xf97   :  { %v1653_v23 = vpop.eup %1652 }
 0xf98   :  { %1195 = vrot.lane.b32.xlu2 %v1653_v23, %s1728_s4 }
 0xfe8   :  { %v1232_v28 = vpop.permute.xlu1 %1231 }
 0xfe9   :  { %v1234_v20 = vadd.f32 %v1232_v28, %v1224_v26 }
 0xfeb   :  { %1654 = vtanh.f32 %v1234_v20  ;;  %1262 = vrot.lane.b32.xlu2 %v1234_v20, %s1729_s16 }
 0xff1   :  { %v1655_v29 = vpop.eup %1654 }
 0xff2   :  { %1237 = vrot.lane.b32.xlu1 %v1655_v29, %s1728_s4  ;;  %v1196_v9 = vpop.permute.xlu2 %1195 }
 0xff3   :  { %v1198_v19 = vmul.f32 %v1196_v9, %v1174_v36 }
 0xffa   :  { %1242 = vrot.lane.b32.xlu1 %v1198_v19, %s1730_s17 }
0x1002   :  { %1249 = vrot.lane.b32.xlu1 %v1192_v3, %s1729_s16 }
0x1045   :  { %v1263_v62 = vpop.permute.xlu2 %1262 }
0x1046   :  { %v1266_v46 = vsel %vm118_vm11, %v1263_v62, %v1220_v4 }
0x1047   :  { %v1385_v35 = vrot.slane %v1266_v46, 2 }
0x1049   :  { %1386 = vrot.lane.b32.xlu2 %v1385_v35, %s1728_s4 }
0x1064   :  { %v1238_v63 = vpop.permute.xlu1 %1237 }
0x1065   :  { %v1240_v39 = vmul.f32 %v1238_v63, %v1216_v13 }
0x1067   :  { %1255 = vrot.lane.b32.xlu0 %v1240_v39, %s1730_s17 }
0x106c   :  { %v2265_v6 = vpop.permute.xlu1 %1242 }
0x106d   :  { %v2270_v11 = vsel %vm119_vm9, %v2265_v6, %v1245_v41 }
0x106e   :  { %v1270_v44 = vrot.slane %v2270_v11, 4 }
0x1070   :  { %1532 = vmatmul.msk.f32.vlgmr.msrb.gmra.mxu0 %vm129_vm10, %v1270_v44 }
0x1074   :  { %v1250_v4 = vpop.permute.xlu1 %1249 }
0x1075   :  { %v1253_v58 = vsel %vm119_vm9, %v1250_v4, %v1178_v49 }
0x1076   :  { %v1343_v32 = vrot.slane %v1253_v58, 6 }
0x1078   :  { %1344 = vrot.lane.b32.xlu2 %v1343_v32, %s1728_s4 }
0x10a3   :  { %v1387_v63 = vpop.permute.xlu2 %1386 }
0x10d2   :  { %v1345_v4 = vpop.permute.xlu2 %1344 }
0x10d9   :  { %v2280_v38 = vpop.permute.xlu0 %1255 }
0x10da   :  { %v2285_v47 = vsel %vm118_vm11, %v2280_v38, %v1258_v16 }
0x10db   :  { %v1298_v36 = vrot.slane %v2285_v47, 2  ;;  %v1267_v47 = vsel %vm119_vm9, %v2265_v6, 0.0 }
0x10dd   :  { %1533 = vmatmul.msk.f32.vlgmr.msrb.gmra.mxu1 %vm129_vm10, %v1298_v36 }
0x10ed   :  { %v1290_v59 = vpop.f32.mrf.mxu0 }
0x10ee   :  { %v1294_v53 = vrot.slane %v1290_v59, 2 }
0x10f0   :  { %v1296_v21 = vadd.f32 %v1294_v53, %v2145_v48  ;;  %v438_v53 = vsel %vm119_vm9, %v1989_v61, 0.0 }
0x10f2   :  { %v1534_v24 = vmul.f32 -1.442695, %v1296_v21 }
0x115a   :  { %v1318_v49 = vpop.f32.mrf.mxu1 }
0x115b   :  { %v1321_v8 = vadd.f32 %v1318_v49, %v1893_v30 }
0x115d   :  { %1656 = vtanh.f32 %v1321_v8  ;;  %v1535_v27 = vmul.f32 -1.442695, %v1321_v8  ;;  %v606_v8 = vsel %vm119_vm9, %v2069_v12, 0.0  ;;  %v933_v12 = vsel %vm118_vm11, %v2170_v56, 0.0 }
0x115e   :  { %1658 = vtanh.f32 %v1296_v21  ;;  %v1268_v21 = vsel %vm118_vm11, %v2280_v38, 0.0  ;;  %v770_v38 = vsel %vm119_vm9, %v2130_v45, 0.0 }
0x115f   :  { %1660 = vpow2.f32 %v1535_v27 }
0x1160   :  { %1662 = vpow2.f32 %v1534_v24  ;;  %v1100_v24 = vsel %vm118_vm11, %v2222_v54, 0.0 }
0x1163   :  { %v1657_v50 = vpop.eup %1656 }
0x1164   :  { %1391 = vrot.lane.b32.xlu0 %v1657_v50, %s1728_s4  ;;  %v1659_v55 = vpop.eup %1658 }
0x1165   :  { %v1661_v60 = vpop.eup %1660 }
0x1166   :  { %v1367_v25 = vadd.f32 1.0, %v1661_v60  ;;  %v1663_v33 = vpop.eup %1662  ;;  %v1410_v60 = vrot.slane %v2270_v11, 6  ;;  %v932_v11 = vsel %vm119_vm9, %v2158_v10, 0.0 }
0x1167   :  { %v1325_v30 = vadd.f32 1.0, %v1663_v33 }
0x1168   :  { %1664 = vrcp.f32 %v1367_v25  ;;  %v1379_v17 = vand.u32 2147483648, %v1367_v25  ;;  %vm1373_vm13 = vweird.f32 %v1367_v25  ;;  %v1377_v18 = vand.u32 2147483647, %v1367_v25 }
0x1169   :  { %1666 = vrcp.f32 %v1325_v30  ;;  %v1337_v20 = vand.u32 2147483648, %v1325_v30  ;;  %vm1331_vm2 = vweird.f32 %v1325_v30  ;;  %v1335_v29 = vand.u32 2147483647, %v1325_v30 }
0x116a   :  { %v1380_v22 = vor.u32 1.1754944e-38, %v1379_v17  ;;  %vm1378_vm15 = vcmp.eq.f32.partialorder %v1377_v18, 8.507059e+37 }
0x116b   :  { %v1338_v19 = vor.u32 1.1754944e-38, %v1337_v20  ;;  %vm1336_vm4 = vcmp.eq.f32.partialorder %v1335_v29, 8.507059e+37 }
0x116c   :  { %1349 = vrot.lane.b32.xlu0 %v1659_v55, %s1728_s4 }
0x116e   :  { %v1665_v15 = vpop.eup %1664 }
0x116f   :  { %v1369_v0 = vmul.f32 %v1665_v15, %v1367_v25  ;;  %v1667_v1 = vpop.eup %1666  ;;  %vm1374_vm12 = vweird.f32 %v1665_v15 }
0x1170   :  { %v1327_v5 = vmul.f32 %v1667_v1, %v1325_v30  ;;  %vm1375_vm14 = vmor %vm1373_vm13, %vm1374_vm12  ;;  %vm1332_vm1 = vweird.f32 %v1667_v1 }
0x1171   :  { %v1370_v48 = vsub.f32 1.0, %v1369_v0  ;;  %vm1333_vm3 = vmor %vm1331_vm2, %vm1332_vm1  ;;  %v1099_v0 = vsel %vm119_vm9, %v2212_v14, 0.0  ;;  %v605_v14 = vsel %vm118_vm11, %v2045_v51, 0.0 }
0x1172   :  { %v1328_v13 = vsub.f32 1.0, %v1327_v5 }
0x1173   :  { %v1371_v2 = vmul.f32 %v1665_v15, %v1370_v48 }
0x1174   :  { %v1329_v42 = vmul.f32 %v1667_v1, %v1328_v13 }
0x1175   :  { %v1372_v7 = vadd.f32 %v1665_v15, %v1371_v2 }
0x1176   :  { %v1330_v28 = vadd.f32 %v1667_v1, %v1329_v42 }
0x1177   :  { %v1376_v52 = vsel %vm1375_vm14, %v1665_v15, %v1372_v7 }
0x1178   :  { %v1381_v23 = vsel %vm1378_vm15, %v1380_v22, %v1376_v52  ;;  %v1334_v9 = vsel %vm1333_vm3, %v1667_v1, %v1330_v28  ;;  %v437_v22 = vsel %vm118_vm11, %v1975_v57, 0.0 }
0x1179   :  { %v1339_v46 = vsel %vm1336_vm4, %v1338_v19, %v1334_v9  ;;  %v1389_v39 = vmul.f32 %v1387_v63, %v1381_v23 }
0x117a   :  { %v1347_v58 = vmul.f32 %v1345_v4, %v1339_v46 }
0x11d6   :  { %v1392_v3 = vpop.permute.xlu0 %1391 }
0x11d7   :  { %v1394_v26 = vmul.f32 %v1392_v3, %v1381_v23 }
0x11d9   :  { %1396 = vrot.lane.b32.xlu1 %v1394_v26, %s1728_s4  ;;  %v769_v26 = vsel %vm118_vm11, %v2109_v43, 0.0 }
0x11de   :  { %v1350_v62 = vpop.permute.xlu0 %1349 }
0x11df   :  { %v1352_v35 = vmul.f32 %v1350_v62, %v1339_v46 }
0x11e1   :  { %1354 = vrot.lane.b32.xlu0 %v1352_v35, %s1728_s4 }
0x124b   :  { %v1397_v41 = vpop.permute.xlu1 %1396 }
0x124c   :  { %v1399_v44 = vadd.f32 %v1397_v41, %v1389_v39 }
0x124e   :  { %1668 = vtanh.f32 %v1399_v44 }
0x1253   :  { %v1355_v32 = vpop.permute.xlu0 %1354 }
0x1254   :  { %v1669_v16 = vpop.eup %1668  ;;  %v1357_v59 = vadd.f32 %v1355_v32, %v1347_v58 }
0x1255   :  { %1402 = vrot.lane.b32.xlu1 %v1669_v16, %s1728_s4 }
0x1256   :  { %1670 = vtanh.f32 %v1357_v59 }
0x125c   :  { %v1671_v49 = vpop.eup %1670 }
0x125d   :  { %1447 = vrot.lane.b32.xlu1 %v606_v8, %s1728_s4  ;;  %1360 = vrot.lane.b32.xlu2 %v1671_v49, %s1728_s4 }
0x1265   :  { %1452 = vrot.lane.b32.xlu1 %v438_v53, %s1728_s4  ;;  %1427 = vrot.lane.b32.xlu2 %v1268_v21, %s1728_s4 }
0x12b7   :  { %v1361_v50 = vpop.permute.xlu2 %1360 }
0x12b8   :  { %v1363_v55 = vmul.f32 %v1361_v50, %v1339_v46 }
0x12ba   :  { %1407 = vrot.lane.b32.xlu2 %v1363_v55, %s1730_s17 }
0x12bf   :  { %v1428_v56 = vpop.permute.xlu2 %1427 }
0x12c0   :  { %v1430_v31 = vsel %vm129_vm10, %v437_v22, %v1428_v56 }
0x12c2   :  { %1437 = vrot.lane.b32.xlu2 %v933_v12, %s1728_s4 }
0x12c7   :  { %v1403_v27 = vpop.permute.xlu1 %1402 }
0x12c8   :  { %v1405_v61 = vmul.f32 %v1403_v27, %v1381_v23 }
0x12ca   :  { %1414 = vrot.lane.b32.xlu0 %v1405_v61, %s1730_s17 }
0x12cf   :  { %v1448_v30 = vpop.permute.xlu1 %1447 }
0x12d0   :  { %v1450_v2 = vsel %vm129_vm10, %v1099_v0, %v1448_v30 }
0x12d2   :  { %1442 = vrot.lane.b32.xlu0 %v770_v38, %s1728_s4 }
0x12da   :  { %1432 = vrot.lane.b32.xlu0 %v1100_v24, %s1728_s4 }
0x12e2   :  { %1456 = vrot.lane.b32.xlu0 %v1922_v34, %s1728_s4  ;;  %v1453_v34 = vpop.permute.xlu1 %1452 }
0x12e3   :  { %v1455_v5 = vsel %vm129_vm10, %v1267_v47, %v1453_v34 }
0x1314   :  { %v1408_v25 = vpop.permute.xlu2 %1407 }
0x1315   :  { %v1412_v33 = vsel %vm119_vm9, %v1408_v25, %v1410_v60  ;;  %v1419_v6 = vsel %vm119_vm9, %v1408_v25, 0.0  ;;  %vm1477_vm9 = vcmask 523270  }
0x131c   :  { %v1438_v3 = vpop.permute.xlu2 %1437 }
0x131d   :  { %v1440_v57 = vsel %vm129_vm10, %v769_v26, %v1438_v3 }
0x133c   :  { %v1415_v45 = vpop.permute.xlu0 %1414 }
0x133d   :  { %v1420_v15 = vsel %vm118_vm11, %v1415_v45, 0.0  ;;  %v1418_v54 = vsel %vm118_vm11, %v1415_v45, %v1298_v36 }
0x133e   :  { %1422 = vrot.lane.b32.xlu1 %v1420_v15, %s1728_s4  ;;  %v1472_v48 = vrot.slane %v1418_v54, 2 }
0x1344   :  { %v1443_v1 = vpop.permute.xlu0 %1442 }
0x1345   :  { %v1445_v36 = vsel %vm129_vm10, %v932_v11, %v1443_v1 }
0x1346   :  { %v1466_v7 = vsel %vm1460_vm5, %v1445_v36, %v1450_v2  ;;  %1473 = vrot.lane.b32.xlu1 %v1472_v48, %s1728_s4 }
0x1347   :  { %v1467_v10 = vsel %vm1462_vm6, %v1466_v7, %v1455_v5 }
0x134c   :  { %v1433_v13 = vpop.permute.xlu0 %1432 }
0x134d   :  { %v1435_v17 = vsel %vm129_vm10, %v605_v14, %v1433_v13 }
0x1354   :  { %v1457_v18 = vpop.permute.xlu0 %1456 }
0x1355   :  { %v1459_v52 = vsel %vm129_vm10, %v1419_v6, %v1457_v18 }
0x1356   :  { %v1468_v42 = vsel %vm1464_vm7, %v1467_v10, %v1459_v52 }
0x1357   :  { %1470 = vst.msk [vmem:[#allocation5 + $0x8] sm:$0xff] %vm63_vm0, %v1468_v42 }
0x13b0   :  { %v1423_v51 = vpop.permute.xlu1 %1422 }
0x13b1   :  { %v1425_v23 = vsel %vm129_vm10, %v1936_v40, %v1423_v51 }
0x13b2   :  { %v1461_v28 = vsel %vm1460_vm5, %v1425_v23, %v1430_v31 }
0x13b3   :  { %v1463_v20 = vsel %vm1462_vm6, %v1461_v28, %v1435_v17 }
0x13b4   :  { %v1465_v29 = vsel %vm1464_vm7, %v1463_v20, %v1440_v57 }
0x13b5   :  { %1469 = vst.msk [vmem:[#allocation5] sm:$0xff] %vm63_vm0, %v1465_v29 }
0x13b6   :  { %1491 = dma.vmem_to_hbm [thread:$0]  %s1484_s22, 256, %s1486_s25, [#allocation4], %s1725_s26, %s1725_s26, %s1726_s27  }
0x13b8   :  { %v1474_v40 = vpop.permute.xlu1 %1473 }
0x13b9   :  { %v1476_v37 = vsel %vm129_vm10, %v1412_v33, %v1474_v40 }
0x13ba   :  { %1478 = vst.msk [vmem:[%s2391_s6 - $0x6] sm:$0xc0] %vm1477_vm9, %v1476_v37 }
0x13bb   :  { %1722 = dma.done.wait [#allocation4], 256  }
0x13bc   :  { %1723 = vsyncadd [#allocation4], 4294967040 }
0x13bd   :  { %1500 = vsyncpa [#allocation3], 1 }
0x13be   :  { %1501 = vsyncpa [#allocation4], 1 }

</bundles_post_ra>
